<compile_context>
chip_gen: v5e
topology: v5e:2x2
jax: 0.10.0
libtpu: 0.0.40
codegen_flags: <defaults>
</compile_context>

<pallas_src>
import jax
import jax.numpy as jnp
from jax import lax
from jax.experimental import pallas as pl
from jax.experimental.pallas import tpu as pltpu


def weight_norm(v, g):
    """PyTorch nn.utils.weight_norm (dim=0): w[o] = g[o] * v[o] / ||v[o]||_F."""
    flat = v.reshape(v.shape[0], -1)
    norms = jnp.sqrt(jnp.sum(flat * flat, axis=1))
    scale = (g.reshape(-1) / norms).reshape((-1,) + (1,) * (v.ndim - 1))
    return v * scale


def _pick_row_tile(ho, max_rows=8):
    """Largest divisor of Ho that is <= max_rows (tune larger for big images)."""
    th = 1
    for cand in range(1, min(ho, max_rows) + 1):
        if ho % cand == 0:
            th = cand
    return th


def _make_tucker_kernel(KH, KW, TH, Wo, stride, dilation, BH, HW, extra):
    def body(xm_ref, xh_ref, wc_ref, wk_ref, wr_ref, o_ref, z_ref):
        # xm_ref: (BH, Wp, Cin)        bf16 main input row window
        # xh_ref: (HALO_B, Wp, Cin)    bf16 halo rows (first `extra` rows used)
        # wc_ref: (Cin, Cin)           bf16 compress 1x1 weight, (in, out)
        # wk_ref: (KH, KW, Cin, Cout)  bf16 core KxK weight, (kh, kw, in, out)
        # wr_ref: (Cout, Cout)         f32 restore 1x1 weight, (in, out)
        # o_ref : (TH, Wo, Cout)       f32 output row tile
        # z_ref : (HW, Wp, Cin)        bf16 compressed-window scratch
        #
        # compress (hoisted): each padded window row is compressed exactly once
        for i in range(HW):
            row = xm_ref[i] if i < BH else xh_ref[i - BH]
            z_ref[i] = jnp.dot(row, wc_ref[...],
                               preferred_element_type=jnp.float32
                               ).astype(z_ref.dtype)
        # core KxK + restore, one output row at a time, f32 accumulation
        cout = o_ref.shape[-1]
        for th in range(TH):
            acc = jnp.zeros((Wo, cout), jnp.float32)
            for kh in range(KH):
                zr = z_ref[th * stride + kh * dilation]           # (Wp, Cin)
                for kw in range(KW):
                    c0 = kw * dilation
                    if stride == 1:
                        patch = zr[c0:c0 + Wo, :]                  # (Wo, Cin)
                    else:
                        patch = zr[c0:c0 + (Wo - 1) * stride + 1:stride, :]
                    acc = acc + jnp.dot(patch, wk_ref[kh, kw],
                                        preferred_element_type=jnp.float32)
            o_ref[th] = jnp.dot(acc, wr_ref[...],
                                preferred_element_type=jnp.float32
                                ).astype(o_ref.dtype)

    if extra > 0:
        return body

    def body_no_halo(xm_ref, wc_ref, wk_ref, wr_ref, o_ref, z_ref):
        body(xm_ref, None, wc_ref, wk_ref, wr_ref, o_ref, z_ref)

    return body_no_halo


def tucker_block_forward(x_nchw, w_compress, w_core, w_restore,
                         stride=1, padding=1, dilation=1, groups=1,
                         row_tile=None):
    """Forward pass of TuckerBlock. Input/output are NCHW (PyTorch convention)."""
    assert groups == 1  # TODO(synk): groups>1 (block-diagonal core matmul) not implemented
    N, Cin, H, W = x_nchw.shape
    Cout, Cin_k, KH, KW = w_core.shape
    assert Cin_k == Cin and w_compress.shape[:2] == (Cin, Cin)
    assert w_restore.shape[:2] == (Cout, Cout)

    Ho = (H + 2 * padding - dilation * (KH - 1) - 1) // stride + 1
    Wo = (W + 2 * padding - dilation * (KW - 1) - 1) // stride + 1

    # NCHW -> NHWC (channels on lanes), zero-pad spatial dims, cast to bf16.
    # Zero padding commutes with the bias-free 1x1 compress conv, so compress
    # can be fused after padding.
    x = jnp.transpose(x_nchw, (0, 2, 3, 1)).astype(jnp.bfloat16)
    xp = jnp.pad(x, ((0, 0), (padding, padding), (padding, padding), (0, 0)))
    Hp, Wp = xp.shape[1], xp.shape[2]

    wc = jnp.transpose(w_compress[:, :, 0, 0], (1, 0)).astype(jnp.bfloat16)
    wk = jnp.transpose(w_core, (2, 3, 1, 0)).astype(jnp.bfloat16)   # (KH,KW,Cin,Cout)
    wr = jnp.transpose(w_restore[:, :, 0, 0], (1, 0)).astype(jnp.float32)

    # Row tiling.
    TH = row_tile if row_tile is not None else _pick_row_tile(Ho)
    assert Ho % TH == 0
    nT = Ho // TH
    BH = TH * stride                                    # main window rows / tile
    HW_rows = (TH - 1) * stride + (KH - 1) * dilation + 1
    extra = max(HW_rows - BH, 0)                        # halo rows beyond main
    assert extra <= BH, "row tile too small for the conv halo"

    in_specs = [pl.BlockSpec((None, BH, Wp, Cin), lambda n, t: (n, t, 0, 0))]
    inputs = [xp]
    halo_b = 0
    if extra > 0:
        # Halo rows come from a second (small) blocked view of the same array:
        # the first `extra` rows of the block starting at padded row (t+1)*BH.
        halo_b = next(d for d in range(1, BH + 1) if BH % d == 0 and d >= extra)
        ratio = BH // halo_b
        in_specs.append(
            pl.BlockSpec((None, halo_b, Wp, Cin),
                         lambda n, t: (n, (t + 1) * ratio, 0, 0)))
        inputs.append(xp)
    in_specs += [
        pl.BlockSpec((Cin, Cin), lambda n, t: (0, 0)),
        pl.BlockSpec((KH, KW, Cin, Cout), lambda n, t: (0, 0, 0, 0)),
        pl.BlockSpec((Cout, Cout), lambda n, t: (0, 0)),
    ]
    inputs += [wc, wk, wr]

    out_spec = pl.BlockSpec((None, TH, Wo, Cout), lambda n, t: (n, t, 0, 0))

    kernel = _make_tucker_kernel(KH, KW, TH, Wo, stride, dilation,
                                 BH, HW_rows, extra)

    # VMEM working-set estimate (double-buffered blocked operands + scratch).
    blk_bytes = (BH + halo_b) * Wp * Cin * 2 + TH * Wo * Cout * 4
    w_bytes = (Cin * Cin + KH * KW * Cin * Cout) * 2 + Cout * Cout * 4
    scratch_bytes = HW_rows * Wp * Cin * 2
    est = 2 * blk_bytes + w_bytes + scratch_bytes
    vmem_limit = int(min(48 * 2 ** 20, max(32 * 2 ** 20, 4 * est)))

    flops = 2 * N * Ho * Wo * (Cin * Cin + KH * KW * Cin * Cout + Cout * Cout)
    bytes_accessed = (xp.size * 2 + wc.size * 2 + wk.size * 2 + wr.size * 4
                      + N * Ho * Wo * Cout * 4)

    out_nhwc = pl.pallas_call(
        kernel,
        out_shape=jax.ShapeDtypeStruct((N, Ho, Wo, Cout), jnp.float32),
        grid=(N, nT),
        in_specs=in_specs,
        out_specs=out_spec,
        scratch_shapes=[pltpu.VMEM((HW_rows, Wp, Cin), jnp.bfloat16)],
        compiler_params=pltpu.CompilerParams(
            dimension_semantics=("parallel", "parallel"),
            vmem_limit_bytes=vmem_limit),
        cost_estimate=pl.CostEstimate(flops=flops, transcendentals=0,
                                      bytes_accessed=bytes_accessed),
    )(*inputs)

    return jnp.transpose(out_nhwc, (0, 3, 1, 2))  # back to NCHW


def _reference_forward(x, wc, wk, wr, stride, padding, dilation):
    conv = lambda lhs, rhs, s, p, d: lax.conv_general_dilated(
        lhs, rhs, window_strides=(s, s), padding=p, rhs_dilation=(d, d),
        dimension_numbers=('NCHW', 'OIHW', 'NCHW'),
        precision=lax.Precision.HIGHEST)
    y = conv(x, wc, 1, 'VALID', 1)
    y = conv(y, wk, stride, [(padding, padding), (padding, padding)], dilation)
    y = conv(y, wr, 1, 'VALID', 1)
    return y


if __name__ == "__main__":
    key = jax.random.PRNGKey(0)
    N, CHIN, CHOUT, H, W, K = 2, 4, 8, 16, 16, 3
    stride, padding, dilation = 1, 1, 1

    keys = jax.random.split(key, 7)
    x = jax.random.normal(keys[0], (N, CHIN, H, W), jnp.float32)

    # Deterministic synthetic weight_norm parameters (shapes match the module's
    # __init__).  The real module fills these from a Tucker decomposition of a
    # pretrained conv weight; here they are synthetic.
    v_compress = jax.random.normal(keys[1], (CHIN, CHIN, 1, 1), jnp.float32)
    g_compress = jax.random.uniform(keys[2], (CHIN,), jnp.float32, 0.5, 1.5)
    v_core = jax.random.normal(keys[3], (CHOUT, CHIN, K, K), jnp.float32)
    g_core = jax.random.uniform(keys[4], (CHOUT,), jnp.float32, 0.5, 1.5)
    v_restore = jax.random.normal(keys[5], (CHOUT, CHOUT, 1, 1), jnp.float32)
    g_restore = jax.random.uniform(keys[6], (CHOUT,), jnp.float32, 0.5, 1.5)

    w_compress = weight_norm(v_compress, g_compress)
    w_core = weight_norm(v_core, g_core)
    w_restore = weight_norm(v_restore, g_restore)

    out = tucker_block_forward(x, w_compress, w_core, w_restore,
                               stride=stride, padding=padding, dilation=dilation)
    out = jax.block_until_ready(out)

    # Reference: f32 convs on the same bf16-rounded activations/weights the
    # kernel consumes (the kernel computes bf16 matmuls with f32 accumulation;
    # the restore stage stays f32 in both).
    rnd = lambda a: a.astype(jnp.bfloat16).astype(jnp.float32)
    ref = _reference_forward(rnd(x), rnd(w_compress), rnd(w_core), w_restore,
                             stride, padding, dilation)
    assert out.shape == ref.shape == (N, CHOUT, H, W)
    assert jnp.allclose(out, ref, rtol=3e-2, atol=3e-2), \
        f"max abs err {jnp.max(jnp.abs(out - ref))}"

    print("KERNEL_OK")
</pallas_src>

<mosaic_0001>
module attributes {stable_mosaic.version = 11 : i64} {
  func.func @body(%arg0: i32, %arg1: i32, %arg2: memref<1x8x18x4xbf16, #tpu.memory_space<vmem>>, %arg3: memref<1x2x18x4xbf16, #tpu.memory_space<vmem>>, %arg4: memref<4x4xbf16, #tpu.memory_space<vmem>>, %arg5: memref<3x3x4x8xbf16, #tpu.memory_space<vmem>>, %arg6: memref<8x8xf32, #tpu.memory_space<vmem>>, %arg7: memref<1x8x16x8xf32, #tpu.memory_space<vmem>>, %arg8: memref<10x18x4xbf16, #tpu.memory_space<vmem>>) attributes {dimension_semantics = [#tpu.dimension_semantics<parallel>, #tpu.dimension_semantics<parallel>], iteration_bounds = array<i64: 2, 2>, scalar_prefetch = 0 : i64, scratch_operands = 1 : i64, tpu.core_type = #tpu.core_type<tc>, window_params = [{transform_indices = @transform_0, window_bounds = array<i64: 1, 8, 18, 4>}, {transform_indices = @transform_1, window_bounds = array<i64: 1, 2, 18, 4>}, {pipeline_mode = #tpu.pipeline_mode<synchronous>, transform_indices = @transform_2, window_bounds = array<i64: 4, 4>}, {pipeline_mode = #tpu.pipeline_mode<synchronous>, transform_indices = @transform_3, window_bounds = array<i64: 3, 3, 4, 8>}, {pipeline_mode = #tpu.pipeline_mode<synchronous>, transform_indices = @transform_4, window_bounds = array<i64: 8, 8>}, {transform_indices = @transform_5, window_bounds = array<i64: 1, 8, 16, 8>}]} {
    %c0 = arith.constant 0 : index
    %c0_0 = arith.constant 0 : index
    %c0_1 = arith.constant 0 : index
    %c0_2 = arith.constant 0 : index
    %0 = vector.load %arg2[%c0, %c0_0, %c0_1, %c0_2] : memref<1x8x18x4xbf16, #tpu.memory_space<vmem>>, vector<1x1x18x4xbf16>
    %1 = vector.shape_cast %0 : vector<1x1x18x4xbf16> to vector<18x4xbf16>
    %c0_3 = arith.constant 0 : index
    %c0_4 = arith.constant 0 : index
    %2 = vector.load %arg4[%c0_3, %c0_4] : memref<4x4xbf16, #tpu.memory_space<vmem>>, vector<4x4xbf16>
    %cst = arith.constant dense<0.000000e+00> : vector<18x4xf32>
    %3 = tpu.matmul %1, %2, %cst {dimension_numbers = #tpu.dot_dimension_numbers<[1], [0], [0], [1], [0, 0, 1, 1], [], []>} : vector<18x4xbf16>, vector<4x4xbf16>, vector<18x4xf32> -> vector<18x4xf32>
    %4 = arith.truncf %3 : vector<18x4xf32> to vector<18x4xbf16>
    %c0_5 = arith.constant 0 : index
    %c0_6 = arith.constant 0 : index
    %c0_7 = arith.constant 0 : index
    %5 = vector.load %arg8[%c0_5, %c0_6, %c0_7] : memref<10x18x4xbf16, #tpu.memory_space<vmem>>, vector<1x18x4xbf16>
    %6 = vector.shape_cast %5 : vector<1x18x4xbf16> to vector<18x4xbf16>
    %7 = vector.shape_cast %4 : vector<18x4xbf16> to vector<1x18x4xbf16>
    tpu.vector_store %arg8[%c0_5, %c0_6, %c0_7], %7 {strides = array<i32>} : memref<10x18x4xbf16, #tpu.memory_space<vmem>>, vector<1x18x4xbf16>,
    %c0_8 = arith.constant 0 : index
    %c1 = arith.constant 1 : index
    %c0_9 = arith.constant 0 : index
    %c0_10 = arith.constant 0 : index
    %8 = vector.load %arg2[%c0_8, %c1, %c0_9, %c0_10] : memref<1x8x18x4xbf16, #tpu.memory_space<vmem>>, vector<1x1x18x4xbf16>
    %9 = vector.shape_cast %8 : vector<1x1x18x4xbf16> to vector<18x4xbf16>
    %c0_11 = arith.constant 0 : index
    %c0_12 = arith.constant 0 : index
    %10 = vector.load %arg4[%c0_11, %c0_12] : memref<4x4xbf16, #tpu.memory_space<vmem>>, vector<4x4xbf16>
    %cst_13 = arith.constant dense<0.000000e+00> : vector<18x4xf32>
    %11 = tpu.matmul %9, %10, %cst_13 {dimension_numbers = #tpu.dot_dimension_numbers<[1], [0], [0], [1], [0, 0, 1, 1], [], []>} : vector<18x4xbf16>, vector<4x4xbf16>, vector<18x4xf32> -> vector<18x4xf32>
    %12 = arith.truncf %11 : vector<18x4xf32> to vector<18x4xbf16>
    %c1_14 = arith.constant 1 : index
    %c0_15 = arith.constant 0 : index
    %c0_16 = arith.constant 0 : index
    %13 = vector.load %arg8[%c1_14, %c0_15, %c0_16] : memref<10x18x4xbf16, #tpu.memory_space<vmem>>, vector<1x18x4xbf16>
    %14 = vector.shape_cast %13 : vector<1x18x4xbf16> to vector<18x4xbf16>
    %15 = vector.shape_cast %12 : vector<18x4xbf16> to vector<1x18x4xbf16>
    tpu.vector_store %arg8[%c1_14, %c0_15, %c0_16], %15 {strides = array<i32>} : memref<10x18x4xbf16, #tpu.memory_space<vmem>>, vector<1x18x4xbf16>,
    %c0_17 = arith.constant 0 : index
    %c2 = arith.constant 2 : index
    %c0_18 = arith.constant 0 : index
    %c0_19 = arith.constant 0 : index
    %16 = vector.load %arg2[%c0_17, %c2, %c0_18, %c0_19] : memref<1x8x18x4xbf16, #tpu.memory_space<vmem>>, vector<1x1x18x4xbf16>
    %17 = vector.shape_cast %16 : vector<1x1x18x4xbf16> to vector<18x4xbf16>
    %c0_20 = arith.constant 0 : index
    %c0_21 = arith.constant 0 : index
    %18 = vector.load %arg4[%c0_20, %c0_21] : memref<4x4xbf16, #tpu.memory_space<vmem>>, vector<4x4xbf16>
    %cst_22 = arith.constant dense<0.000000e+00> : vector<18x4xf32>
    %19 = tpu.matmul %17, %18, %cst_22 {dimension_numbers = #tpu.dot_dimension_numbers<[1], [0], [0], [1], [0, 0, 1, 1], [], []>} : vector<18x4xbf16>, vector<4x4xbf16>, vector<18x4xf32> -> vector<18x4xf32>
    %20 = arith.truncf %19 : vector<18x4xf32> to vector<18x4xbf16>
    %c2_23 = arith.constant 2 : index
    %c0_24 = arith.constant 0 : index
    %c0_25 = arith.constant 0 : index
    %21 = vector.load %arg8[%c2_23, %c0_24, %c0_25] : memref<10x18x4xbf16, #tpu.memory_space<vmem>>, vector<1x18x4xbf16>
    %22 = vector.shape_cast %21 : vector<1x18x4xbf16> to vector<18x4xbf16>
    %23 = vector.shape_cast %20 : vector<18x4xbf16> to vector<1x18x4xbf16>
    tpu.vector_store %arg8[%c2_23, %c0_24, %c0_25], %23 {strides = array<i32>} : memref<10x18x4xbf16, #tpu.memory_space<vmem>>, vector<1x18x4xbf16>,
    %c0_26 = arith.constant 0 : index
    %c3 = arith.constant 3 : index
    %c0_27 = arith.constant 0 : index
    %c0_28 = arith.constant 0 : index
    %24 = vector.load %arg2[%c0_26, %c3, %c0_27, %c0_28] : memref<1x8x18x4xbf16, #tpu.memory_space<vmem>>, vector<1x1x18x4xbf16>
    %25 = vector.shape_cast %24 : vector<1x1x18x4xbf16> to vector<18x4xbf16>
    %c0_29 = arith.constant 0 : index
    %c0_30 = arith.constant 0 : index
    %26 = vector.load %arg4[%c0_29, %c0_30] : memref<4x4xbf16, #tpu.memory_space<vmem>>, vector<4x4xbf16>
    %cst_31 = arith.constant dense<0.000000e+00> : vector<18x4xf32>
    %27 = tpu.matmul %25, %26, %cst_31 {dimension_numbers = #tpu.dot_dimension_numbers<[1], [0], [0], [1], [0, 0, 1, 1], [], []>} : vector<18x4xbf16>, vector<4x4xbf16>, vector<18x4xf32> -> vector<18x4xf32>
    %28 = arith.truncf %27 : vector<18x4xf32> to vector<18x4xbf16>
    %c3_32 = arith.constant 3 : index
    %c0_33 = arith.constant 0 : index
    %c0_34 = arith.constant 0 : index
    %29 = vector.load %arg8[%c3_32, %c0_33, %c0_34] : memref<10x18x4xbf16, #tpu.memory_space<vmem>>, vector<1x18x4xbf16>
    %30 = vector.shape_cast %29 : vector<1x18x4xbf16> to vector<18x4xbf16>
    %31 = vector.shape_cast %28 : vector<18x4xbf16> to vector<1x18x4xbf16>
    tpu.vector_store %arg8[%c3_32, %c0_33, %c0_34], %31 {strides = array<i32>} : memref<10x18x4xbf16, #tpu.memory_space<vmem>>, vector<1x18x4xbf16>,
    %c0_35 = arith.constant 0 : index
    %c4 = arith.constant 4 : index
    %c0_36 = arith.constant 0 : index
    %c0_37 = arith.constant 0 : index
    %32 = vector.load %arg2[%c0_35, %c4, %c0_36, %c0_37] : memref<1x8x18x4xbf16, #tpu.memory_space<vmem>>, vector<1x1x18x4xbf16>
    %33 = vector.shape_cast %32 : vector<1x1x18x4xbf16> to vector<18x4xbf16>
    %c0_38 = arith.constant 0 : index
    %c0_39 = arith.constant 0 : index
    %34 = vector.load %arg4[%c0_38, %c0_39] : memref<4x4xbf16, #tpu.memory_space<vmem>>, vector<4x4xbf16>
    %cst_40 = arith.constant dense<0.000000e+00> : vector<18x4xf32>
    %35 = tpu.matmul %33, %34, %cst_40 {dimension_numbers = #tpu.dot_dimension_numbers<[1], [0], [0], [1], [0, 0, 1, 1], [], []>} : vector<18x4xbf16>, vector<4x4xbf16>, vector<18x4xf32> -> vector<18x4xf32>
    %36 = arith.truncf %35 : vector<18x4xf32> to vector<18x4xbf16>
    %c4_41 = arith.constant 4 : index
    %c0_42 = arith.constant 0 : index
    %c0_43 = arith.constant 0 : index
    %37 = vector.load %arg8[%c4_41, %c0_42, %c0_43] : memref<10x18x4xbf16, #tpu.memory_space<vmem>>, vector<1x18x4xbf16>
    %38 = vector.shape_cast %37 : vector<1x18x4xbf16> to vector<18x4xbf16>
    %39 = vector.shape_cast %36 : vector<18x4xbf16> to vector<1x18x4xbf16>
    tpu.vector_store %arg8[%c4_41, %c0_42, %c0_43], %39 {strides = array<i32>} : memref<10x18x4xbf16, #tpu.memory_space<vmem>>, vector<1x18x4xbf16>,
    %c0_44 = arith.constant 0 : index
    %c5 = arith.constant 5 : index
    %c0_45 = arith.constant 0 : index
    %c0_46 = arith.constant 0 : index
    %40 = vector.load %arg2[%c0_44, %c5, %c0_45, %c0_46] : memref<1x8x18x4xbf16, #tpu.memory_space<vmem>>, vector<1x1x18x4xbf16>
    %41 = vector.shape_cast %40 : vector<1x1x18x4xbf16> to vector<18x4xbf16>
    %c0_47 = arith.constant 0 : index
    %c0_48 = arith.constant 0 : index
    %42 = vector.load %arg4[%c0_47, %c0_48] : memref<4x4xbf16, #tpu.memory_space<vmem>>, vector<4x4xbf16>
    %cst_49 = arith.constant dense<0.000000e+00> : vector<18x4xf32>
    %43 = tpu.matmul %41, %42, %cst_49 {dimension_numbers = #tpu.dot_dimension_numbers<[1], [0], [0], [1], [0, 0, 1, 1], [], []>} : vector<18x4xbf16>, vector<4x4xbf16>, vector<18x4xf32> -> vector<18x4xf32>
    %44 = arith.truncf %43 : vector<18x4xf32> to vector<18x4xbf16>
    %c5_50 = arith.constant 5 : index
    %c0_51 = arith.constant 0 : index
    %c0_52 = arith.constant 0 : index
    %45 = vector.load %arg8[%c5_50, %c0_51, %c0_52] : memref<10x18x4xbf16, #tpu.memory_space<vmem>>, vector<1x18x4xbf16>
    %46 = vector.shape_cast %45 : vector<1x18x4xbf16> to vector<18x4xbf16>
    %47 = vector.shape_cast %44 : vector<18x4xbf16> to vector<1x18x4xbf16>
    tpu.vector_store %arg8[%c5_50, %c0_51, %c0_52], %47 {strides = array<i32>} : memref<10x18x4xbf16, #tpu.memory_space<vmem>>, vector<1x18x4xbf16>,
    %c0_53 = arith.constant 0 : index
    %c6 = arith.constant 6 : index
    %c0_54 = arith.constant 0 : index
    %c0_55 = arith.constant 0 : index
    %48 = vector.load %arg2[%c0_53, %c6, %c0_54, %c0_55] : memref<1x8x18x4xbf16, #tpu.memory_space<vmem>>, vector<1x1x18x4xbf16>
    %49 = vector.shape_cast %48 : vector<1x1x18x4xbf16> to vector<18x4xbf16>
    %c0_56 = arith.constant 0 : index
    %c0_57 = arith.constant 0 : index
    %50 = vector.load %arg4[%c0_56, %c0_57] : memref<4x4xbf16, #tpu.memory_space<vmem>>, vector<4x4xbf16>
    %cst_58 = arith.constant dense<0.000000e+00> : vector<18x4xf32>
    %51 = tpu.matmul %49, %50, %cst_58 {dimension_numbers = #tpu.dot_dimension_numbers<[1], [0], [0], [1], [0, 0, 1, 1], [], []>} : vector<18x4xbf16>, vector<4x4xbf16>, vector<18x4xf32> -> vector<18x4xf32>
    %52 = arith.truncf %51 : vector<18x4xf32> to vector<18x4xbf16>
    %c6_59 = arith.constant 6 : index
    %c0_60 = arith.constant 0 : index
    %c0_61 = arith.constant 0 : index
    %53 = vector.load %arg8[%c6_59, %c0_60, %c0_61] : memref<10x18x4xbf16, #tpu.memory_space<vmem>>, vector<1x18x4xbf16>
    %54 = vector.shape_cast %53 : vector<1x18x4xbf16> to vector<18x4xbf16>
    %55 = vector.shape_cast %52 : vector<18x4xbf16> to vector<1x18x4xbf16>
    tpu.vector_store %arg8[%c6_59, %c0_60, %c0_61], %55 {strides = array<i32>} : memref<10x18x4xbf16, #tpu.memory_space<vmem>>, vector<1x18x4xbf16>,
    %c0_62 = arith.constant 0 : index
    %c7 = arith.constant 7 : index
    %c0_63 = arith.constant 0 : index
    %c0_64 = arith.constant 0 : index
    %56 = vector.load %arg2[%c0_62, %c7, %c0_63, %c0_64] : memref<1x8x18x4xbf16, #tpu.memory_space<vmem>>, vector<1x1x18x4xbf16>
    %57 = vector.shape_cast %56 : vector<1x1x18x4xbf16> to vector<18x4xbf16>
    %c0_65 = arith.constant 0 : index
    %c0_66 = arith.constant 0 : index
    %58 = vector.load %arg4[%c0_65, %c0_66] : memref<4x4xbf16, #tpu.memory_space<vmem>>, vector<4x4xbf16>
    %cst_67 = arith.constant dense<0.000000e+00> : vector<18x4xf32>
    %59 = tpu.matmul %57, %58, %cst_67 {dimension_numbers = #tpu.dot_dimension_numbers<[1], [0], [0], [1], [0, 0, 1, 1], [], []>} : vector<18x4xbf16>, vector<4x4xbf16>, vector<18x4xf32> -> vector<18x4xf32>
    %60 = arith.truncf %59 : vector<18x4xf32> to vector<18x4xbf16>
    %c7_68 = arith.constant 7 : index
    %c0_69 = arith.constant 0 : index
    %c0_70 = arith.constant 0 : index
    %61 = vector.load %arg8[%c7_68, %c0_69, %c0_70] : memref<10x18x4xbf16, #tpu.memory_space<vmem>>, vector<1x18x4xbf16>
    %62 = vector.shape_cast %61 : vector<1x18x4xbf16> to vector<18x4xbf16>
    %63 = vector.shape_cast %60 : vector<18x4xbf16> to vector<1x18x4xbf16>
    tpu.vector_store %arg8[%c7_68, %c0_69, %c0_70], %63 {strides = array<i32>} : memref<10x18x4xbf16, #tpu.memory_space<vmem>>, vector<1x18x4xbf16>,
    %c0_71 = arith.constant 0 : index
    %c0_72 = arith.constant 0 : index
    %c0_73 = arith.constant 0 : index
    %c0_74 = arith.constant 0 : index
    %64 = vector.load %arg3[%c0_71, %c0_72, %c0_73, %c0_74] : memref<1x2x18x4xbf16, #tpu.memory_space<vmem>>, vector<1x1x18x4xbf16>
    %65 = vector.shape_cast %64 : vector<1x1x18x4xbf16> to vector<18x4xbf16>
    %c0_75 = arith.constant 0 : index
    %c0_76 = arith.constant 0 : index
    %66 = vector.load %arg4[%c0_75, %c0_76] : memref<4x4xbf16, #tpu.memory_space<vmem>>, vector<4x4xbf16>
    %cst_77 = arith.constant dense<0.000000e+00> : vector<18x4xf32>
    %67 = tpu.matmul %65, %66, %cst_77 {dimension_numbers = #tpu.dot_dimension_numbers<[1], [0], [0], [1], [0, 0, 1, 1], [], []>} : vector<18x4xbf16>, vector<4x4xbf16>, vector<18x4xf32> -> vector<18x4xf32>
    %68 = arith.truncf %67 : vector<18x4xf32> to vector<18x4xbf16>
    %c8 = arith.constant 8 : index
    %c0_78 = arith.constant 0 : index
    %c0_79 = arith.constant 0 : index
    %69 = vector.load %arg8[%c8, %c0_78, %c0_79] : memref<10x18x4xbf16, #tpu.memory_space<vmem>>, vector<1x18x4xbf16>
    %70 = vector.shape_cast %69 : vector<1x18x4xbf16> to vector<18x4xbf16>
    %71 = vector.shape_cast %68 : vector<18x4xbf16> to vector<1x18x4xbf16>
    tpu.vector_store %arg8[%c8, %c0_78, %c0_79], %71 {strides = array<i32>} : memref<10x18x4xbf16, #tpu.memory_space<vmem>>, vector<1x18x4xbf16>,
    %c0_80 = arith.constant 0 : index
    %c1_81 = arith.constant 1 : index
    %c0_82 = arith.constant 0 : index
    %c0_83 = arith.constant 0 : index
    %72 = vector.load %arg3[%c0_80, %c1_81, %c0_82, %c0_83] : memref<1x2x18x4xbf16, #tpu.memory_space<vmem>>, vector<1x1x18x4xbf16>
    %73 = vector.shape_cast %72 : vector<1x1x18x4xbf16> to vector<18x4xbf16>
    %c0_84 = arith.constant 0 : index
    %c0_85 = arith.constant 0 : index
    %74 = vector.load %arg4[%c0_84, %c0_85] : memref<4x4xbf16, #tpu.memory_space<vmem>>, vector<4x4xbf16>
    %cst_86 = arith.constant dense<0.000000e+00> : vector<18x4xf32>
    %75 = tpu.matmul %73, %74, %cst_86 {dimension_numbers = #tpu.dot_dimension_numbers<[1], [0], [0], [1], [0, 0, 1, 1], [], []>} : vector<18x4xbf16>, vector<4x4xbf16>, vector<18x4xf32> -> vector<18x4xf32>
    %76 = arith.truncf %75 : vector<18x4xf32> to vector<18x4xbf16>
    %c9 = arith.constant 9 : index
    %c0_87 = arith.constant 0 : index
    %c0_88 = arith.constant 0 : index
    %77 = vector.load %arg8[%c9, %c0_87, %c0_88] : memref<10x18x4xbf16, #tpu.memory_space<vmem>>, vector<1x18x4xbf16>
    %78 = vector.shape_cast %77 : vector<1x18x4xbf16> to vector<18x4xbf16>
    %79 = vector.shape_cast %76 : vector<18x4xbf16> to vector<1x18x4xbf16>
    tpu.vector_store %arg8[%c9, %c0_87, %c0_88], %79 {strides = array<i32>} : memref<10x18x4xbf16, #tpu.memory_space<vmem>>, vector<1x18x4xbf16>,
    %cst_89 = arith.constant 0.000000e+00 : f32
    %80 = vector.broadcast %cst_89 : f32 to vector<16x8xf32>
    %c0_90 = arith.constant 0 : index
    %c0_91 = arith.constant 0 : index
    %c0_92 = arith.constant 0 : index
    %81 = vector.load %arg8[%c0_90, %c0_91, %c0_92] : memref<10x18x4xbf16, #tpu.memory_space<vmem>>, vector<1x18x4xbf16>
    %82 = vector.shape_cast %81 : vector<1x18x4xbf16> to vector<18x4xbf16>
    %83 = vector.extract_strided_slice %82 {offsets = [0, 0], sizes = [16, 4], strides = [1, 1]} : vector<18x4xbf16> to vector<16x4xbf16>
    %c0_93 = arith.constant 0 : index
    %c0_94 = arith.constant 0 : index
    %c0_95 = arith.constant 0 : index
    %c0_96 = arith.constant 0 : index
    %84 = vector.load %arg5[%c0_93, %c0_94, %c0_95, %c0_96] : memref<3x3x4x8xbf16, #tpu.memory_space<vmem>>, vector<1x1x4x8xbf16>
    %85 = vector.shape_cast %84 : vector<1x1x4x8xbf16> to vector<4x8xbf16>
    %cst_97 = arith.constant dense<0.000000e+00> : vector<16x8xf32>
    %86 = tpu.matmul %83, %85, %cst_97 {dimension_numbers = #tpu.dot_dimension_numbers<[1], [0], [0], [1], [0, 0, 1, 1], [], []>} : vector<16x4xbf16>, vector<4x8xbf16>, vector<16x8xf32> -> vector<16x8xf32>
    %87 = arith.addf %80, %86 : vector<16x8xf32>
    %88 = vector.extract_strided_slice %82 {offsets = [1, 0], sizes = [16, 4], strides = [1, 1]} : vector<18x4xbf16> to vector<16x4xbf16>
    %c0_98 = arith.constant 0 : index
    %c1_99 = arith.constant 1 : index
    %c0_100 = arith.constant 0 : index
    %c0_101 = arith.constant 0 : index
    %89 = vector.load %arg5[%c0_98, %c1_99, %c0_100, %c0_101] : memref<3x3x4x8xbf16, #tpu.memory_space<vmem>>, vector<1x1x4x8xbf16>
    %90 = vector.shape_cast %89 : vector<1x1x4x8xbf16> to vector<4x8xbf16>
    %cst_102 = arith.constant dense<0.000000e+00> : vector<16x8xf32>
    %91 = tpu.matmul %88, %90, %cst_102 {dimension_numbers = #tpu.dot_dimension_numbers<[1], [0], [0], [1], [0, 0, 1, 1], [], []>} : vector<16x4xbf16>, vector<4x8xbf16>, vector<16x8xf32> -> vector<16x8xf32>
    %92 = arith.addf %87, %91 : vector<16x8xf32>
    %93 = vector.extract_strided_slice %82 {offsets = [2, 0], sizes = [16, 4], strides = [1, 1]} : vector<18x4xbf16> to vector<16x4xbf16>
    %c0_103 = arith.constant 0 : index
    %c2_104 = arith.constant 2 : index
    %c0_105 = arith.constant 0 : index
    %c0_106 = arith.constant 0 : index
    %94 = vector.load %arg5[%c0_103, %c2_104, %c0_105, %c0_106] : memref<3x3x4x8xbf16, #tpu.memory_space<vmem>>, vector<1x1x4x8xbf16>
    %95 = vector.shape_cast %94 : vector<1x1x4x8xbf16> to vector<4x8xbf16>
    %cst_107 = arith.constant dense<0.000000e+00> : vector<16x8xf32>
    %96 = tpu.matmul %93, %95, %cst_107 {dimension_numbers = #tpu.dot_dimension_numbers<[1], [0], [0], [1], [0, 0, 1, 1], [], []>} : vector<16x4xbf16>, vector<4x8xbf16>, vector<16x8xf32> -> vector<16x8xf32>
    %97 = arith.addf %92, %96 : vector<16x8xf32>
    %c1_108 = arith.constant 1 : index
    %c0_109 = arith.constant 0 : index
    %c0_110 = arith.constant 0 : index
    %98 = vector.load %arg8[%c1_108, %c0_109, %c0_110] : memref<10x18x4xbf16, #tpu.memory_space<vmem>>, vector<1x18x4xbf16>
    %99 = vector.shape_cast %98 : vector<1x18x4xbf16> to vector<18x4xbf16>
    %100 = vector.extract_strided_slice %99 {offsets = [0, 0], sizes = [16, 4], strides = [1, 1]} : vector<18x4xbf16> to vector<16x4xbf16>
    %c1_111 = arith.constant 1 : index
    %c0_112 = arith.constant 0 : index
    %c0_113 = arith.constant 0 : index
    %c0_114 = arith.constant 0 : index
    %101 = vector.load %arg5[%c1_111, %c0_112, %c0_113, %c0_114] : memref<3x3x4x8xbf16, #tpu.memory_space<vmem>>, vector<1x1x4x8xbf16>
    %102 = vector.shape_cast %101 : vector<1x1x4x8xbf16> to vector<4x8xbf16>
    %cst_115 = arith.constant dense<0.000000e+00> : vector<16x8xf32>
    %103 = tpu.matmul %100, %102, %cst_115 {dimension_numbers = #tpu.dot_dimension_numbers<[1], [0], [0], [1], [0, 0, 1, 1], [], []>} : vector<16x4xbf16>, vector<4x8xbf16>, vector<16x8xf32> -> vector<16x8xf32>
    %104 = arith.addf %97, %103 : vector<16x8xf32>
    %105 = vector.extract_strided_slice %99 {offsets = [1, 0], sizes = [16, 4], strides = [1, 1]} : vector<18x4xbf16> to vector<16x4xbf16>
    %c1_116 = arith.constant 1 : index
    %c1_117 = arith.constant 1 : index
    %c0_118 = arith.constant 0 : index
    %c0_119 = arith.constant 0 : index
    %106 = vector.load %arg5[%c1_116, %c1_117, %c0_118, %c0_119] : memref<3x3x4x8xbf16, #tpu.memory_space<vmem>>, vector<1x1x4x8xbf16>
    %107 = vector.shape_cast %106 : vector<1x1x4x8xbf16> to vector<4x8xbf16>
    %cst_120 = arith.constant dense<0.000000e+00> : vector<16x8xf32>
    %108 = tpu.matmul %105, %107, %cst_120 {dimension_numbers = #tpu.dot_dimension_numbers<[1], [0], [0], [1], [0, 0, 1, 1], [], []>} : vector<16x4xbf16>, vector<4x8xbf16>, vector<16x8xf32> -> vector<16x8xf32>
    %109 = arith.addf %104, %108 : vector<16x8xf32>
    %110 = vector.extract_strided_slice %99 {offsets = [2, 0], sizes = [16, 4], strides = [1, 1]} : vector<18x4xbf16> to vector<16x4xbf16>
    %c1_121 = arith.constant 1 : index
    %c2_122 = arith.constant 2 : index
    %c0_123 = arith.constant 0 : index
    %c0_124 = arith.constant 0 : index
    %111 = vector.load %arg5[%c1_121, %c2_122, %c0_123, %c0_124] : memref<3x3x4x8xbf16, #tpu.memory_space<vmem>>, vector<1x1x4x8xbf16>
    %112 = vector.shape_cast %111 : vector<1x1x4x8xbf16> to vector<4x8xbf16>
    %cst_125 = arith.constant dense<0.000000e+00> : vector<16x8xf32>
    %113 = tpu.matmul %110, %112, %cst_125 {dimension_numbers = #tpu.dot_dimension_numbers<[1], [0], [0], [1], [0, 0, 1, 1], [], []>} : vector<16x4xbf16>, vector<4x8xbf16>, vector<16x8xf32> -> vector<16x8xf32>
    %114 = arith.addf %109, %113 : vector<16x8xf32>
    %c2_126 = arith.constant 2 : index
    %c0_127 = arith.constant 0 : index
    %c0_128 = arith.constant 0 : index
    %115 = vector.load %arg8[%c2_126, %c0_127, %c0_128] : memref<10x18x4xbf16, #tpu.memory_space<vmem>>, vector<1x18x4xbf16>
    %116 = vector.shape_cast %115 : vector<1x18x4xbf16> to vector<18x4xbf16>
    %117 = vector.extract_strided_slice %116 {offsets = [0, 0], sizes = [16, 4], strides = [1, 1]} : vector<18x4xbf16> to vector<16x4xbf16>
    %c2_129 = arith.constant 2 : index
    %c0_130 = arith.constant 0 : index
    %c0_131 = arith.constant 0 : index
    %c0_132 = arith.constant 0 : index
    %118 = vector.load %arg5[%c2_129, %c0_130, %c0_131, %c0_132] : memref<3x3x4x8xbf16, #tpu.memory_space<vmem>>, vector<1x1x4x8xbf16>
    %119 = vector.shape_cast %118 : vector<1x1x4x8xbf16> to vector<4x8xbf16>
    %cst_133 = arith.constant dense<0.000000e+00> : vector<16x8xf32>
    %120 = tpu.matmul %117, %119, %cst_133 {dimension_numbers = #tpu.dot_dimension_numbers<[1], [0], [0], [1], [0, 0, 1, 1], [], []>} : vector<16x4xbf16>, vector<4x8xbf16>, vector<16x8xf32> -> vector<16x8xf32>
    %121 = arith.addf %114, %120 : vector<16x8xf32>
    %122 = vector.extract_strided_slice %116 {offsets = [1, 0], sizes = [16, 4], strides = [1, 1]} : vector<18x4xbf16> to vector<16x4xbf16>
    %c2_134 = arith.constant 2 : index
    %c1_135 = arith.constant 1 : index
    %c0_136 = arith.constant 0 : index
    %c0_137 = arith.constant 0 : index
    %123 = vector.load %arg5[%c2_134, %c1_135, %c0_136, %c0_137] : memref<3x3x4x8xbf16, #tpu.memory_space<vmem>>, vector<1x1x4x8xbf16>
    %124 = vector.shape_cast %123 : vector<1x1x4x8xbf16> to vector<4x8xbf16>
    %cst_138 = arith.constant dense<0.000000e+00> : vector<16x8xf32>
    %125 = tpu.matmul %122, %124, %cst_138 {dimension_numbers = #tpu.dot_dimension_numbers<[1], [0], [0], [1], [0, 0, 1, 1], [], []>} : vector<16x4xbf16>, vector<4x8xbf16>, vector<16x8xf32> -> vector<16x8xf32>
    %126 = arith.addf %121, %125 : vector<16x8xf32>
    %127 = vector.extract_strided_slice %116 {offsets = [2, 0], sizes = [16, 4], strides = [1, 1]} : vector<18x4xbf16> to vector<16x4xbf16>
    %c2_139 = arith.constant 2 : index
    %c2_140 = arith.constant 2 : index
    %c0_141 = arith.constant 0 : index
    %c0_142 = arith.constant 0 : index
    %128 = vector.load %arg5[%c2_139, %c2_140, %c0_141, %c0_142] : memref<3x3x4x8xbf16, #tpu.memory_space<vmem>>, vector<1x1x4x8xbf16>
    %129 = vector.shape_cast %128 : vector<1x1x4x8xbf16> to vector<4x8xbf16>
    %cst_143 = arith.constant dense<0.000000e+00> : vector<16x8xf32>
    %130 = tpu.matmul %127, %129, %cst_143 {dimension_numbers = #tpu.dot_dimension_numbers<[1], [0], [0], [1], [0, 0, 1, 1], [], []>} : vector<16x4xbf16>, vector<4x8xbf16>, vector<16x8xf32> -> vector<16x8xf32>
    %131 = arith.addf %126, %130 : vector<16x8xf32>
    %c0_144 = arith.constant 0 : index
    %c0_145 = arith.constant 0 : index
    %132 = vector.load %arg6[%c0_144, %c0_145] : memref<8x8xf32, #tpu.memory_space<vmem>>, vector<8x8xf32>
    %cst_146 = arith.constant dense<0.000000e+00> : vector<16x8xf32>
    %133 = tpu.matmul %131, %132, %cst_146 {dimension_numbers = #tpu.dot_dimension_numbers<[1], [0], [0], [1], [0, 0, 1, 1], [], []>} : vector<16x8xf32>, vector<8x8xf32>, vector<16x8xf32> -> vector<16x8xf32>
    %c0_147 = arith.constant 0 : index
    %c0_148 = arith.constant 0 : index
    %c0_149 = arith.constant 0 : index
    %c0_150 = arith.constant 0 : index
    %134 = vector.load %arg7[%c0_147, %c0_148, %c0_149, %c0_150] : memref<1x8x16x8xf32, #tpu.memory_space<vmem>>, vector<1x1x16x8xf32>
    %135 = vector.shape_cast %134 : vector<1x1x16x8xf32> to vector<16x8xf32>
    %136 = vector.shape_cast %133 : vector<16x8xf32> to vector<1x1x16x8xf32>
    tpu.vector_store %arg7[%c0_147, %c0_148, %c0_149, %c0_150], %136 {strides = array<i32>} : memref<1x8x16x8xf32, #tpu.memory_space<vmem>>, vector<1x1x16x8xf32>,
    %cst_151 = arith.constant 0.000000e+00 : f32
    %137 = vector.broadcast %cst_151 : f32 to vector<16x8xf32>
    %c1_152 = arith.constant 1 : index
    %c0_153 = arith.constant 0 : index
    %c0_154 = arith.constant 0 : index
    %138 = vector.load %arg8[%c1_152, %c0_153, %c0_154] : memref<10x18x4xbf16, #tpu.memory_space<vmem>>, vector<1x18x4xbf16>
    %139 = vector.shape_cast %138 : vector<1x18x4xbf16> to vector<18x4xbf16>
    %140 = vector.extract_strided_slice %139 {offsets = [0, 0], sizes = [16, 4], strides = [1, 1]} : vector<18x4xbf16> to vector<16x4xbf16>
    %c0_155 = arith.constant 0 : index
    %c0_156 = arith.constant 0 : index
    %c0_157 = arith.constant 0 : index
    %c0_158 = arith.constant 0 : index
    %141 = vector.load %arg5[%c0_155, %c0_156, %c0_157, %c0_158] : memref<3x3x4x8xbf16, #tpu.memory_space<vmem>>, vector<1x1x4x8xbf16>
    %142 = vector.shape_cast %141 : vector<1x1x4x8xbf16> to vector<4x8xbf16>
    %cst_159 = arith.constant dense<0.000000e+00> : vector<16x8xf32>
    %143 = tpu.matmul %140, %142, %cst_159 {dimension_numbers = #tpu.dot_dimension_numbers<[1], [0], [0], [1], [0, 0, 1, 1], [], []>} : vector<16x4xbf16>, vector<4x8xbf16>, vector<16x8xf32> -> vector<16x8xf32>
    %144 = arith.addf %137, %143 : vector<16x8xf32>
    %145 = vector.extract_strided_slice %139 {offsets = [1, 0], sizes = [16, 4], strides = [1, 1]} : vector<18x4xbf16> to vector<16x4xbf16>
    %c0_160 = arith.constant 0 : index
    %c1_161 = arith.constant 1 : index
    %c0_162 = arith.constant 0 : index
    %c0_163 = arith.constant 0 : index
    %146 = vector.load %arg5[%c0_160, %c1_161, %c0_162, %c0_163] : memref<3x3x4x8xbf16, #tpu.memory_space<vmem>>, vector<1x1x4x8xbf16>
    %147 = vector.shape_cast %146 : vector<1x1x4x8xbf16> to vector<4x8xbf16>
    %cst_164 = arith.constant dense<0.000000e+00> : vector<16x8xf32>
    %148 = tpu.matmul %145, %147, %cst_164 {dimension_numbers = #tpu.dot_dimension_numbers<[1], [0], [0], [1], [0, 0, 1, 1], [], []>} : vector<16x4xbf16>, vector<4x8xbf16>, vector<16x8xf32> -> vector<16x8xf32>
    %149 = arith.addf %144, %148 : vector<16x8xf32>
    %150 = vector.extract_strided_slice %139 {offsets = [2, 0], sizes = [16, 4], strides = [1, 1]} : vector<18x4xbf16> to vector<16x4xbf16>
    %c0_165 = arith.constant 0 : index
    %c2_166 = arith.constant 2 : index
    %c0_167 = arith.constant 0 : index
    %c0_168 = arith.constant 0 : index
    %151 = vector.load %arg5[%c0_165, %c2_166, %c0_167, %c0_168] : memref<3x3x4x8xbf16, #tpu.memory_space<vmem>>, vector<1x1x4x8xbf16>
    %152 = vector.shape_cast %151 : vector<1x1x4x8xbf16> to vector<4x8xbf16>
    %cst_169 = arith.constant dense<0.000000e+00> : vector<16x8xf32>
    %153 = tpu.matmul %150, %152, %cst_169 {dimension_numbers = #tpu.dot_dimension_numbers<[1], [0], [0], [1], [0, 0, 1, 1], [], []>} : vector<16x4xbf16>, vector<4x8xbf16>, vector<16x8xf32> -> vector<16x8xf32>
    %154 = arith.addf %149, %153 : vector<16x8xf32>
    %c2_170 = arith.constant 2 : index
    %c0_171 = arith.constant 0 : index
    %c0_172 = arith.constant 0 : index
    %155 = vector.load %arg8[%c2_170, %c0_171, %c0_172] : memref<10x18x4xbf16, #tpu.memory_space<vmem>>, vector<1x18x4xbf16>
    %156 = vector.shape_cast %155 : vector<1x18x4xbf16> to vector<18x4xbf16>
    %157 = vector.extract_strided_slice %156 {offsets = [0, 0], sizes = [16, 4], strides = [1, 1]} : vector<18x4xbf16> to vector<16x4xbf16>
    %c1_173 = arith.constant 1 : index
    %c0_174 = arith.constant 0 : index
    %c0_175 = arith.constant 0 : index
    %c0_176 = arith.constant 0 : index
    %158 = vector.load %arg5[%c1_173, %c0_174, %c0_175, %c0_176] : memref<3x3x4x8xbf16, #tpu.memory_space<vmem>>, vector<1x1x4x8xbf16>
    %159 = vector.shape_cast %158 : vector<1x1x4x8xbf16> to vector<4x8xbf16>
    %cst_177 = arith.constant dense<0.000000e+00> : vector<16x8xf32>
    %160 = tpu.matmul %157, %159, %cst_177 {dimension_numbers = #tpu.dot_dimension_numbers<[1], [0], [0], [1], [0, 0, 1, 1], [], []>} : vector<16x4xbf16>, vector<4x8xbf16>, vector<16x8xf32> -> vector<16x8xf32>
    %161 = arith.addf %154, %160 : vector<16x8xf32>
    %162 = vector.extract_strided_slice %156 {offsets = [1, 0], sizes = [16, 4], strides = [1, 1]} : vector<18x4xbf16> to vector<16x4xbf16>
    %c1_178 = arith.constant 1 : index
    %c1_179 = arith.constant 1 : index
    %c0_180 = arith.constant 0 : index
    %c0_181 = arith.constant 0 : index
    %163 = vector.load %arg5[%c1_178, %c1_179, %c0_180, %c0_181] : memref<3x3x4x8xbf16, #tpu.memory_space<vmem>>, vector<1x1x4x8xbf16>
    %164 = vector.shape_cast %163 : vector<1x1x4x8xbf16> to vector<4x8xbf16>
    %cst_182 = arith.constant dense<0.000000e+00> : vector<16x8xf32>
    %165 = tpu.matmul %162, %164, %cst_182 {dimension_numbers = #tpu.dot_dimension_numbers<[1], [0], [0], [1], [0, 0, 1, 1], [], []>} : vector<16x4xbf16>, vector<4x8xbf16>, vector<16x8xf32> -> vector<16x8xf32>
    %166 = arith.addf %161, %165 : vector<16x8xf32>
    %167 = vector.extract_strided_slice %156 {offsets = [2, 0], sizes = [16, 4], strides = [1, 1]} : vector<18x4xbf16> to vector<16x4xbf16>
    %c1_183 = arith.constant 1 : index
    %c2_184 = arith.constant 2 : index
    %c0_185 = arith.constant 0 : index
    %c0_186 = arith.constant 0 : index
    %168 = vector.load %arg5[%c1_183, %c2_184, %c0_185, %c0_186] : memref<3x3x4x8xbf16, #tpu.memory_space<vmem>>, vector<1x1x4x8xbf16>
    %169 = vector.shape_cast %168 : vector<1x1x4x8xbf16> to vector<4x8xbf16>
    %cst_187 = arith.constant dense<0.000000e+00> : vector<16x8xf32>
    %170 = tpu.matmul %167, %169, %cst_187 {dimension_numbers = #tpu.dot_dimension_numbers<[1], [0], [0], [1], [0, 0, 1, 1], [], []>} : vector<16x4xbf16>, vector<4x8xbf16>, vector<16x8xf32> -> vector<16x8xf32>
    %171 = arith.addf %166, %170 : vector<16x8xf32>
    %c3_188 = arith.constant 3 : index
    %c0_189 = arith.constant 0 : index
    %c0_190 = arith.constant 0 : index
    %172 = vector.load %arg8[%c3_188, %c0_189, %c0_190] : memref<10x18x4xbf16, #tpu.memory_space<vmem>>, vector<1x18x4xbf16>
    %173 = vector.shape_cast %172 : vector<1x18x4xbf16> to vector<18x4xbf16>
    %174 = vector.extract_strided_slice %173 {offsets = [0, 0], sizes = [16, 4], strides = [1, 1]} : vector<18x4xbf16> to vector<16x4xbf16>
    %c2_191 = arith.constant 2 : index
    %c0_192 = arith.constant 0 : index
    %c0_193 = arith.constant 0 : index
    %c0_194 = arith.constant 0 : index
    %175 = vector.load %arg5[%c2_191, %c0_192, %c0_193, %c0_194] : memref<3x3x4x8xbf16, #tpu.memory_space<vmem>>, vector<1x1x4x8xbf16>
    %176 = vector.shape_cast %175 : vector<1x1x4x8xbf16> to vector<4x8xbf16>
    %cst_195 = arith.constant dense<0.000000e+00> : vector<16x8xf32>
    %177 = tpu.matmul %174, %176, %cst_195 {dimension_numbers = #tpu.dot_dimension_numbers<[1], [0], [0], [1], [0, 0, 1, 1], [], []>} : vector<16x4xbf16>, vector<4x8xbf16>, vector<16x8xf32> -> vector<16x8xf32>
    %178 = arith.addf %171, %177 : vector<16x8xf32>
    %179 = vector.extract_strided_slice %173 {offsets = [1, 0], sizes = [16, 4], strides = [1, 1]} : vector<18x4xbf16> to vector<16x4xbf16>
    %c2_196 = arith.constant 2 : index
    %c1_197 = arith.constant 1 : index
    %c0_198 = arith.constant 0 : index
    %c0_199 = arith.constant 0 : index
    %180 = vector.load %arg5[%c2_196, %c1_197, %c0_198, %c0_199] : memref<3x3x4x8xbf16, #tpu.memory_space<vmem>>, vector<1x1x4x8xbf16>
    %181 = vector.shape_cast %180 : vector<1x1x4x8xbf16> to vector<4x8xbf16>
    %cst_200 = arith.constant dense<0.000000e+00> : vector<16x8xf32>
    %182 = tpu.matmul %179, %181, %cst_200 {dimension_numbers = #tpu.dot_dimension_numbers<[1], [0], [0], [1], [0, 0, 1, 1], [], []>} : vector<16x4xbf16>, vector<4x8xbf16>, vector<16x8xf32> -> vector<16x8xf32>
    %183 = arith.addf %178, %182 : vector<16x8xf32>
    %184 = vector.extract_strided_slice %173 {offsets = [2, 0], sizes = [16, 4], strides = [1, 1]} : vector<18x4xbf16> to vector<16x4xbf16>
    %c2_201 = arith.constant 2 : index
    %c2_202 = arith.constant 2 : index
    %c0_203 = arith.constant 0 : index
    %c0_204 = arith.constant 0 : index
    %185 = vector.load %arg5[%c2_201, %c2_202, %c0_203, %c0_204] : memref<3x3x4x8xbf16, #tpu.memory_space<vmem>>, vector<1x1x4x8xbf16>
    %186 = vector.shape_cast %185 : vector<1x1x4x8xbf16> to vector<4x8xbf16>
    %cst_205 = arith.constant dense<0.000000e+00> : vector<16x8xf32>
    %187 = tpu.matmul %184, %186, %cst_205 {dimension_numbers = #tpu.dot_dimension_numbers<[1], [0], [0], [1], [0, 0, 1, 1], [], []>} : vector<16x4xbf16>, vector<4x8xbf16>, vector<16x8xf32> -> vector<16x8xf32>
    %188 = arith.addf %183, %187 : vector<16x8xf32>
    %c0_206 = arith.constant 0 : index
    %c0_207 = arith.constant 0 : index
    %189 = vector.load %arg6[%c0_206, %c0_207] : memref<8x8xf32, #tpu.memory_space<vmem>>, vector<8x8xf32>
    %cst_208 = arith.constant dense<0.000000e+00> : vector<16x8xf32>
    %190 = tpu.matmul %188, %189, %cst_208 {dimension_numbers = #tpu.dot_dimension_numbers<[1], [0], [0], [1], [0, 0, 1, 1], [], []>} : vector<16x8xf32>, vector<8x8xf32>, vector<16x8xf32> -> vector<16x8xf32>
    %c0_209 = arith.constant 0 : index
    %c1_210 = arith.constant 1 : index
    %c0_211 = arith.constant 0 : index
    %c0_212 = arith.constant 0 : index
    %191 = vector.load %arg7[%c0_209, %c1_210, %c0_211, %c0_212] : memref<1x8x16x8xf32, #tpu.memory_space<vmem>>, vector<1x1x16x8xf32>
    %192 = vector.shape_cast %191 : vector<1x1x16x8xf32> to vector<16x8xf32>
    %193 = vector.shape_cast %190 : vector<16x8xf32> to vector<1x1x16x8xf32>
    tpu.vector_store %arg7[%c0_209, %c1_210, %c0_211, %c0_212], %193 {strides = array<i32>} : memref<1x8x16x8xf32, #tpu.memory_space<vmem>>, vector<1x1x16x8xf32>,
    %cst_213 = arith.constant 0.000000e+00 : f32
    %194 = vector.broadcast %cst_213 : f32 to vector<16x8xf32>
    %c2_214 = arith.constant 2 : index
    %c0_215 = arith.constant 0 : index
    %c0_216 = arith.constant 0 : index
    %195 = vector.load %arg8[%c2_214, %c0_215, %c0_216] : memref<10x18x4xbf16, #tpu.memory_space<vmem>>, vector<1x18x4xbf16>
    %196 = vector.shape_cast %195 : vector<1x18x4xbf16> to vector<18x4xbf16>
    %197 = vector.extract_strided_slice %196 {offsets = [0, 0], sizes = [16, 4], strides = [1, 1]} : vector<18x4xbf16> to vector<16x4xbf16>
    %c0_217 = arith.constant 0 : index
    %c0_218 = arith.constant 0 : index
    %c0_219 = arith.constant 0 : index
    %c0_220 = arith.constant 0 : index
    %198 = vector.load %arg5[%c0_217, %c0_218, %c0_219, %c0_220] : memref<3x3x4x8xbf16, #tpu.memory_space<vmem>>, vector<1x1x4x8xbf16>
    %199 = vector.shape_cast %198 : vector<1x1x4x8xbf16> to vector<4x8xbf16>
    %cst_221 = arith.constant dense<0.000000e+00> : vector<16x8xf32>
    %200 = tpu.matmul %197, %199, %cst_221 {dimension_numbers = #tpu.dot_dimension_numbers<[1], [0], [0], [1], [0, 0, 1, 1], [], []>} : vector<16x4xbf16>, vector<4x8xbf16>, vector<16x8xf32> -> vector<16x8xf32>
    %201 = arith.addf %194, %200 : vector<16x8xf32>
    %202 = vector.extract_strided_slice %196 {offsets = [1, 0], sizes = [16, 4], strides = [1, 1]} : vector<18x4xbf16> to vector<16x4xbf16>
    %c0_222 = arith.constant 0 : index
    %c1_223 = arith.constant 1 : index
    %c0_224 = arith.constant 0 : index
    %c0_225 = arith.constant 0 : index
    %203 = vector.load %arg5[%c0_222, %c1_223, %c0_224, %c0_225] : memref<3x3x4x8xbf16, #tpu.memory_space<vmem>>, vector<1x1x4x8xbf16>
    %204 = vector.shape_cast %203 : vector<1x1x4x8xbf16> to vector<4x8xbf16>
    %cst_226 = arith.constant dense<0.000000e+00> : vector<16x8xf32>
    %205 = tpu.matmul %202, %204, %cst_226 {dimension_numbers = #tpu.dot_dimension_numbers<[1], [0], [0], [1], [0, 0, 1, 1], [], []>} : vector<16x4xbf16>, vector<4x8xbf16>, vector<16x8xf32> -> vector<16x8xf32>
    %206 = arith.addf %201, %205 : vector<16x8xf32>
    %207 = vector.extract_strided_slice %196 {offsets = [2, 0], sizes = [16, 4], strides = [1, 1]} : vector<18x4xbf16> to vector<16x4xbf16>
    %c0_227 = arith.constant 0 : index
    %c2_228 = arith.constant 2 : index
    %c0_229 = arith.constant 0 : index
    %c0_230 = arith.constant 0 : index
    %208 = vector.load %arg5[%c0_227, %c2_228, %c0_229, %c0_230] : memref<3x3x4x8xbf16, #tpu.memory_space<vmem>>, vector<1x1x4x8xbf16>
    %209 = vector.shape_cast %208 : vector<1x1x4x8xbf16> to vector<4x8xbf16>
    %cst_231 = arith.constant dense<0.000000e+00> : vector<16x8xf32>
    %210 = tpu.matmul %207, %209, %cst_231 {dimension_numbers = #tpu.dot_dimension_numbers<[1], [0], [0], [1], [0, 0, 1, 1], [], []>} : vector<16x4xbf16>, vector<4x8xbf16>, vector<16x8xf32> -> vector<16x8xf32>
    %211 = arith.addf %206, %210 : vector<16x8xf32>
    %c3_232 = arith.constant 3 : index
    %c0_233 = arith.constant 0 : index
    %c0_234 = arith.constant 0 : index
    %212 = vector.load %arg8[%c3_232, %c0_233, %c0_234] : memref<10x18x4xbf16, #tpu.memory_space<vmem>>, vector<1x18x4xbf16>
    %213 = vector.shape_cast %212 : vector<1x18x4xbf16> to vector<18x4xbf16>
    %214 = vector.extract_strided_slice %213 {offsets = [0, 0], sizes = [16, 4], strides = [1, 1]} : vector<18x4xbf16> to vector<16x4xbf16>
    %c1_235 = arith.constant 1 : index
    %c0_236 = arith.constant 0 : index
    %c0_237 = arith.constant 0 : index
    %c0_238 = arith.constant 0 : index
    %215 = vector.load %arg5[%c1_235, %c0_236, %c0_237, %c0_238] : memref<3x3x4x8xbf16, #tpu.memory_space<vmem>>, vector<1x1x4x8xbf16>
    %216 = vector.shape_cast %215 : vector<1x1x4x8xbf16> to vector<4x8xbf16>
    %cst_239 = arith.constant dense<0.000000e+00> : vector<16x8xf32>
    %217 = tpu.matmul %214, %216, %cst_239 {dimension_numbers = #tpu.dot_dimension_numbers<[1], [0], [0], [1], [0, 0, 1, 1], [], []>} : vector<16x4xbf16>, vector<4x8xbf16>, vector<16x8xf32> -> vector<16x8xf32>
    %218 = arith.addf %211, %217 : vector<16x8xf32>
    %219 = vector.extract_strided_slice %213 {offsets = [1, 0], sizes = [16, 4], strides = [1, 1]} : vector<18x4xbf16> to vector<16x4xbf16>
    %c1_240 = arith.constant 1 : index
    %c1_241 = arith.constant 1 : index
    %c0_242 = arith.constant 0 : index
    %c0_243 = arith.constant 0 : index
    %220 = vector.load %arg5[%c1_240, %c1_241, %c0_242, %c0_243] : memref<3x3x4x8xbf16, #tpu.memory_space<vmem>>, vector<1x1x4x8xbf16>
    %221 = vector.shape_cast %220 : vector<1x1x4x8xbf16> to vector<4x8xbf16>
    %cst_244 = arith.constant dense<0.000000e+00> : vector<16x8xf32>
    %222 = tpu.matmul %219, %221, %cst_244 {dimension_numbers = #tpu.dot_dimension_numbers<[1], [0], [0], [1], [0, 0, 1, 1], [], []>} : vector<16x4xbf16>, vector<4x8xbf16>, vector<16x8xf32> -> vector<16x8xf32>
    %223 = arith.addf %218, %222 : vector<16x8xf32>
    %224 = vector.extract_strided_slice %213 {offsets = [2, 0], sizes = [16, 4], strides = [1, 1]} : vector<18x4xbf16> to vector<16x4xbf16>
    %c1_245 = arith.constant 1 : index
    %c2_246 = arith.constant 2 : index
    %c0_247 = arith.constant 0 : index
    %c0_248 = arith.constant 0 : index
    %225 = vector.load %arg5[%c1_245, %c2_246, %c0_247, %c0_248] : memref<3x3x4x8xbf16, #tpu.memory_space<vmem>>, vector<1x1x4x8xbf16>
    %226 = vector.shape_cast %225 : vector<1x1x4x8xbf16> to vector<4x8xbf16>
    %cst_249 = arith.constant dense<0.000000e+00> : vector<16x8xf32>
    %227 = tpu.matmul %224, %226, %cst_249 {dimension_numbers = #tpu.dot_dimension_numbers<[1], [0], [0], [1], [0, 0, 1, 1], [], []>} : vector<16x4xbf16>, vector<4x8xbf16>, vector<16x8xf32> -> vector<16x8xf32>
    %228 = arith.addf %223, %227 : vector<16x8xf32>
    %c4_250 = arith.constant 4 : index
    %c0_251 = arith.constant 0 : index
    %c0_252 = arith.constant 0 : index
    %229 = vector.load %arg8[%c4_250, %c0_251, %c0_252] : memref<10x18x4xbf16, #tpu.memory_space<vmem>>, vector<1x18x4xbf16>
    %230 = vector.shape_cast %229 : vector<1x18x4xbf16> to vector<18x4xbf16>
    %231 = vector.extract_strided_slice %230 {offsets = [0, 0], sizes = [16, 4], strides = [1, 1]} : vector<18x4xbf16> to vector<16x4xbf16>
    %c2_253 = arith.constant 2 : index
    %c0_254 = arith.constant 0 : index
    %c0_255 = arith.constant 0 : index
    %c0_256 = arith.constant 0 : index
    %232 = vector.load %arg5[%c2_253, %c0_254, %c0_255, %c0_256] : memref<3x3x4x8xbf16, #tpu.memory_space<vmem>>, vector<1x1x4x8xbf16>
    %233 = vector.shape_cast %232 : vector<1x1x4x8xbf16> to vector<4x8xbf16>
    %cst_257 = arith.constant dense<0.000000e+00> : vector<16x8xf32>
    %234 = tpu.matmul %231, %233, %cst_257 {dimension_numbers = #tpu.dot_dimension_numbers<[1], [0], [0], [1], [0, 0, 1, 1], [], []>} : vector<16x4xbf16>, vector<4x8xbf16>, vector<16x8xf32> -> vector<16x8xf32>
    %235 = arith.addf %228, %234 : vector<16x8xf32>
    %236 = vector.extract_strided_slice %230 {offsets = [1, 0], sizes = [16, 4], strides = [1, 1]} : vector<18x4xbf16> to vector<16x4xbf16>
    %c2_258 = arith.constant 2 : index
    %c1_259 = arith.constant 1 : index
    %c0_260 = arith.constant 0 : index
    %c0_261 = arith.constant 0 : index
    %237 = vector.load %arg5[%c2_258, %c1_259, %c0_260, %c0_261] : memref<3x3x4x8xbf16, #tpu.memory_space<vmem>>, vector<1x1x4x8xbf16>
    %238 = vector.shape_cast %237 : vector<1x1x4x8xbf16> to vector<4x8xbf16>
    %cst_262 = arith.constant dense<0.000000e+00> : vector<16x8xf32>
    %239 = tpu.matmul %236, %238, %cst_262 {dimension_numbers = #tpu.dot_dimension_numbers<[1], [0], [0], [1], [0, 0, 1, 1], [], []>} : vector<16x4xbf16>, vector<4x8xbf16>, vector<16x8xf32> -> vector<16x8xf32>
    %240 = arith.addf %235, %239 : vector<16x8xf32>
    %241 = vector.extract_strided_slice %230 {offsets = [2, 0], sizes = [16, 4], strides = [1, 1]} : vector<18x4xbf16> to vector<16x4xbf16>
    %c2_263 = arith.constant 2 : index
    %c2_264 = arith.constant 2 : index
    %c0_265 = arith.constant 0 : index
    %c0_266 = arith.constant 0 : index
    %242 = vector.load %arg5[%c2_263, %c2_264, %c0_265, %c0_266] : memref<3x3x4x8xbf16, #tpu.memory_space<vmem>>, vector<1x1x4x8xbf16>
    %243 = vector.shape_cast %242 : vector<1x1x4x8xbf16> to vector<4x8xbf16>
    %cst_267 = arith.constant dense<0.000000e+00> : vector<16x8xf32>
    %244 = tpu.matmul %241, %243, %cst_267 {dimension_numbers = #tpu.dot_dimension_numbers<[1], [0], [0], [1], [0, 0, 1, 1], [], []>} : vector<16x4xbf16>, vector<4x8xbf16>, vector<16x8xf32> -> vector<16x8xf32>
    %245 = arith.addf %240, %244 : vector<16x8xf32>
    %c0_268 = arith.constant 0 : index
    %c0_269 = arith.constant 0 : index
    %246 = vector.load %arg6[%c0_268, %c0_269] : memref<8x8xf32, #tpu.memory_space<vmem>>, vector<8x8xf32>
    %cst_270 = arith.constant dense<0.000000e+00> : vector<16x8xf32>
    %247 = tpu.matmul %245, %246, %cst_270 {dimension_numbers = #tpu.dot_dimension_numbers<[1], [0], [0], [1], [0, 0, 1, 1], [], []>} : vector<16x8xf32>, vector<8x8xf32>, vector<16x8xf32> -> vector<16x8xf32>
    %c0_271 = arith.constant 0 : index
    %c2_272 = arith.constant 2 : index
    %c0_273 = arith.constant 0 : index
    %c0_274 = arith.constant 0 : index
    %248 = vector.load %arg7[%c0_271, %c2_272, %c0_273, %c0_274] : memref<1x8x16x8xf32, #tpu.memory_space<vmem>>, vector<1x1x16x8xf32>
    %249 = vector.shape_cast %248 : vector<1x1x16x8xf32> to vector<16x8xf32>
    %250 = vector.shape_cast %247 : vector<16x8xf32> to vector<1x1x16x8xf32>
    tpu.vector_store %arg7[%c0_271, %c2_272, %c0_273, %c0_274], %250 {strides = array<i32>} : memref<1x8x16x8xf32, #tpu.memory_space<vmem>>, vector<1x1x16x8xf32>,
    %cst_275 = arith.constant 0.000000e+00 : f32
    %251 = vector.broadcast %cst_275 : f32 to vector<16x8xf32>
    %c3_276 = arith.constant 3 : index
    %c0_277 = arith.constant 0 : index
    %c0_278 = arith.constant 0 : index
    %252 = vector.load %arg8[%c3_276, %c0_277, %c0_278] : memref<10x18x4xbf16, #tpu.memory_space<vmem>>, vector<1x18x4xbf16>
    %253 = vector.shape_cast %252 : vector<1x18x4xbf16> to vector<18x4xbf16>
    %254 = vector.extract_strided_slice %253 {offsets = [0, 0], sizes = [16, 4], strides = [1, 1]} : vector<18x4xbf16> to vector<16x4xbf16>
    %c0_279 = arith.constant 0 : index
    %c0_280 = arith.constant 0 : index
    %c0_281 = arith.constant 0 : index
    %c0_282 = arith.constant 0 : index
    %255 = vector.load %arg5[%c0_279, %c0_280, %c0_281, %c0_282] : memref<3x3x4x8xbf16, #tpu.memory_space<vmem>>, vector<1x1x4x8xbf16>
    %256 = vector.shape_cast %255 : vector<1x1x4x8xbf16> to vector<4x8xbf16>
    %cst_283 = arith.constant dense<0.000000e+00> : vector<16x8xf32>
    %257 = tpu.matmul %254, %256, %cst_283 {dimension_numbers = #tpu.dot_dimension_numbers<[1], [0], [0], [1], [0, 0, 1, 1], [], []>} : vector<16x4xbf16>, vector<4x8xbf16>, vector<16x8xf32> -> vector<16x8xf32>
    %258 = arith.addf %251, %257 : vector<16x8xf32>
    %259 = vector.extract_strided_slice %253 {offsets = [1, 0], sizes = [16, 4], strides = [1, 1]} : vector<18x4xbf16> to vector<16x4xbf16>
    %c0_284 = arith.constant 0 : index
    %c1_285 = arith.constant 1 : index
    %c0_286 = arith.constant 0 : index
    %c0_287 = arith.constant 0 : index
    %260 = vector.load %arg5[%c0_284, %c1_285, %c0_286, %c0_287] : memref<3x3x4x8xbf16, #tpu.memory_space<vmem>>, vector<1x1x4x8xbf16>
    %261 = vector.shape_cast %260 : vector<1x1x4x8xbf16> to vector<4x8xbf16>
    %cst_288 = arith.constant dense<0.000000e+00> : vector<16x8xf32>
    %262 = tpu.matmul %259, %261, %cst_288 {dimension_numbers = #tpu.dot_dimension_numbers<[1], [0], [0], [1], [0, 0, 1, 1], [], []>} : vector<16x4xbf16>, vector<4x8xbf16>, vector<16x8xf32> -> vector<16x8xf32>
    %263 = arith.addf %258, %262 : vector<16x8xf32>
    %264 = vector.extract_strided_slice %253 {offsets = [2, 0], sizes = [16, 4], strides = [1, 1]} : vector<18x4xbf16> to vector<16x4xbf16>
    %c0_289 = arith.constant 0 : index
    %c2_290 = arith.constant 2 : index
    %c0_291 = arith.constant 0 : index
    %c0_292 = arith.constant 0 : index
    %265 = vector.load %arg5[%c0_289, %c2_290, %c0_291, %c0_292] : memref<3x3x4x8xbf16, #tpu.memory_space<vmem>>, vector<1x1x4x8xbf16>
    %266 = vector.shape_cast %265 : vector<1x1x4x8xbf16> to vector<4x8xbf16>
    %cst_293 = arith.constant dense<0.000000e+00> : vector<16x8xf32>
    %267 = tpu.matmul %264, %266, %cst_293 {dimension_numbers = #tpu.dot_dimension_numbers<[1], [0], [0], [1], [0, 0, 1, 1], [], []>} : vector<16x4xbf16>, vector<4x8xbf16>, vector<16x8xf32> -> vector<16x8xf32>
    %268 = arith.addf %263, %267 : vector<16x8xf32>
    %c4_294 = arith.constant 4 : index
    %c0_295 = arith.constant 0 : index
    %c0_296 = arith.constant 0 : index
    %269 = vector.load %arg8[%c4_294, %c0_295, %c0_296] : memref<10x18x4xbf16, #tpu.memory_space<vmem>>, vector<1x18x4xbf16>
    %270 = vector.shape_cast %269 : vector<1x18x4xbf16> to vector<18x4xbf16>
    %271 = vector.extract_strided_slice %270 {offsets = [0, 0], sizes = [16, 4], strides = [1, 1]} : vector<18x4xbf16> to vector<16x4xbf16>
    %c1_297 = arith.constant 1 : index
    %c0_298 = arith.constant 0 : index
    %c0_299 = arith.constant 0 : index
    %c0_300 = arith.constant 0 : index
    %272 = vector.load %arg5[%c1_297, %c0_298, %c0_299, %c0_300] : memref<3x3x4x8xbf16, #tpu.memory_space<vmem>>, vector<1x1x4x8xbf16>
    %273 = vector.shape_cast %272 : vector<1x1x4x8xbf16> to vector<4x8xbf16>
    %cst_301 = arith.constant dense<0.000000e+00> : vector<16x8xf32>
    %274 = tpu.matmul %271, %273, %cst_301 {dimension_numbers = #tpu.dot_dimension_numbers<[1], [0], [0], [1], [0, 0, 1, 1], [], []>} : vector<16x4xbf16>, vector<4x8xbf16>, vector<16x8xf32> -> vector<16x8xf32>
    %275 = arith.addf %268, %274 : vector<16x8xf32>
    %276 = vector.extract_strided_slice %270 {offsets = [1, 0], sizes = [16, 4], strides = [1, 1]} : vector<18x4xbf16> to vector<16x4xbf16>
    %c1_302 = arith.constant 1 : index
    %c1_303 = arith.constant 1 : index
    %c0_304 = arith.constant 0 : index
    %c0_305 = arith.constant 0 : index
    %277 = vector.load %arg5[%c1_302, %c1_303, %c0_304, %c0_305] : memref<3x3x4x8xbf16, #tpu.memory_space<vmem>>, vector<1x1x4x8xbf16>
    %278 = vector.shape_cast %277 : vector<1x1x4x8xbf16> to vector<4x8xbf16>
    %cst_306 = arith.constant dense<0.000000e+00> : vector<16x8xf32>
    %279 = tpu.matmul %276, %278, %cst_306 {dimension_numbers = #tpu.dot_dimension_numbers<[1], [0], [0], [1], [0, 0, 1, 1], [], []>} : vector<16x4xbf16>, vector<4x8xbf16>, vector<16x8xf32> -> vector<16x8xf32>
    %280 = arith.addf %275, %279 : vector<16x8xf32>
    %281 = vector.extract_strided_slice %270 {offsets = [2, 0], sizes = [16, 4], strides = [1, 1]} : vector<18x4xbf16> to vector<16x4xbf16>
    %c1_307 = arith.constant 1 : index
    %c2_308 = arith.constant 2 : index
    %c0_309 = arith.constant 0 : index
    %c0_310 = arith.constant 0 : index
    %282 = vector.load %arg5[%c1_307, %c2_308, %c0_309, %c0_310] : memref<3x3x4x8xbf16, #tpu.memory_space<vmem>>, vector<1x1x4x8xbf16>
    %283 = vector.shape_cast %282 : vector<1x1x4x8xbf16> to vector<4x8xbf16>
    %cst_311 = arith.constant dense<0.000000e+00> : vector<16x8xf32>
    %284 = tpu.matmul %281, %283, %cst_311 {dimension_numbers = #tpu.dot_dimension_numbers<[1], [0], [0], [1], [0, 0, 1, 1], [], []>} : vector<16x4xbf16>, vector<4x8xbf16>, vector<16x8xf32> -> vector<16x8xf32>
    %285 = arith.addf %280, %284 : vector<16x8xf32>
    %c5_312 = arith.constant 5 : index
    %c0_313 = arith.constant 0 : index
    %c0_314 = arith.constant 0 : index
    %286 = vector.load %arg8[%c5_312, %c0_313, %c0_314] : memref<10x18x4xbf16, #tpu.memory_space<vmem>>, vector<1x18x4xbf16>
    %287 = vector.shape_cast %286 : vector<1x18x4xbf16> to vector<18x4xbf16>
    %288 = vector.extract_strided_slice %287 {offsets = [0, 0], sizes = [16, 4], strides = [1, 1]} : vector<18x4xbf16> to vector<16x4xbf16>
    %c2_315 = arith.constant 2 : index
    %c0_316 = arith.constant 0 : index
    %c0_317 = arith.constant 0 : index
    %c0_318 = arith.constant 0 : index
    %289 = vector.load %arg5[%c2_315, %c0_316, %c0_317, %c0_318] : memref<3x3x4x8xbf16, #tpu.memory_space<vmem>>, vector<1x1x4x8xbf16>
    %290 = vector.shape_cast %289 : vector<1x1x4x8xbf16> to vector<4x8xbf16>
    %cst_319 = arith.constant dense<0.000000e+00> : vector<16x8xf32>
    %291 = tpu.matmul %288, %290, %cst_319 {dimension_numbers = #tpu.dot_dimension_numbers<[1], [0], [0], [1], [0, 0, 1, 1], [], []>} : vector<16x4xbf16>, vector<4x8xbf16>, vector<16x8xf32> -> vector<16x8xf32>
    %292 = arith.addf %285, %291 : vector<16x8xf32>
    %293 = vector.extract_strided_slice %287 {offsets = [1, 0], sizes = [16, 4], strides = [1, 1]} : vector<18x4xbf16> to vector<16x4xbf16>
    %c2_320 = arith.constant 2 : index
    %c1_321 = arith.constant 1 : index
    %c0_322 = arith.constant 0 : index
    %c0_323 = arith.constant 0 : index
    %294 = vector.load %arg5[%c2_320, %c1_321, %c0_322, %c0_323] : memref<3x3x4x8xbf16, #tpu.memory_space<vmem>>, vector<1x1x4x8xbf16>
    %295 = vector.shape_cast %294 : vector<1x1x4x8xbf16> to vector<4x8xbf16>
    %cst_324 = arith.constant dense<0.000000e+00> : vector<16x8xf32>
    %296 = tpu.matmul %293, %295, %cst_324 {dimension_numbers = #tpu.dot_dimension_numbers<[1], [0], [0], [1], [0, 0, 1, 1], [], []>} : vector<16x4xbf16>, vector<4x8xbf16>, vector<16x8xf32> -> vector<16x8xf32>
    %297 = arith.addf %292, %296 : vector<16x8xf32>
    %298 = vector.extract_strided_slice %287 {offsets = [2, 0], sizes = [16, 4], strides = [1, 1]} : vector<18x4xbf16> to vector<16x4xbf16>
    %c2_325 = arith.constant 2 : index
    %c2_326 = arith.constant 2 : index
    %c0_327 = arith.constant 0 : index
    %c0_328 = arith.constant 0 : index
    %299 = vector.load %arg5[%c2_325, %c2_326, %c0_327, %c0_328] : memref<3x3x4x8xbf16, #tpu.memory_space<vmem>>, vector<1x1x4x8xbf16>
    %300 = vector.shape_cast %299 : vector<1x1x4x8xbf16> to vector<4x8xbf16>
    %cst_329 = arith.constant dense<0.000000e+00> : vector<16x8xf32>
    %301 = tpu.matmul %298, %300, %cst_329 {dimension_numbers = #tpu.dot_dimension_numbers<[1], [0], [0], [1], [0, 0, 1, 1], [], []>} : vector<16x4xbf16>, vector<4x8xbf16>, vector<16x8xf32> -> vector<16x8xf32>
    %302 = arith.addf %297, %301 : vector<16x8xf32>
    %c0_330 = arith.constant 0 : index
    %c0_331 = arith.constant 0 : index
    %303 = vector.load %arg6[%c0_330, %c0_331] : memref<8x8xf32, #tpu.memory_space<vmem>>, vector<8x8xf32>
    %cst_332 = arith.constant dense<0.000000e+00> : vector<16x8xf32>
    %304 = tpu.matmul %302, %303, %cst_332 {dimension_numbers = #tpu.dot_dimension_numbers<[1], [0], [0], [1], [0, 0, 1, 1], [], []>} : vector<16x8xf32>, vector<8x8xf32>, vector<16x8xf32> -> vector<16x8xf32>
    %c0_333 = arith.constant 0 : index
    %c3_334 = arith.constant 3 : index
    %c0_335 = arith.constant 0 : index
    %c0_336 = arith.constant 0 : index
    %305 = vector.load %arg7[%c0_333, %c3_334, %c0_335, %c0_336] : memref<1x8x16x8xf32, #tpu.memory_space<vmem>>, vector<1x1x16x8xf32>
    %306 = vector.shape_cast %305 : vector<1x1x16x8xf32> to vector<16x8xf32>
    %307 = vector.shape_cast %304 : vector<16x8xf32> to vector<1x1x16x8xf32>
    tpu.vector_store %arg7[%c0_333, %c3_334, %c0_335, %c0_336], %307 {strides = array<i32>} : memref<1x8x16x8xf32, #tpu.memory_space<vmem>>, vector<1x1x16x8xf32>,
    %cst_337 = arith.constant 0.000000e+00 : f32
    %308 = vector.broadcast %cst_337 : f32 to vector<16x8xf32>
    %c4_338 = arith.constant 4 : index
    %c0_339 = arith.constant 0 : index
    %c0_340 = arith.constant 0 : index
    %309 = vector.load %arg8[%c4_338, %c0_339, %c0_340] : memref<10x18x4xbf16, #tpu.memory_space<vmem>>, vector<1x18x4xbf16>
    %310 = vector.shape_cast %309 : vector<1x18x4xbf16> to vector<18x4xbf16>
    %311 = vector.extract_strided_slice %310 {offsets = [0, 0], sizes = [16, 4], strides = [1, 1]} : vector<18x4xbf16> to vector<16x4xbf16>
    %c0_341 = arith.constant 0 : index
    %c0_342 = arith.constant 0 : index
    %c0_343 = arith.constant 0 : index
    %c0_344 = arith.constant 0 : index
    %312 = vector.load %arg5[%c0_341, %c0_342, %c0_343, %c0_344] : memref<3x3x4x8xbf16, #tpu.memory_space<vmem>>, vector<1x1x4x8xbf16>
    %313 = vector.shape_cast %312 : vector<1x1x4x8xbf16> to vector<4x8xbf16>
    %cst_345 = arith.constant dense<0.000000e+00> : vector<16x8xf32>
    %314 = tpu.matmul %311, %313, %cst_345 {dimension_numbers = #tpu.dot_dimension_numbers<[1], [0], [0], [1], [0, 0, 1, 1], [], []>} : vector<16x4xbf16>, vector<4x8xbf16>, vector<16x8xf32> -> vector<16x8xf32>
    %315 = arith.addf %308, %314 : vector<16x8xf32>
    %316 = vector.extract_strided_slice %310 {offsets = [1, 0], sizes = [16, 4], strides = [1, 1]} : vector<18x4xbf16> to vector<16x4xbf16>
    %c0_346 = arith.constant 0 : index
    %c1_347 = arith.constant 1 : index
    %c0_348 = arith.constant 0 : index
    %c0_349 = arith.constant 0 : index
    %317 = vector.load %arg5[%c0_346, %c1_347, %c0_348, %c0_349] : memref<3x3x4x8xbf16, #tpu.memory_space<vmem>>, vector<1x1x4x8xbf16>
    %318 = vector.shape_cast %317 : vector<1x1x4x8xbf16> to vector<4x8xbf16>
    %cst_350 = arith.constant dense<0.000000e+00> : vector<16x8xf32>
    %319 = tpu.matmul %316, %318, %cst_350 {dimension_numbers = #tpu.dot_dimension_numbers<[1], [0], [0], [1], [0, 0, 1, 1], [], []>} : vector<16x4xbf16>, vector<4x8xbf16>, vector<16x8xf32> -> vector<16x8xf32>
    %320 = arith.addf %315, %319 : vector<16x8xf32>
    %321 = vector.extract_strided_slice %310 {offsets = [2, 0], sizes = [16, 4], strides = [1, 1]} : vector<18x4xbf16> to vector<16x4xbf16>
    %c0_351 = arith.constant 0 : index
    %c2_352 = arith.constant 2 : index
    %c0_353 = arith.constant 0 : index
    %c0_354 = arith.constant 0 : index
    %322 = vector.load %arg5[%c0_351, %c2_352, %c0_353, %c0_354] : memref<3x3x4x8xbf16, #tpu.memory_space<vmem>>, vector<1x1x4x8xbf16>
    %323 = vector.shape_cast %322 : vector<1x1x4x8xbf16> to vector<4x8xbf16>
    %cst_355 = arith.constant dense<0.000000e+00> : vector<16x8xf32>
    %324 = tpu.matmul %321, %323, %cst_355 {dimension_numbers = #tpu.dot_dimension_numbers<[1], [0], [0], [1], [0, 0, 1, 1], [], []>} : vector<16x4xbf16>, vector<4x8xbf16>, vector<16x8xf32> -> vector<16x8xf32>
    %325 = arith.addf %320, %324 : vector<16x8xf32>
    %c5_356 = arith.constant 5 : index
    %c0_357 = arith.constant 0 : index
    %c0_358 = arith.constant 0 : index
    %326 = vector.load %arg8[%c5_356, %c0_357, %c0_358] : memref<10x18x4xbf16, #tpu.memory_space<vmem>>, vector<1x18x4xbf16>
    %327 = vector.shape_cast %326 : vector<1x18x4xbf16> to vector<18x4xbf16>
    %328 = vector.extract_strided_slice %327 {offsets = [0, 0], sizes = [16, 4], strides = [1, 1]} : vector<18x4xbf16> to vector<16x4xbf16>
    %c1_359 = arith.constant 1 : index
    %c0_360 = arith.constant 0 : index
    %c0_361 = arith.constant 0 : index
    %c0_362 = arith.constant 0 : index
    %329 = vector.load %arg5[%c1_359, %c0_360, %c0_361, %c0_362] : memref<3x3x4x8xbf16, #tpu.memory_space<vmem>>, vector<1x1x4x8xbf16>
    %330 = vector.shape_cast %329 : vector<1x1x4x8xbf16> to vector<4x8xbf16>
    %cst_363 = arith.constant dense<0.000000e+00> : vector<16x8xf32>
    %331 = tpu.matmul %328, %330, %cst_363 {dimension_numbers = #tpu.dot_dimension_numbers<[1], [0], [0], [1], [0, 0, 1, 1], [], []>} : vector<16x4xbf16>, vector<4x8xbf16>, vector<16x8xf32> -> vector<16x8xf32>
    %332 = arith.addf %325, %331 : vector<16x8xf32>
    %333 = vector.extract_strided_slice %327 {offsets = [1, 0], sizes = [16, 4], strides = [1, 1]} : vector<18x4xbf16> to vector<16x4xbf16>
    %c1_364 = arith.constant 1 : index
    %c1_365 = arith.constant 1 : index
    %c0_366 = arith.constant 0 : index
    %c0_367 = arith.constant 0 : index
    %334 = vector.load %arg5[%c1_364, %c1_365, %c0_366, %c0_367] : memref<3x3x4x8xbf16, #tpu.memory_space<vmem>>, vector<1x1x4x8xbf16>
    %335 = vector.shape_cast %334 : vector<1x1x4x8xbf16> to vector<4x8xbf16>
    %cst_368 = arith.constant dense<0.000000e+00> : vector<16x8xf32>
    %336 = tpu.matmul %333, %335, %cst_368 {dimension_numbers = #tpu.dot_dimension_numbers<[1], [0], [0], [1], [0, 0, 1, 1], [], []>} : vector<16x4xbf16>, vector<4x8xbf16>, vector<16x8xf32> -> vector<16x8xf32>
    %337 = arith.addf %332, %336 : vector<16x8xf32>
    %338 = vector.extract_strided_slice %327 {offsets = [2, 0], sizes = [16, 4], strides = [1, 1]} : vector<18x4xbf16> to vector<16x4xbf16>
    %c1_369 = arith.constant 1 : index
    %c2_370 = arith.constant 2 : index
    %c0_371 = arith.constant 0 : index
    %c0_372 = arith.constant 0 : index
    %339 = vector.load %arg5[%c1_369, %c2_370, %c0_371, %c0_372] : memref<3x3x4x8xbf16, #tpu.memory_space<vmem>>, vector<1x1x4x8xbf16>
    %340 = vector.shape_cast %339 : vector<1x1x4x8xbf16> to vector<4x8xbf16>
    %cst_373 = arith.constant dense<0.000000e+00> : vector<16x8xf32>
    %341 = tpu.matmul %338, %340, %cst_373 {dimension_numbers = #tpu.dot_dimension_numbers<[1], [0], [0], [1], [0, 0, 1, 1], [], []>} : vector<16x4xbf16>, vector<4x8xbf16>, vector<16x8xf32> -> vector<16x8xf32>
    %342 = arith.addf %337, %341 : vector<16x8xf32>
    %c6_374 = arith.constant 6 : index
    %c0_375 = arith.constant 0 : index
    %c0_376 = arith.constant 0 : index
    %343 = vector.load %arg8[%c6_374, %c0_375, %c0_376] : memref<10x18x4xbf16, #tpu.memory_space<vmem>>, vector<1x18x4xbf16>
    %344 = vector.shape_cast %343 : vector<1x18x4xbf16> to vector<18x4xbf16>
    %345 = vector.extract_strided_slice %344 {offsets = [0, 0], sizes = [16, 4], strides = [1, 1]} : vector<18x4xbf16> to vector<16x4xbf16>
    %c2_377 = arith.constant 2 : index
    %c0_378 = arith.constant 0 : index
    %c0_379 = arith.constant 0 : index
    %c0_380 = arith.constant 0 : index
    %346 = vector.load %arg5[%c2_377, %c0_378, %c0_379, %c0_380] : memref<3x3x4x8xbf16, #tpu.memory_space<vmem>>, vector<1x1x4x8xbf16>
    %347 = vector.shape_cast %346 : vector<1x1x4x8xbf16> to vector<4x8xbf16>
    %cst_381 = arith.constant dense<0.000000e+00> : vector<16x8xf32>
    %348 = tpu.matmul %345, %347, %cst_381 {dimension_numbers = #tpu.dot_dimension_numbers<[1], [0], [0], [1], [0, 0, 1, 1], [], []>} : vector<16x4xbf16>, vector<4x8xbf16>, vector<16x8xf32> -> vector<16x8xf32>
    %349 = arith.addf %342, %348 : vector<16x8xf32>
    %350 = vector.extract_strided_slice %344 {offsets = [1, 0], sizes = [16, 4], strides = [1, 1]} : vector<18x4xbf16> to vector<16x4xbf16>
    %c2_382 = arith.constant 2 : index
    %c1_383 = arith.constant 1 : index
    %c0_384 = arith.constant 0 : index
    %c0_385 = arith.constant 0 : index
    %351 = vector.load %arg5[%c2_382, %c1_383, %c0_384, %c0_385] : memref<3x3x4x8xbf16, #tpu.memory_space<vmem>>, vector<1x1x4x8xbf16>
    %352 = vector.shape_cast %351 : vector<1x1x4x8xbf16> to vector<4x8xbf16>
    %cst_386 = arith.constant dense<0.000000e+00> : vector<16x8xf32>
    %353 = tpu.matmul %350, %352, %cst_386 {dimension_numbers = #tpu.dot_dimension_numbers<[1], [0], [0], [1], [0, 0, 1, 1], [], []>} : vector<16x4xbf16>, vector<4x8xbf16>, vector<16x8xf32> -> vector<16x8xf32>
    %354 = arith.addf %349, %353 : vector<16x8xf32>
    %355 = vector.extract_strided_slice %344 {offsets = [2, 0], sizes = [16, 4], strides = [1, 1]} : vector<18x4xbf16> to vector<16x4xbf16>
    %c2_387 = arith.constant 2 : index
    %c2_388 = arith.constant 2 : index
    %c0_389 = arith.constant 0 : index
    %c0_390 = arith.constant 0 : index
    %356 = vector.load %arg5[%c2_387, %c2_388, %c0_389, %c0_390] : memref<3x3x4x8xbf16, #tpu.memory_space<vmem>>, vector<1x1x4x8xbf16>
    %357 = vector.shape_cast %356 : vector<1x1x4x8xbf16> to vector<4x8xbf16>
    %cst_391 = arith.constant dense<0.000000e+00> : vector<16x8xf32>
    %358 = tpu.matmul %355, %357, %cst_391 {dimension_numbers = #tpu.dot_dimension_numbers<[1], [0], [0], [1], [0, 0, 1, 1], [], []>} : vector<16x4xbf16>, vector<4x8xbf16>, vector<16x8xf32> -> vector<16x8xf32>
    %359 = arith.addf %354, %358 : vector<16x8xf32>
    %c0_392 = arith.constant 0 : index
    %c0_393 = arith.constant 0 : index
    %360 = vector.load %arg6[%c0_392, %c0_393] : memref<8x8xf32, #tpu.memory_space<vmem>>, vector<8x8xf32>
    %cst_394 = arith.constant dense<0.000000e+00> : vector<16x8xf32>
    %361 = tpu.matmul %359, %360, %cst_394 {dimension_numbers = #tpu.dot_dimension_numbers<[1], [0], [0], [1], [0, 0, 1, 1], [], []>} : vector<16x8xf32>, vector<8x8xf32>, vector<16x8xf32> -> vector<16x8xf32>
    %c0_395 = arith.constant 0 : index
    %c4_396 = arith.constant 4 : index
    %c0_397 = arith.constant 0 : index
    %c0_398 = arith.constant 0 : index
    %362 = vector.load %arg7[%c0_395, %c4_396, %c0_397, %c0_398] : memref<1x8x16x8xf32, #tpu.memory_space<vmem>>, vector<1x1x16x8xf32>
    %363 = vector.shape_cast %362 : vector<1x1x16x8xf32> to vector<16x8xf32>
    %364 = vector.shape_cast %361 : vector<16x8xf32> to vector<1x1x16x8xf32>
    tpu.vector_store %arg7[%c0_395, %c4_396, %c0_397, %c0_398], %364 {strides = array<i32>} : memref<1x8x16x8xf32, #tpu.memory_space<vmem>>, vector<1x1x16x8xf32>,
    %cst_399 = arith.constant 0.000000e+00 : f32
    %365 = vector.broadcast %cst_399 : f32 to vector<16x8xf32>
    %c5_400 = arith.constant 5 : index
    %c0_401 = arith.constant 0 : index
    %c0_402 = arith.constant 0 : index
    %366 = vector.load %arg8[%c5_400, %c0_401, %c0_402] : memref<10x18x4xbf16, #tpu.memory_space<vmem>>, vector<1x18x4xbf16>
    %367 = vector.shape_cast %366 : vector<1x18x4xbf16> to vector<18x4xbf16>
    %368 = vector.extract_strided_slice %367 {offsets = [0, 0], sizes = [16, 4], strides = [1, 1]} : vector<18x4xbf16> to vector<16x4xbf16>
    %c0_403 = arith.constant 0 : index
    %c0_404 = arith.constant 0 : index
    %c0_405 = arith.constant 0 : index
    %c0_406 = arith.constant 0 : index
    %369 = vector.load %arg5[%c0_403, %c0_404, %c0_405, %c0_406] : memref<3x3x4x8xbf16, #tpu.memory_space<vmem>>, vector<1x1x4x8xbf16>
    %370 = vector.shape_cast %369 : vector<1x1x4x8xbf16> to vector<4x8xbf16>
    %cst_407 = arith.constant dense<0.000000e+00> : vector<16x8xf32>
    %371 = tpu.matmul %368, %370, %cst_407 {dimension_numbers = #tpu.dot_dimension_numbers<[1], [0], [0], [1], [0, 0, 1, 1], [], []>} : vector<16x4xbf16>, vector<4x8xbf16>, vector<16x8xf32> -> vector<16x8xf32>
    %372 = arith.addf %365, %371 : vector<16x8xf32>
    %373 = vector.extract_strided_slice %367 {offsets = [1, 0], sizes = [16, 4], strides = [1, 1]} : vector<18x4xbf16> to vector<16x4xbf16>
    %c0_408 = arith.constant 0 : index
    %c1_409 = arith.constant 1 : index
    %c0_410 = arith.constant 0 : index
    %c0_411 = arith.constant 0 : index
    %374 = vector.load %arg5[%c0_408, %c1_409, %c0_410, %c0_411] : memref<3x3x4x8xbf16, #tpu.memory_space<vmem>>, vector<1x1x4x8xbf16>
    %375 = vector.shape_cast %374 : vector<1x1x4x8xbf16> to vector<4x8xbf16>
    %cst_412 = arith.constant dense<0.000000e+00> : vector<16x8xf32>
    %376 = tpu.matmul %373, %375, %cst_412 {dimension_numbers = #tpu.dot_dimension_numbers<[1], [0], [0], [1], [0, 0, 1, 1], [], []>} : vector<16x4xbf16>, vector<4x8xbf16>, vector<16x8xf32> -> vector<16x8xf32>
    %377 = arith.addf %372, %376 : vector<16x8xf32>
    %378 = vector.extract_strided_slice %367 {offsets = [2, 0], sizes = [16, 4], strides = [1, 1]} : vector<18x4xbf16> to vector<16x4xbf16>
    %c0_413 = arith.constant 0 : index
    %c2_414 = arith.constant 2 : index
    %c0_415 = arith.constant 0 : index
    %c0_416 = arith.constant 0 : index
    %379 = vector.load %arg5[%c0_413, %c2_414, %c0_415, %c0_416] : memref<3x3x4x8xbf16, #tpu.memory_space<vmem>>, vector<1x1x4x8xbf16>
    %380 = vector.shape_cast %379 : vector<1x1x4x8xbf16> to vector<4x8xbf16>
    %cst_417 = arith.constant dense<0.000000e+00> : vector<16x8xf32>
    %381 = tpu.matmul %378, %380, %cst_417 {dimension_numbers = #tpu.dot_dimension_numbers<[1], [0], [0], [1], [0, 0, 1, 1], [], []>} : vector<16x4xbf16>, vector<4x8xbf16>, vector<16x8xf32> -> vector<16x8xf32>
    %382 = arith.addf %377, %381 : vector<16x8xf32>
    %c6_418 = arith.constant 6 : index
    %c0_419 = arith.constant 0 : index
    %c0_420 = arith.constant 0 : index
    %383 = vector.load %arg8[%c6_418, %c0_419, %c0_420] : memref<10x18x4xbf16, #tpu.memory_space<vmem>>, vector<1x18x4xbf16>
    %384 = vector.shape_cast %383 : vector<1x18x4xbf16> to vector<18x4xbf16>
    %385 = vector.extract_strided_slice %384 {offsets = [0, 0], sizes = [16, 4], strides = [1, 1]} : vector<18x4xbf16> to vector<16x4xbf16>
    %c1_421 = arith.constant 1 : index
    %c0_422 = arith.constant 0 : index
    %c0_423 = arith.constant 0 : index
    %c0_424 = arith.constant 0 : index
    %386 = vector.load %arg5[%c1_421, %c0_422, %c0_423, %c0_424] : memref<3x3x4x8xbf16, #tpu.memory_space<vmem>>, vector<1x1x4x8xbf16>
    %387 = vector.shape_cast %386 : vector<1x1x4x8xbf16> to vector<4x8xbf16>
    %cst_425 = arith.constant dense<0.000000e+00> : vector<16x8xf32>
    %388 = tpu.matmul %385, %387, %cst_425 {dimension_numbers = #tpu.dot_dimension_numbers<[1], [0], [0], [1], [0, 0, 1, 1], [], []>} : vector<16x4xbf16>, vector<4x8xbf16>, vector<16x8xf32> -> vector<16x8xf32>
    %389 = arith.addf %382, %388 : vector<16x8xf32>
    %390 = vector.extract_strided_slice %384 {offsets = [1, 0], sizes = [16, 4], strides = [1, 1]} : vector<18x4xbf16> to vector<16x4xbf16>
    %c1_426 = arith.constant 1 : index
    %c1_427 = arith.constant 1 : index
    %c0_428 = arith.constant 0 : index
    %c0_429 = arith.constant 0 : index
    %391 = vector.load %arg5[%c1_426, %c1_427, %c0_428, %c0_429] : memref<3x3x4x8xbf16, #tpu.memory_space<vmem>>, vector<1x1x4x8xbf16>
    %392 = vector.shape_cast %391 : vector<1x1x4x8xbf16> to vector<4x8xbf16>
    %cst_430 = arith.constant dense<0.000000e+00> : vector<16x8xf32>
    %393 = tpu.matmul %390, %392, %cst_430 {dimension_numbers = #tpu.dot_dimension_numbers<[1], [0], [0], [1], [0, 0, 1, 1], [], []>} : vector<16x4xbf16>, vector<4x8xbf16>, vector<16x8xf32> -> vector<16x8xf32>
    %394 = arith.addf %389, %393 : vector<16x8xf32>
    %395 = vector.extract_strided_slice %384 {offsets = [2, 0], sizes = [16, 4], strides = [1, 1]} : vector<18x4xbf16> to vector<16x4xbf16>
    %c1_431 = arith.constant 1 : index
    %c2_432 = arith.constant 2 : index
    %c0_433 = arith.constant 0 : index
    %c0_434 = arith.constant 0 : index
    %396 = vector.load %arg5[%c1_431, %c2_432, %c0_433, %c0_434] : memref<3x3x4x8xbf16, #tpu.memory_space<vmem>>, vector<1x1x4x8xbf16>
    %397 = vector.shape_cast %396 : vector<1x1x4x8xbf16> to vector<4x8xbf16>
    %cst_435 = arith.constant dense<0.000000e+00> : vector<16x8xf32>
    %398 = tpu.matmul %395, %397, %cst_435 {dimension_numbers = #tpu.dot_dimension_numbers<[1], [0], [0], [1], [0, 0, 1, 1], [], []>} : vector<16x4xbf16>, vector<4x8xbf16>, vector<16x8xf32> -> vector<16x8xf32>
    %399 = arith.addf %394, %398 : vector<16x8xf32>
    %c7_436 = arith.constant 7 : index
    %c0_437 = arith.constant 0 : index
    %c0_438 = arith.constant 0 : index
    %400 = vector.load %arg8[%c7_436, %c0_437, %c0_438] : memref<10x18x4xbf16, #tpu.memory_space<vmem>>, vector<1x18x4xbf16>
    %401 = vector.shape_cast %400 : vector<1x18x4xbf16> to vector<18x4xbf16>
    %402 = vector.extract_strided_slice %401 {offsets = [0, 0], sizes = [16, 4], strides = [1, 1]} : vector<18x4xbf16> to vector<16x4xbf16>
    %c2_439 = arith.constant 2 : index
    %c0_440 = arith.constant 0 : index
    %c0_441 = arith.constant 0 : index
    %c0_442 = arith.constant 0 : index
    %403 = vector.load %arg5[%c2_439, %c0_440, %c0_441, %c0_442] : memref<3x3x4x8xbf16, #tpu.memory_space<vmem>>, vector<1x1x4x8xbf16>
    %404 = vector.shape_cast %403 : vector<1x1x4x8xbf16> to vector<4x8xbf16>
    %cst_443 = arith.constant dense<0.000000e+00> : vector<16x8xf32>
    %405 = tpu.matmul %402, %404, %cst_443 {dimension_numbers = #tpu.dot_dimension_numbers<[1], [0], [0], [1], [0, 0, 1, 1], [], []>} : vector<16x4xbf16>, vector<4x8xbf16>, vector<16x8xf32> -> vector<16x8xf32>
    %406 = arith.addf %399, %405 : vector<16x8xf32>
    %407 = vector.extract_strided_slice %401 {offsets = [1, 0], sizes = [16, 4], strides = [1, 1]} : vector<18x4xbf16> to vector<16x4xbf16>
    %c2_444 = arith.constant 2 : index
    %c1_445 = arith.constant 1 : index
    %c0_446 = arith.constant 0 : index
    %c0_447 = arith.constant 0 : index
    %408 = vector.load %arg5[%c2_444, %c1_445, %c0_446, %c0_447] : memref<3x3x4x8xbf16, #tpu.memory_space<vmem>>, vector<1x1x4x8xbf16>
    %409 = vector.shape_cast %408 : vector<1x1x4x8xbf16> to vector<4x8xbf16>
    %cst_448 = arith.constant dense<0.000000e+00> : vector<16x8xf32>
    %410 = tpu.matmul %407, %409, %cst_448 {dimension_numbers = #tpu.dot_dimension_numbers<[1], [0], [0], [1], [0, 0, 1, 1], [], []>} : vector<16x4xbf16>, vector<4x8xbf16>, vector<16x8xf32> -> vector<16x8xf32>
    %411 = arith.addf %406, %410 : vector<16x8xf32>
    %412 = vector.extract_strided_slice %401 {offsets = [2, 0], sizes = [16, 4], strides = [1, 1]} : vector<18x4xbf16> to vector<16x4xbf16>
    %c2_449 = arith.constant 2 : index
    %c2_450 = arith.constant 2 : index
    %c0_451 = arith.constant 0 : index
    %c0_452 = arith.constant 0 : index
    %413 = vector.load %arg5[%c2_449, %c2_450, %c0_451, %c0_452] : memref<3x3x4x8xbf16, #tpu.memory_space<vmem>>, vector<1x1x4x8xbf16>
    %414 = vector.shape_cast %413 : vector<1x1x4x8xbf16> to vector<4x8xbf16>
    %cst_453 = arith.constant dense<0.000000e+00> : vector<16x8xf32>
    %415 = tpu.matmul %412, %414, %cst_453 {dimension_numbers = #tpu.dot_dimension_numbers<[1], [0], [0], [1], [0, 0, 1, 1], [], []>} : vector<16x4xbf16>, vector<4x8xbf16>, vector<16x8xf32> -> vector<16x8xf32>
    %416 = arith.addf %411, %415 : vector<16x8xf32>
    %c0_454 = arith.constant 0 : index
    %c0_455 = arith.constant 0 : index
    %417 = vector.load %arg6[%c0_454, %c0_455] : memref<8x8xf32, #tpu.memory_space<vmem>>, vector<8x8xf32>
    %cst_456 = arith.constant dense<0.000000e+00> : vector<16x8xf32>
    %418 = tpu.matmul %416, %417, %cst_456 {dimension_numbers = #tpu.dot_dimension_numbers<[1], [0], [0], [1], [0, 0, 1, 1], [], []>} : vector<16x8xf32>, vector<8x8xf32>, vector<16x8xf32> -> vector<16x8xf32>
    %c0_457 = arith.constant 0 : index
    %c5_458 = arith.constant 5 : index
    %c0_459 = arith.constant 0 : index
    %c0_460 = arith.constant 0 : index
    %419 = vector.load %arg7[%c0_457, %c5_458, %c0_459, %c0_460] : memref<1x8x16x8xf32, #tpu.memory_space<vmem>>, vector<1x1x16x8xf32>
    %420 = vector.shape_cast %419 : vector<1x1x16x8xf32> to vector<16x8xf32>
    %421 = vector.shape_cast %418 : vector<16x8xf32> to vector<1x1x16x8xf32>
    tpu.vector_store %arg7[%c0_457, %c5_458, %c0_459, %c0_460], %421 {strides = array<i32>} : memref<1x8x16x8xf32, #tpu.memory_space<vmem>>, vector<1x1x16x8xf32>,
    %cst_461 = arith.constant 0.000000e+00 : f32
    %422 = vector.broadcast %cst_461 : f32 to vector<16x8xf32>
    %c6_462 = arith.constant 6 : index
    %c0_463 = arith.constant 0 : index
    %c0_464 = arith.constant 0 : index
    %423 = vector.load %arg8[%c6_462, %c0_463, %c0_464] : memref<10x18x4xbf16, #tpu.memory_space<vmem>>, vector<1x18x4xbf16>
    %424 = vector.shape_cast %423 : vector<1x18x4xbf16> to vector<18x4xbf16>
    %425 = vector.extract_strided_slice %424 {offsets = [0, 0], sizes = [16, 4], strides = [1, 1]} : vector<18x4xbf16> to vector<16x4xbf16>
    %c0_465 = arith.constant 0 : index
    %c0_466 = arith.constant 0 : index
    %c0_467 = arith.constant 0 : index
    %c0_468 = arith.constant 0 : index
    %426 = vector.load %arg5[%c0_465, %c0_466, %c0_467, %c0_468] : memref<3x3x4x8xbf16, #tpu.memory_space<vmem>>, vector<1x1x4x8xbf16>
    %427 = vector.shape_cast %426 : vector<1x1x4x8xbf16> to vector<4x8xbf16>
    %cst_469 = arith.constant dense<0.000000e+00> : vector<16x8xf32>
    %428 = tpu.matmul %425, %427, %cst_469 {dimension_numbers = #tpu.dot_dimension_numbers<[1], [0], [0], [1], [0, 0, 1, 1], [], []>} : vector<16x4xbf16>, vector<4x8xbf16>, vector<16x8xf32> -> vector<16x8xf32>
    %429 = arith.addf %422, %428 : vector<16x8xf32>
    %430 = vector.extract_strided_slice %424 {offsets = [1, 0], sizes = [16, 4], strides = [1, 1]} : vector<18x4xbf16> to vector<16x4xbf16>
    %c0_470 = arith.constant 0 : index
    %c1_471 = arith.constant 1 : index
    %c0_472 = arith.constant 0 : index
    %c0_473 = arith.constant 0 : index
    %431 = vector.load %arg5[%c0_470, %c1_471, %c0_472, %c0_473] : memref<3x3x4x8xbf16, #tpu.memory_space<vmem>>, vector<1x1x4x8xbf16>
    %432 = vector.shape_cast %431 : vector<1x1x4x8xbf16> to vector<4x8xbf16>
    %cst_474 = arith.constant dense<0.000000e+00> : vector<16x8xf32>
    %433 = tpu.matmul %430, %432, %cst_474 {dimension_numbers = #tpu.dot_dimension_numbers<[1], [0], [0], [1], [0, 0, 1, 1], [], []>} : vector<16x4xbf16>, vector<4x8xbf16>, vector<16x8xf32> -> vector<16x8xf32>
    %434 = arith.addf %429, %433 : vector<16x8xf32>
    %435 = vector.extract_strided_slice %424 {offsets = [2, 0], sizes = [16, 4], strides = [1, 1]} : vector<18x4xbf16> to vector<16x4xbf16>
    %c0_475 = arith.constant 0 : index
    %c2_476 = arith.constant 2 : index
    %c0_477 = arith.constant 0 : index
    %c0_478 = arith.constant 0 : index
    %436 = vector.load %arg5[%c0_475, %c2_476, %c0_477, %c0_478] : memref<3x3x4x8xbf16, #tpu.memory_space<vmem>>, vector<1x1x4x8xbf16>
    %437 = vector.shape_cast %436 : vector<1x1x4x8xbf16> to vector<4x8xbf16>
    %cst_479 = arith.constant dense<0.000000e+00> : vector<16x8xf32>
    %438 = tpu.matmul %435, %437, %cst_479 {dimension_numbers = #tpu.dot_dimension_numbers<[1], [0], [0], [1], [0, 0, 1, 1], [], []>} : vector<16x4xbf16>, vector<4x8xbf16>, vector<16x8xf32> -> vector<16x8xf32>
    %439 = arith.addf %434, %438 : vector<16x8xf32>
    %c7_480 = arith.constant 7 : index
    %c0_481 = arith.constant 0 : index
    %c0_482 = arith.constant 0 : index
    %440 = vector.load %arg8[%c7_480, %c0_481, %c0_482] : memref<10x18x4xbf16, #tpu.memory_space<vmem>>, vector<1x18x4xbf16>
    %441 = vector.shape_cast %440 : vector<1x18x4xbf16> to vector<18x4xbf16>
    %442 = vector.extract_strided_slice %441 {offsets = [0, 0], sizes = [16, 4], strides = [1, 1]} : vector<18x4xbf16> to vector<16x4xbf16>
    %c1_483 = arith.constant 1 : index
    %c0_484 = arith.constant 0 : index
    %c0_485 = arith.constant 0 : index
    %c0_486 = arith.constant 0 : index
    %443 = vector.load %arg5[%c1_483, %c0_484, %c0_485, %c0_486] : memref<3x3x4x8xbf16, #tpu.memory_space<vmem>>, vector<1x1x4x8xbf16>
    %444 = vector.shape_cast %443 : vector<1x1x4x8xbf16> to vector<4x8xbf16>
    %cst_487 = arith.constant dense<0.000000e+00> : vector<16x8xf32>
    %445 = tpu.matmul %442, %444, %cst_487 {dimension_numbers = #tpu.dot_dimension_numbers<[1], [0], [0], [1], [0, 0, 1, 1], [], []>} : vector<16x4xbf16>, vector<4x8xbf16>, vector<16x8xf32> -> vector<16x8xf32>
    %446 = arith.addf %439, %445 : vector<16x8xf32>
    %447 = vector.extract_strided_slice %441 {offsets = [1, 0], sizes = [16, 4], strides = [1, 1]} : vector<18x4xbf16> to vector<16x4xbf16>
    %c1_488 = arith.constant 1 : index
    %c1_489 = arith.constant 1 : index
    %c0_490 = arith.constant 0 : index
    %c0_491 = arith.constant 0 : index
    %448 = vector.load %arg5[%c1_488, %c1_489, %c0_490, %c0_491] : memref<3x3x4x8xbf16, #tpu.memory_space<vmem>>, vector<1x1x4x8xbf16>
    %449 = vector.shape_cast %448 : vector<1x1x4x8xbf16> to vector<4x8xbf16>
    %cst_492 = arith.constant dense<0.000000e+00> : vector<16x8xf32>
    %450 = tpu.matmul %447, %449, %cst_492 {dimension_numbers = #tpu.dot_dimension_numbers<[1], [0], [0], [1], [0, 0, 1, 1], [], []>} : vector<16x4xbf16>, vector<4x8xbf16>, vector<16x8xf32> -> vector<16x8xf32>
    %451 = arith.addf %446, %450 : vector<16x8xf32>
    %452 = vector.extract_strided_slice %441 {offsets = [2, 0], sizes = [16, 4], strides = [1, 1]} : vector<18x4xbf16> to vector<16x4xbf16>
    %c1_493 = arith.constant 1 : index
    %c2_494 = arith.constant 2 : index
    %c0_495 = arith.constant 0 : index
    %c0_496 = arith.constant 0 : index
    %453 = vector.load %arg5[%c1_493, %c2_494, %c0_495, %c0_496] : memref<3x3x4x8xbf16, #tpu.memory_space<vmem>>, vector<1x1x4x8xbf16>
    %454 = vector.shape_cast %453 : vector<1x1x4x8xbf16> to vector<4x8xbf16>
    %cst_497 = arith.constant dense<0.000000e+00> : vector<16x8xf32>
    %455 = tpu.matmul %452, %454, %cst_497 {dimension_numbers = #tpu.dot_dimension_numbers<[1], [0], [0], [1], [0, 0, 1, 1], [], []>} : vector<16x4xbf16>, vector<4x8xbf16>, vector<16x8xf32> -> vector<16x8xf32>
    %456 = arith.addf %451, %455 : vector<16x8xf32>
    %c8_498 = arith.constant 8 : index
    %c0_499 = arith.constant 0 : index
    %c0_500 = arith.constant 0 : index
    %457 = vector.load %arg8[%c8_498, %c0_499, %c0_500] : memref<10x18x4xbf16, #tpu.memory_space<vmem>>, vector<1x18x4xbf16>
    %458 = vector.shape_cast %457 : vector<1x18x4xbf16> to vector<18x4xbf16>
    %459 = vector.extract_strided_slice %458 {offsets = [0, 0], sizes = [16, 4], strides = [1, 1]} : vector<18x4xbf16> to vector<16x4xbf16>
    %c2_501 = arith.constant 2 : index
    %c0_502 = arith.constant 0 : index
    %c0_503 = arith.constant 0 : index
    %c0_504 = arith.constant 0 : index
    %460 = vector.load %arg5[%c2_501, %c0_502, %c0_503, %c0_504] : memref<3x3x4x8xbf16, #tpu.memory_space<vmem>>, vector<1x1x4x8xbf16>
    %461 = vector.shape_cast %460 : vector<1x1x4x8xbf16> to vector<4x8xbf16>
    %cst_505 = arith.constant dense<0.000000e+00> : vector<16x8xf32>
    %462 = tpu.matmul %459, %461, %cst_505 {dimension_numbers = #tpu.dot_dimension_numbers<[1], [0], [0], [1], [0, 0, 1, 1], [], []>} : vector<16x4xbf16>, vector<4x8xbf16>, vector<16x8xf32> -> vector<16x8xf32>
    %463 = arith.addf %456, %462 : vector<16x8xf32>
    %464 = vector.extract_strided_slice %458 {offsets = [1, 0], sizes = [16, 4], strides = [1, 1]} : vector<18x4xbf16> to vector<16x4xbf16>
    %c2_506 = arith.constant 2 : index
    %c1_507 = arith.constant 1 : index
    %c0_508 = arith.constant 0 : index
    %c0_509 = arith.constant 0 : index
    %465 = vector.load %arg5[%c2_506, %c1_507, %c0_508, %c0_509] : memref<3x3x4x8xbf16, #tpu.memory_space<vmem>>, vector<1x1x4x8xbf16>
    %466 = vector.shape_cast %465 : vector<1x1x4x8xbf16> to vector<4x8xbf16>
    %cst_510 = arith.constant dense<0.000000e+00> : vector<16x8xf32>
    %467 = tpu.matmul %464, %466, %cst_510 {dimension_numbers = #tpu.dot_dimension_numbers<[1], [0], [0], [1], [0, 0, 1, 1], [], []>} : vector<16x4xbf16>, vector<4x8xbf16>, vector<16x8xf32> -> vector<16x8xf32>
    %468 = arith.addf %463, %467 : vector<16x8xf32>
    %469 = vector.extract_strided_slice %458 {offsets = [2, 0], sizes = [16, 4], strides = [1, 1]} : vector<18x4xbf16> to vector<16x4xbf16>
    %c2_511 = arith.constant 2 : index
    %c2_512 = arith.constant 2 : index
    %c0_513 = arith.constant 0 : index
    %c0_514 = arith.constant 0 : index
    %470 = vector.load %arg5[%c2_511, %c2_512, %c0_513, %c0_514] : memref<3x3x4x8xbf16, #tpu.memory_space<vmem>>, vector<1x1x4x8xbf16>
    %471 = vector.shape_cast %470 : vector<1x1x4x8xbf16> to vector<4x8xbf16>
    %cst_515 = arith.constant dense<0.000000e+00> : vector<16x8xf32>
    %472 = tpu.matmul %469, %471, %cst_515 {dimension_numbers = #tpu.dot_dimension_numbers<[1], [0], [0], [1], [0, 0, 1, 1], [], []>} : vector<16x4xbf16>, vector<4x8xbf16>, vector<16x8xf32> -> vector<16x8xf32>
    %473 = arith.addf %468, %472 : vector<16x8xf32>
    %c0_516 = arith.constant 0 : index
    %c0_517 = arith.constant 0 : index
    %474 = vector.load %arg6[%c0_516, %c0_517] : memref<8x8xf32, #tpu.memory_space<vmem>>, vector<8x8xf32>
    %cst_518 = arith.constant dense<0.000000e+00> : vector<16x8xf32>
    %475 = tpu.matmul %473, %474, %cst_518 {dimension_numbers = #tpu.dot_dimension_numbers<[1], [0], [0], [1], [0, 0, 1, 1], [], []>} : vector<16x8xf32>, vector<8x8xf32>, vector<16x8xf32> -> vector<16x8xf32>
    %c0_519 = arith.constant 0 : index
    %c6_520 = arith.constant 6 : index
    %c0_521 = arith.constant 0 : index
    %c0_522 = arith.constant 0 : index
    %476 = vector.load %arg7[%c0_519, %c6_520, %c0_521, %c0_522] : memref<1x8x16x8xf32, #tpu.memory_space<vmem>>, vector<1x1x16x8xf32>
    %477 = vector.shape_cast %476 : vector<1x1x16x8xf32> to vector<16x8xf32>
    %478 = vector.shape_cast %475 : vector<16x8xf32> to vector<1x1x16x8xf32>
    tpu.vector_store %arg7[%c0_519, %c6_520, %c0_521, %c0_522], %478 {strides = array<i32>} : memref<1x8x16x8xf32, #tpu.memory_space<vmem>>, vector<1x1x16x8xf32>,
    %cst_523 = arith.constant 0.000000e+00 : f32
    %479 = vector.broadcast %cst_523 : f32 to vector<16x8xf32>
    %c7_524 = arith.constant 7 : index
    %c0_525 = arith.constant 0 : index
    %c0_526 = arith.constant 0 : index
    %480 = vector.load %arg8[%c7_524, %c0_525, %c0_526] : memref<10x18x4xbf16, #tpu.memory_space<vmem>>, vector<1x18x4xbf16>
    %481 = vector.shape_cast %480 : vector<1x18x4xbf16> to vector<18x4xbf16>
    %482 = vector.extract_strided_slice %481 {offsets = [0, 0], sizes = [16, 4], strides = [1, 1]} : vector<18x4xbf16> to vector<16x4xbf16>
    %c0_527 = arith.constant 0 : index
    %c0_528 = arith.constant 0 : index
    %c0_529 = arith.constant 0 : index
    %c0_530 = arith.constant 0 : index
    %483 = vector.load %arg5[%c0_527, %c0_528, %c0_529, %c0_530] : memref<3x3x4x8xbf16, #tpu.memory_space<vmem>>, vector<1x1x4x8xbf16>
    %484 = vector.shape_cast %483 : vector<1x1x4x8xbf16> to vector<4x8xbf16>
    %cst_531 = arith.constant dense<0.000000e+00> : vector<16x8xf32>
    %485 = tpu.matmul %482, %484, %cst_531 {dimension_numbers = #tpu.dot_dimension_numbers<[1], [0], [0], [1], [0, 0, 1, 1], [], []>} : vector<16x4xbf16>, vector<4x8xbf16>, vector<16x8xf32> -> vector<16x8xf32>
    %486 = arith.addf %479, %485 : vector<16x8xf32>
    %487 = vector.extract_strided_slice %481 {offsets = [1, 0], sizes = [16, 4], strides = [1, 1]} : vector<18x4xbf16> to vector<16x4xbf16>
    %c0_532 = arith.constant 0 : index
    %c1_533 = arith.constant 1 : index
    %c0_534 = arith.constant 0 : index
    %c0_535 = arith.constant 0 : index
    %488 = vector.load %arg5[%c0_532, %c1_533, %c0_534, %c0_535] : memref<3x3x4x8xbf16, #tpu.memory_space<vmem>>, vector<1x1x4x8xbf16>
    %489 = vector.shape_cast %488 : vector<1x1x4x8xbf16> to vector<4x8xbf16>
    %cst_536 = arith.constant dense<0.000000e+00> : vector<16x8xf32>
    %490 = tpu.matmul %487, %489, %cst_536 {dimension_numbers = #tpu.dot_dimension_numbers<[1], [0], [0], [1], [0, 0, 1, 1], [], []>} : vector<16x4xbf16>, vector<4x8xbf16>, vector<16x8xf32> -> vector<16x8xf32>
    %491 = arith.addf %486, %490 : vector<16x8xf32>
    %492 = vector.extract_strided_slice %481 {offsets = [2, 0], sizes = [16, 4], strides = [1, 1]} : vector<18x4xbf16> to vector<16x4xbf16>
    %c0_537 = arith.constant 0 : index
    %c2_538 = arith.constant 2 : index
    %c0_539 = arith.constant 0 : index
    %c0_540 = arith.constant 0 : index
    %493 = vector.load %arg5[%c0_537, %c2_538, %c0_539, %c0_540] : memref<3x3x4x8xbf16, #tpu.memory_space<vmem>>, vector<1x1x4x8xbf16>
    %494 = vector.shape_cast %493 : vector<1x1x4x8xbf16> to vector<4x8xbf16>
    %cst_541 = arith.constant dense<0.000000e+00> : vector<16x8xf32>
    %495 = tpu.matmul %492, %494, %cst_541 {dimension_numbers = #tpu.dot_dimension_numbers<[1], [0], [0], [1], [0, 0, 1, 1], [], []>} : vector<16x4xbf16>, vector<4x8xbf16>, vector<16x8xf32> -> vector<16x8xf32>
    %496 = arith.addf %491, %495 : vector<16x8xf32>
    %c8_542 = arith.constant 8 : index
    %c0_543 = arith.constant 0 : index
    %c0_544 = arith.constant 0 : index
    %497 = vector.load %arg8[%c8_542, %c0_543, %c0_544] : memref<10x18x4xbf16, #tpu.memory_space<vmem>>, vector<1x18x4xbf16>
    %498 = vector.shape_cast %497 : vector<1x18x4xbf16> to vector<18x4xbf16>
    %499 = vector.extract_strided_slice %498 {offsets = [0, 0], sizes = [16, 4], strides = [1, 1]} : vector<18x4xbf16> to vector<16x4xbf16>
    %c1_545 = arith.constant 1 : index
    %c0_546 = arith.constant 0 : index
    %c0_547 = arith.constant 0 : index
    %c0_548 = arith.constant 0 : index
    %500 = vector.load %arg5[%c1_545, %c0_546, %c0_547, %c0_548] : memref<3x3x4x8xbf16, #tpu.memory_space<vmem>>, vector<1x1x4x8xbf16>
    %501 = vector.shape_cast %500 : vector<1x1x4x8xbf16> to vector<4x8xbf16>
    %cst_549 = arith.constant dense<0.000000e+00> : vector<16x8xf32>
    %502 = tpu.matmul %499, %501, %cst_549 {dimension_numbers = #tpu.dot_dimension_numbers<[1], [0], [0], [1], [0, 0, 1, 1], [], []>} : vector<16x4xbf16>, vector<4x8xbf16>, vector<16x8xf32> -> vector<16x8xf32>
    %503 = arith.addf %496, %502 : vector<16x8xf32>
    %504 = vector.extract_strided_slice %498 {offsets = [1, 0], sizes = [16, 4], strides = [1, 1]} : vector<18x4xbf16> to vector<16x4xbf16>
    %c1_550 = arith.constant 1 : index
    %c1_551 = arith.constant 1 : index
    %c0_552 = arith.constant 0 : index
    %c0_553 = arith.constant 0 : index
    %505 = vector.load %arg5[%c1_550, %c1_551, %c0_552, %c0_553] : memref<3x3x4x8xbf16, #tpu.memory_space<vmem>>, vector<1x1x4x8xbf16>
    %506 = vector.shape_cast %505 : vector<1x1x4x8xbf16> to vector<4x8xbf16>
    %cst_554 = arith.constant dense<0.000000e+00> : vector<16x8xf32>
    %507 = tpu.matmul %504, %506, %cst_554 {dimension_numbers = #tpu.dot_dimension_numbers<[1], [0], [0], [1], [0, 0, 1, 1], [], []>} : vector<16x4xbf16>, vector<4x8xbf16>, vector<16x8xf32> -> vector<16x8xf32>
    %508 = arith.addf %503, %507 : vector<16x8xf32>
    %509 = vector.extract_strided_slice %498 {offsets = [2, 0], sizes = [16, 4], strides = [1, 1]} : vector<18x4xbf16> to vector<16x4xbf16>
    %c1_555 = arith.constant 1 : index
    %c2_556 = arith.constant 2 : index
    %c0_557 = arith.constant 0 : index
    %c0_558 = arith.constant 0 : index
    %510 = vector.load %arg5[%c1_555, %c2_556, %c0_557, %c0_558] : memref<3x3x4x8xbf16, #tpu.memory_space<vmem>>, vector<1x1x4x8xbf16>
    %511 = vector.shape_cast %510 : vector<1x1x4x8xbf16> to vector<4x8xbf16>
    %cst_559 = arith.constant dense<0.000000e+00> : vector<16x8xf32>
    %512 = tpu.matmul %509, %511, %cst_559 {dimension_numbers = #tpu.dot_dimension_numbers<[1], [0], [0], [1], [0, 0, 1, 1], [], []>} : vector<16x4xbf16>, vector<4x8xbf16>, vector<16x8xf32> -> vector<16x8xf32>
    %513 = arith.addf %508, %512 : vector<16x8xf32>
    %c9_560 = arith.constant 9 : index
    %c0_561 = arith.constant 0 : index
    %c0_562 = arith.constant 0 : index
    %514 = vector.load %arg8[%c9_560, %c0_561, %c0_562] : memref<10x18x4xbf16, #tpu.memory_space<vmem>>, vector<1x18x4xbf16>
    %515 = vector.shape_cast %514 : vector<1x18x4xbf16> to vector<18x4xbf16>
    %516 = vector.extract_strided_slice %515 {offsets = [0, 0], sizes = [16, 4], strides = [1, 1]} : vector<18x4xbf16> to vector<16x4xbf16>
    %c2_563 = arith.constant 2 : index
    %c0_564 = arith.constant 0 : index
    %c0_565 = arith.constant 0 : index
    %c0_566 = arith.constant 0 : index
    %517 = vector.load %arg5[%c2_563, %c0_564, %c0_565, %c0_566] : memref<3x3x4x8xbf16, #tpu.memory_space<vmem>>, vector<1x1x4x8xbf16>
    %518 = vector.shape_cast %517 : vector<1x1x4x8xbf16> to vector<4x8xbf16>
    %cst_567 = arith.constant dense<0.000000e+00> : vector<16x8xf32>
    %519 = tpu.matmul %516, %518, %cst_567 {dimension_numbers = #tpu.dot_dimension_numbers<[1], [0], [0], [1], [0, 0, 1, 1], [], []>} : vector<16x4xbf16>, vector<4x8xbf16>, vector<16x8xf32> -> vector<16x8xf32>
    %520 = arith.addf %513, %519 : vector<16x8xf32>
    %521 = vector.extract_strided_slice %515 {offsets = [1, 0], sizes = [16, 4], strides = [1, 1]} : vector<18x4xbf16> to vector<16x4xbf16>
    %c2_568 = arith.constant 2 : index
    %c1_569 = arith.constant 1 : index
    %c0_570 = arith.constant 0 : index
    %c0_571 = arith.constant 0 : index
    %522 = vector.load %arg5[%c2_568, %c1_569, %c0_570, %c0_571] : memref<3x3x4x8xbf16, #tpu.memory_space<vmem>>, vector<1x1x4x8xbf16>
    %523 = vector.shape_cast %522 : vector<1x1x4x8xbf16> to vector<4x8xbf16>
    %cst_572 = arith.constant dense<0.000000e+00> : vector<16x8xf32>
    %524 = tpu.matmul %521, %523, %cst_572 {dimension_numbers = #tpu.dot_dimension_numbers<[1], [0], [0], [1], [0, 0, 1, 1], [], []>} : vector<16x4xbf16>, vector<4x8xbf16>, vector<16x8xf32> -> vector<16x8xf32>
    %525 = arith.addf %520, %524 : vector<16x8xf32>
    %526 = vector.extract_strided_slice %515 {offsets = [2, 0], sizes = [16, 4], strides = [1, 1]} : vector<18x4xbf16> to vector<16x4xbf16>
    %c2_573 = arith.constant 2 : index
    %c2_574 = arith.constant 2 : index
    %c0_575 = arith.constant 0 : index
    %c0_576 = arith.constant 0 : index
    %527 = vector.load %arg5[%c2_573, %c2_574, %c0_575, %c0_576] : memref<3x3x4x8xbf16, #tpu.memory_space<vmem>>, vector<1x1x4x8xbf16>
    %528 = vector.shape_cast %527 : vector<1x1x4x8xbf16> to vector<4x8xbf16>
    %cst_577 = arith.constant dense<0.000000e+00> : vector<16x8xf32>
    %529 = tpu.matmul %526, %528, %cst_577 {dimension_numbers = #tpu.dot_dimension_numbers<[1], [0], [0], [1], [0, 0, 1, 1], [], []>} : vector<16x4xbf16>, vector<4x8xbf16>, vector<16x8xf32> -> vector<16x8xf32>
    %530 = arith.addf %525, %529 : vector<16x8xf32>
    %c0_578 = arith.constant 0 : index
    %c0_579 = arith.constant 0 : index
    %531 = vector.load %arg6[%c0_578, %c0_579] : memref<8x8xf32, #tpu.memory_space<vmem>>, vector<8x8xf32>
    %cst_580 = arith.constant dense<0.000000e+00> : vector<16x8xf32>
    %532 = tpu.matmul %530, %531, %cst_580 {dimension_numbers = #tpu.dot_dimension_numbers<[1], [0], [0], [1], [0, 0, 1, 1], [], []>} : vector<16x8xf32>, vector<8x8xf32>, vector<16x8xf32> -> vector<16x8xf32>
    %c0_581 = arith.constant 0 : index
    %c7_582 = arith.constant 7 : index
    %c0_583 = arith.constant 0 : index
    %c0_584 = arith.constant 0 : index
    %533 = vector.load %arg7[%c0_581, %c7_582, %c0_583, %c0_584] : memref<1x8x16x8xf32, #tpu.memory_space<vmem>>, vector<1x1x16x8xf32>
    %534 = vector.shape_cast %533 : vector<1x1x16x8xf32> to vector<16x8xf32>
    %535 = vector.shape_cast %532 : vector<16x8xf32> to vector<1x1x16x8xf32>
    tpu.vector_store %arg7[%c0_581, %c7_582, %c0_583, %c0_584], %535 {strides = array<i32>} : memref<1x8x16x8xf32, #tpu.memory_space<vmem>>, vector<1x1x16x8xf32>,
    return
  }
  func.func @transform_0(%arg0: i32, %arg1: i32) -> (i32, i32, i32, i32) {
    %c0_i32 = arith.constant 0 : i32
    %c0_i32_0 = arith.constant 0 : i32
    %c0_i32_1 = arith.constant 0 : i32
    return %arg0, %arg1, %c0_i32, %c0_i32_0 : i32, i32, i32, i32
  }
  func.func @transform_1(%arg0: i32, %arg1: i32) -> (i32, i32, i32, i32) {
    %c1_i32 = arith.constant 1 : i32
    %0 = arith.addi %arg1, %c1_i32 : i32
    %c4_i32 = arith.constant 4 : i32
    %1 = arith.muli %0, %c4_i32 : i32
    %c0_i32 = arith.constant 0 : i32
    %c0_i32_0 = arith.constant 0 : i32
    %c0_i32_1 = arith.constant 0 : i32
    return %arg0, %1, %c0_i32, %c0_i32_0 : i32, i32, i32, i32
  }
  func.func @transform_2(%arg0: i32, %arg1: i32) -> (i32, i32) {
    %c0_i32 = arith.constant 0 : i32
    %c0_i32_0 = arith.constant 0 : i32
    %c0_i32_1 = arith.constant 0 : i32
    return %c0_i32, %c0_i32_0 : i32, i32
  }
  func.func @transform_3(%arg0: i32, %arg1: i32) -> (i32, i32, i32, i32) {
    %c0_i32 = arith.constant 0 : i32
    %c0_i32_0 = arith.constant 0 : i32
    %c0_i32_1 = arith.constant 0 : i32
    %c0_i32_2 = arith.constant 0 : i32
    %c0_i32_3 = arith.constant 0 : i32
    return %c0_i32, %c0_i32_0, %c0_i32_1, %c0_i32_2 : i32, i32, i32, i32
  }
  func.func @transform_4(%arg0: i32, %arg1: i32) -> (i32, i32) {
    %c0_i32 = arith.constant 0 : i32
    %c0_i32_0 = arith.constant 0 : i32
    %c0_i32_1 = arith.constant 0 : i32
    return %c0_i32, %c0_i32_0 : i32, i32
  }
  func.func @transform_5(%arg0: i32, %arg1: i32) -> (i32, i32, i32, i32) {
    %c0_i32 = arith.constant 0 : i32
    %c0_i32_0 = arith.constant 0 : i32
    %c0_i32_1 = arith.constant 0 : i32
    return %arg0, %arg1, %c0_i32, %c0_i32_0 : i32, i32, i32, i32
  }
}

</mosaic_0001>

<bundles_post_ra>
// kernel: tpu_custom_call.1
= control target key start
LH: loop header
LB: loop body
LE: loop exit
PB: predicated region body
PF: predicated region fallthrough
CT: control target
= control target key end

     0   :  { %s3957_s18 = smov 0   ;;  %s3959_s19 = smov 0   ;;  %s4865_s0 = inlined_call_operand.vmem [shape: bf16[2,18,18,4], index: 0, kind: input, shape index: {}]   ;;  %s4866_s1 = inlined_call_operand.vmem [shape: bf16[2,18,18,4], index: 1, kind: input, shape index: {}]   ;;  %s4867_s2 = inlined_call_operand.vmem [shape: bf16[4,4], index: 2, kind: input, shape index: {}]   ;;  %s4868_s3 = inlined_call_operand.vmem [shape: bf16[3,3,4,8], index: 3, kind: input, shape index: {}]   ;;  %s4869_s4 = inlined_call_operand.vmem [shape: f32[8,8], index: 4, kind: input, shape index: {}]   ;;  %s4870_s5 = inlined_call_operand.vmem [shape: f32[2,16,16,8], index: 5, kind: output, shape index: {}]  }
   0x1   :  { %s3961_s20 = smov 0   ;;  %s3963_s21 = smov 0  }
   0x2   :  { %s3965_s22 = smov 0  }
   0x3 LB: > { %s24_s23 = sadd.s32 1, %s3917_s20  ;;  %s27_s24 = sadd.s32 1, %s3921_s21  ;;  %s3925_s22 = sphi %s3965_s22, %s15_s22   ;;  %s3921_s21 = sphi %s3963_s21, %s4874_s21   ;;  %s3917_s20 = sphi %s3961_s20, %s4873_s20   ;;  %s3913_s19 = sphi %s3959_s19, %s4872_s19   ;;  %s3909_s18 = sphi %s3957_s18, %s4871_s18  }
   0x4   : > { %p25_p0 = scmp.ge.s32.totalorder %s24_s23, 2  ;;  %p3443_p1 = scmp.ge.s32.totalorder %s3925_s22, 1 }
   0x5   : > { %p245_p2 = scmp.lt.s32.totalorder %s3925_s22, 5 }
   0x6   : > { %s4876_s23 = smov (%p25_p0, %s24_s23), 0  ;;  %s4878_s24 = smov (!%p25_p0, %s27_s24), %s3921_s21 }
   0x7   : > { %p246_p3 = pnand %p3443_p1, %p245_p2  ;;  %p29_p4 = scmp.ge.s32.totalorder %s4878_s24, 2 }
   0x8   : > { %s3993_s29 = sshll.u32 (!%p246_p3), %s3909_s18, 3  ;;  %p306_p5 = scmp.lt.s32.totalorder (!%p246_p3), %s3913_s19, 1 }
   0x9   : > { %s4880_s24 = smov (%p29_p4, %s4878_s24), 0  ;;  %249 = sbr.rel (%p246_p3) target bundleno = 1647 (0x66f), region = 40 }
   0xa   : > { %p308_p6 = scmp.lt.s32.totalorder (!%p246_p3), %s3993_s29, 17  ;;  %s3843_s11 = sadd.s32 (!%p246_p3), 8, %s3993_s29 }
   0xb   : > { %p326_p7 = scmp.lt.s32.totalorder (!%p246_p3), %s3843_s11, 17  ;;  %p339_p8 = scmp.lt.s32.totalorder (!%p246_p3), %s3993_s29, 15 }
   0xe   : > { %v351_v0 = vld [vmem:[%s4867_s2] sm:$0x3]  ;;  %vm367_vm0 = vcmask 1041408   ;;  %s4882_s19 = smov (!%p306_p5, %s3913_s19), 1  ;;  %vm360_vm1 = vcmask 31744   ;;  %s4884_s11 = smov (!%p326_p7, %s3843_s11), 17 }
   0xf   : > { %v401_v1 = vld [vmem:[%s4867_s2] sm:$0x3]  ;;  %v369_v2 = vsel %vm367_vm0, %v351_v0, 0  ;;  %s309_s13 = scalar_select %p308_p6, %s3993_s29, 17  ;;  %v3537_v54 = vld [vmem:[%s4868_s3 + $0x2] sm:$0x3] }
  0x10   : > { %v417_v3 = vsel %vm367_vm0, %v401_v1, 0  ;;  %378 = vmatpush.bf16.msra.mxu0 %v369_v2  ;;  %v448_v4 = vld [vmem:[%s4867_s2] sm:$0x3]  ;;  %s3845_s14 = smul.u32 54, %s4882_s19  ;;  %v850_v56 = vsel %vm367_vm0, %v3537_v54, 0  ;;  %vm392_vm2 = vcmask 27648  }
  0x11   : > { %426 = vmatpush.bf16.msra.mxu1 %v417_v3  ;;  %v495_v5 = vld [vmem:[%s4867_s2] sm:$0x3]  ;;  %v464_v7 = vsel %vm367_vm0, %v448_v4, 0  ;;  %s3844_s15 = smul.u32 3, %s309_s13  ;;  %v3552_v0 = vld [vmem:[%s4868_s3 + $0x8] sm:$0x3] }
  0x12   : > { %v542_v6 = vld [vmem:[%s4867_s2] sm:$0x3]  ;;  %v511_v8 = vsel %vm367_vm0, %v495_v5, 0  ;;  %473 = vmatpush.bf16.msra.mxu2 %v464_v7  ;;  %s3846_s12 = smul.u32 3, %s4884_s11  ;;  %v3554_v1 = vld [vmem:[%s4868_s3 + $0xa] sm:$0x3] }
  0x13   : > { %v558_v9 = vsel %vm367_vm0, %v542_v6, 0  ;;  %v589_v10 = vld [vmem:[%s4867_s2] sm:$0x3]  ;;  %520 = vmatpush.bf16.msra.mxu3 %v511_v8  ;;  %s312_s16 = sadd.s32 %s3845_s14, %s3844_s15  ;;  %v965_v2 = vsel %vm367_vm0, %v3552_v0, 0  ;;  %v992_v3 = vsel %vm367_vm0, %v3554_v1, 0  ;;  %vm395_vm3 = vcmask 24576  }
  0x14   : > { %v605_v11 = vsel %vm367_vm0, %v589_v10, 0  ;;  %567 = vmatpush.bf16.msrb.mxu0 %v558_v9  ;;  %s3445_s17 = sshll.u32 %s312_s16, 2  ;;  %v636_v16 = vld [vmem:[%s4867_s2] sm:$0x3]  ;;  %s330_s13 = sadd.s32 %s3846_s12, %s3845_s14  ;;  %v3546_v4 = vld [vmem:[%s4868_s3 + $0x6] sm:$0x3] }
  0x15   : > { %614 = vmatpush.bf16.msrb.mxu1 %v605_v11  ;;  %s4023_s26 = scalar_lea.vmem %s4865_s0, %s3445_s17  ;;  %v683_v17 = vld [vmem:[%s4867_s2] sm:$0x3]  ;;  %v652_v18 = vsel %vm367_vm0, %v636_v16, 0  ;;  %s3448_s15 = sshll.u32 %s330_s13, 2  ;;  %v927_v5 = vsel %vm367_vm0, %v3546_v4, 0  ;;  %vm887_vm4 = vcmask 1046528  }
  0x16   : > { %v3808_v12 = vld [vmem:[%s4023_s26] sm:$0xff]  ;;  %v3809_v13 = vld [vmem:[%s4023_s26 + $0xc] sm:$0xff]  ;;  %v3810_v14 = vld [vmem:[%s4023_s26 + $0x18] sm:$0xff]  ;;  %661 = vmatpush.bf16.msrb.mxu2 %v652_v18  ;;  %v699_v19 = vsel %vm367_vm0, %v683_v17, 0  ;;  %s332_s18 = scalar_lea.vmem %s4866_s1, %s3448_s15  ;;  %vm833_vm5 = vsmask.f32 7424 }
  0x17   : > { %3457 = vmatmul.msk.bf16.vlgmr.msra.gmra.mxu0 %vm360_vm1, %v3808_v12  ;;  %3466 = vmatmul.msk.bf16.vlgmr.msra.gmra.mxu1 %vm360_vm1, %v3809_v13  ;;  %v3811_v15 = vld [vmem:[%s4023_s26 + $0x24] sm:$0xff]  ;;  %v3461_v21 = vld [vmem:[%s4023_s26 + $0x14] sm:$0x1]  ;;  %v3470_v22 = vld [vmem:[%s4023_s26 + $0x20] sm:$0x1]  ;;  %vm1108_vm6 = vcmask 64512  }
  0x18   : > { %3475 = vmatmul.msk.bf16.vlgmr.msra.gmra.mxu2 %vm360_vm1, %v3810_v14  ;;  %3484 = vmatmul.msk.bf16.vlgmr.msra.gmra.mxu3 %vm360_vm1, %v3811_v15  ;;  %v350_v20 = vld [vmem:[%s4023_s26 + $0x8] sm:$0x1]  ;;  %v3479_v23 = vld [vmem:[%s4023_s26 + $0x2c] sm:$0x1]  ;;  %v407_v25 = vunpack.c.l.b16 %v3461_v21  ;;  %v454_v26 = vunpack.c.l.b16 %v3470_v22  ;;  %v729_v32 = vld [vmem:[%s4867_s2] sm:$0x3] }
  0x19   : > { %708 = vmatpush.bf16.msrb.mxu3 %v699_v19  ;;  %v357_v24 = vunpack.c.l.b16 %v350_v20  ;;  %v501_v27 = vunpack.c.l.b16 %v3479_v23  ;;  %v776_v33 = vld [vmem:[%s4867_s2] sm:$0x3]  ;;  %v745_v34 = vsel %vm367_vm0, %v729_v32, 0  ;;  %v3812_v37 = vld [vmem:[%s4023_s26 + $0x30] sm:$0xff]  ;;  %v3814_v38 = vld [vmem:[%s4023_s26 + $0x48] sm:$0xff]  ;;  %s4886_s29 = smov (!%p339_p8, %s3993_s29), 15 }
  0x1a   : > { %v409_v29 = vpack.c.b16 %v407_v25, %v407_v25  ;;  %v456_v30 = vpack.c.b16 %v454_v26, %v454_v26  ;;  %v792_v35 = vsel %vm367_vm0, %v776_v33, 0  ;;  %754 = vmatpush.bf16.msra.mxu0 %v745_v34  ;;  %v3813_v36 = vld [vmem:[%s4023_s26 + $0x3c] sm:$0xff]  ;;  %v3815_v39 = vld [vmem:[%s4023_s26 + $0x54] sm:$0xff]  ;;  %v3497_v40 = vld [vmem:[%s4023_s26 + $0x44] sm:$0x1]  ;;  %859 = vmatpush.bf16.msra.mxu2 %v850_v56  ;;  %s3450_s10 = sshll.u32 %s4886_s29, 1 }
  0x1b   : > { %v359_v28 = vpack.c.b16 %v357_v24, %v357_v24  ;;  %v503_v31 = vpack.c.b16 %v501_v27, %v501_v27  ;;  %801 = vmatpush.bf16.msra.mxu1 %v792_v35  ;;  %v3488_v41 = vld [vmem:[%s4023_s26 + $0x38] sm:$0x1]  ;;  %v595_v42 = vunpack.c.l.b16 %v3497_v40  ;;  %v3506_v46 = vld [vmem:[%s4023_s26 + $0x50] sm:$0x1]  ;;  %v3515_v48 = vld [vmem:[%s4023_s26 + $0x5c] sm:$0x1] }
  0x1c   : > { %v548_v43 = vunpack.c.l.b16 %v3488_v41  ;;  %v642_v47 = vunpack.c.l.b16 %v3506_v46  ;;  %v689_v50 = vunpack.c.l.b16 %v3515_v48  ;;  %v3817_v51 = vld [vmem:[%s332_s18 + $0xc] sm:$0xff]  ;;  %v3816_v53 = vld [vmem:[%s332_s18] sm:$0xff]  ;;  %v3530_v58 = vld [vmem:[%s332_s18 + $0x14] sm:$0x1]  ;;  %s3451_s11 = sshll.u32 %s4882_s19, 5 }
  0x1d   : > { %v597_v44 = vpack.c.b16 %v595_v42, %v595_v42  ;;  %v822_v55 = vld [vmem:[%s4868_s3] sm:$0x3]  ;;  %v782_v59 = vunpack.c.l.b16 %v3530_v58  ;;  %v728_v60 = vld [vmem:[%s332_s18 + $0x8] sm:$0x1]  ;;  %v3544_v10 = vld [vmem:[%s4868_s3 + $0x4] sm:$0x3]  ;;  %s343_s15 = sadd.s32 %s3451_s11, %s3450_s10 }
  0x1e   : > { %v550_v45 = vpack.c.b16 %v548_v43, %v548_v43  ;;  %v644_v49 = vpack.c.b16 %v642_v47, %v642_v47  ;;  %v691_v52 = vpack.c.b16 %v689_v50, %v689_v50  ;;  %v869_v57 = vsel %vm367_vm0, %v822_v55, 0  ;;  %v3564_v12 = vld [vmem:[%s4868_s3 + $0x10] sm:$0x3]  ;;  %v3562_v21 = vld [vmem:[%s4868_s3 + $0xe] sm:$0x3]  ;;  %s3452_s19 = sshll.u32 %s343_s15, 3 }
  0x1f   : > { %878 = vmatpush.bf16.msra.mxu3 %v869_v57  ;;  %v784_v61 = vpack.c.b16 %v782_v59, %v782_v59  ;;  %v735_v62 = vunpack.c.l.b16 %v728_v60  ;;  %v895_v11 = vsel %vm367_vm0, %v3544_v10, 0  ;;  %v1089_v13 = vsel %vm367_vm0, %v3564_v12, 0  ;;  %v3575_v55 = vld [vmem:[%s4868_s3 + $0x4] sm:$0x3]  ;;  %v1143_v56 = vld [vmem:[%s4868_s3] sm:$0x3]  ;;  %s4602_s17 = scalar_lea.vmem %s4870_s5, %s3452_s19 }
  0x21   : > { %v737_v63 = vpack.c.b16 %v735_v62, %v735_v62 }
  0x27   : > { %3458 = vmatmul.msk.bf16.gmra.mxu0 %vm360_vm1, %v359_v28  ;;  %3467 = vmatmul.msk.bf16.gmra.mxu1 %vm360_vm1, %v409_v29  ;;  %v1062_v28 = vsel %vm367_vm0, %v3562_v21, 0 }
  0x28   : > { %3476 = vmatmul.msk.bf16.gmra.mxu2 %vm360_vm1, %v456_v30  ;;  %3485 = vmatmul.msk.bf16.gmra.mxu3 %vm360_vm1, %v503_v31 }
  0x37   : > { %3502 = vmatmul.msk.bf16.vlgmr.msrb.gmra.mxu1 %vm360_vm1, %v3813_v36  ;;  %3493 = vmatmul.msk.bf16.vlgmr.msrb.gmra.mxu0 %vm360_vm1, %v3812_v37 }
  0x38   : > { %3511 = vmatmul.msk.bf16.vlgmr.msrb.gmra.mxu2 %vm360_vm1, %v3814_v38  ;;  %3520 = vmatmul.msk.bf16.vlgmr.msrb.gmra.mxu3 %vm360_vm1, %v3815_v39 }
  0x39   : > { %974 = vmatpush.bf16.msrb.mxu0 %v965_v2  ;;  %1001 = vmatpush.bf16.msrb.mxu1 %v992_v3  ;;  %v1212_v2 = vsel %vm367_vm0, %v3575_v55, 0  ;;  %v1188_v3 = vsel %vm367_vm0, %v1143_v56, 0 }
  0x3a   : > { %936 = vmatpush.bf16.msrb.mxu3 %v927_v5  ;;  %904 = vmatpush.bf16.msrb.mxu2 %v895_v11 }
  0x47   : > { %3503 = vmatmul.msk.bf16.gmra.mxu1 %vm360_vm1, %v597_v44  ;;  %3494 = vmatmul.msk.bf16.gmra.mxu0 %vm360_vm1, %v550_v45 }
  0x48   : > { %3512 = vmatmul.msk.bf16.gmra.mxu2 %vm360_vm1, %v644_v49  ;;  %3521 = vmatmul.msk.bf16.gmra.mxu3 %vm360_vm1, %v691_v52 }
  0x57   : > { %3535 = vmatmul.msk.bf16.vlgmr.msra.gmra.mxu1 %vm360_vm1, %v3817_v51  ;;  %3526 = vmatmul.msk.bf16.vlgmr.msra.gmra.mxu0 %vm360_vm1, %v3816_v53  ;;  %v3556_v51 = vld [vmem:[%s4868_s3 + $0xc] sm:$0x3] }
  0x58   : > { %1098 = vmatpush.bf16.msra.mxu0 %v1089_v13 }
  0x67   : > { %3536 = vmatmul.msk.bf16.gmra.mxu1 %vm360_vm1, %v784_v61  ;;  %3527 = vmatmul.msk.bf16.gmra.mxu0 %vm360_vm1, %v737_v63  ;;  %v1024_v63 = vsel %vm367_vm0, %v3556_v51, 0 }
  0x94   : > { %v380_v6 = vpop.f32.mrf.mxu0  ;;  %v428_v7 = vpop.f32.mrf.mxu1 }
  0x95   : > { %v389_v8 = vpack.c.bf16 %v380_v6, %v380_v6  ;;  %v437_v9 = vpack.c.bf16 %v428_v7, %v428_v7 }
  0x97   : > { %393 = vst.msk [vmem:[#allocation2] sm:$0xf] %vm392_vm2, %v389_v8 }
  0x98   : > { %441 = vst.msk [vmem:[#allocation2 + $0xc] sm:$0xf] %vm392_vm2, %v437_v9 }
  0x9b   : > { %v475_v14 = vpop.f32.mrf.mxu2  ;;  %v522_v30 = vpop.f32.mrf.mxu3 }
  0x9c   : > { %v382_v15 = vpop.f32.mrf.mxu0  ;;  %v430_v16 = vpop.f32.mrf.mxu1  ;;  %v484_v17 = vpack.c.bf16 %v475_v14, %v475_v14  ;;  %v531_v31 = vpack.c.bf16 %v522_v30, %v522_v30 }
  0x9d   : > { %v390_v18 = vpack.c.bf16 %v382_v15, %v382_v15  ;;  %v438_v19 = vpack.c.bf16 %v430_v16, %v430_v16  ;;  %v3568_v15 = vld [vmem:[%s4868_s3 + $0x2] sm:$0x3] }
  0x9e   : > { %488 = vst.msk [vmem:[#allocation2 + $0x18] sm:$0xf] %vm392_vm2, %v484_v17 }
  0x9f   : > { %394 = vst.msk [vmem:[#allocation2 + $0x4] sm:$0xf] %vm392_vm2, %v390_v18  ;;  %v3587_v18 = vld [vmem:[%s4868_s3 + $0xc] sm:$0x3] }
  0xa0   : > { %442 = vst.msk [vmem:[#allocation2 + $0x10] sm:$0xf] %vm392_vm2, %v438_v19  ;;  %v3585_v19 = vld [vmem:[%s4868_s3 + $0xa] sm:$0x3] }
  0xa1   : > { %535 = vst.msk [vmem:[#allocation2 + $0x24] sm:$0xf] %vm392_vm2, %v531_v31 }
  0xa3   : > { %v477_v20 = vpop.f32.mrf.mxu2  ;;  %v524_v7 = vpop.f32.mrf.mxu3 }
  0xa4   : > { %v385_v22 = vpop.f32.mrf.mxu0  ;;  %v433_v23 = vpop.f32.mrf.mxu1  ;;  %v485_v24 = vpack.c.bf16 %v477_v20, %v477_v20  ;;  %v532_v8 = vpack.c.bf16 %v524_v7, %v524_v7 }
  0xa5   : > { %v391_v25 = vpack.c.bf16 %v385_v22, %v385_v22  ;;  %v439_v26 = vpack.c.bf16 %v433_v23, %v433_v23  ;;  %v1169_v22 = vsel %vm367_vm0, %v3568_v15, 0 }
  0xa6   : > { %v4119_v27 = vld [vmem:[#allocation2] sm:$0xff]  ;;  %489 = vst.msk [vmem:[#allocation2 + $0x1c] sm:$0xf] %vm392_vm2, %v485_v24  ;;  %v1337_v24 = vsel %vm367_vm0, %v3587_v18, 0 }
  0xa7   : > { %396 = vst.msk [vmem:[#allocation2 + $0x8] sm:$0x1] %vm395_vm3, %v391_v25  ;;  %3543 = vmatmul.msk.bf16.vlgmr.msra.gmra.mxu3 %vm360_vm1, %v4119_v27  ;;  %v3819_v29 = vld [vmem:[#allocation2 + $0xc] sm:$0xff]  ;;  %v837_v37 = vshll.u32 %v4119_v27, 16  ;;  %v835_v48 = vshrl.u32 %v4119_v27, 16  ;;  %v888_v20 = vrot.slane %v4119_v27, 1 }
  0xa8   : > { %443 = vst.msk [vmem:[#allocation2 + $0x14] sm:$0x1] %vm395_vm3, %v439_v26  ;;  %1071 = vmatpush.bf16.msra.mxu3 %v1062_v28  ;;  %v952_v35 = vshll.u32 %v3819_v29, 16  ;;  %v950_v42 = vshrl.u32 %v3819_v29, 16  ;;  %v985_v47 = vrot.slane %v3819_v29, 1  ;;  %v1306_v25 = vsel %vm367_vm0, %v3585_v19, 0 }
  0xa9   : > { %v839_v45 = vrot.slane %v837_v37, 1  ;;  %536 = vst.msk [vmem:[#allocation2 + $0x28] sm:$0xf] %vm392_vm2, %v532_v8  ;;  %v3821_v37 = vld [vmem:[#allocation2 + $0xc] sm:$0xff] }
  0xaa   : > { %v954_v43 = vrot.slane %v952_v35, 1 }
  0xab   : > { %v480_v32 = vpop.f32.mrf.mxu2  ;;  %v840_v57 = vor.u32 %v839_v45, %v835_v48 }
  0xac   : > { %v387_v33 = vpop.f32.mrf.mxu0  ;;  %v486_v34 = vpack.c.bf16 %v480_v32, %v480_v32  ;;  %v435_v36 = vpop.f32.mrf.mxu1  ;;  %v955_v53 = vor.u32 %v954_v43, %v950_v42 }
  0xad   : > { %v4140_v59 = vld [vmem:[#allocation2 + $0x18] sm:$0xff] }
  0xae   : > { %490 = vst.msk [vmem:[#allocation2 + $0x20] sm:$0x1] %vm395_vm3, %v486_v34  ;;  %v821_v38 = vld [vmem:[#allocation2 + $0x8] sm:$0x1]  ;;  %v1049_v6 = vshll.u32 %v4140_v59, 16  ;;  %v1047_v9 = vshrl.u32 %v4140_v59, 16 }
  0xaf   : > { %v915_v39 = vld [vmem:[#allocation2 + $0x14] sm:$0x1]  ;;  %v830_v40 = vunpack.c.l.b16 %v821_v38  ;;  %v1082_v16 = vrot.slane %v4140_v59, 1  ;;  %v3583_v38 = vld [vmem:[%s4868_s3 + $0x8] sm:$0x3]  ;;  %v4193_v56 = vld [vmem:[#allocation2 + $0x18] sm:$0xff] }
  0xb0   : > { %v948_v41 = vunpack.c.l.b16 %v915_v39  ;;  %v1051_v10 = vrot.slane %v1049_v6, 1  ;;  %v1142_v28 = vld [vmem:[#allocation2 + $0x14] sm:$0x1]  ;;  %v1205_v39 = vrot.slane %v3821_v37, 1  ;;  %v1280_v42 = vsel %vm367_vm0, %v3583_v38, 0 }
  0xb1   : > { %v832_v44 = vpack.c.b16 %v830_v40, %v830_v40  ;;  %v1150_v34 = vunpack.c.l.b16 %v1142_v28 }
  0xb2   : > { %v949_v46 = vpack.c.b16 %v948_v41, %v948_v41  ;;  %v1052_v12 = vor.u32 %v1051_v10, %v1047_v9  ;;  %v3601_v41 = vld [vmem:[%s4868_s3 + $0x2] sm:$0x3]  ;;  %v4209_v10 = vld [vmem:[#allocation2 + $0x18] sm:$0xff] }
  0xb3   : > { %v842_v49 = vshll.u32 %v832_v44, 16  ;;  %v482_v50 = vpop.f32.mrf.mxu2  ;;  %v889_v14 = vrot.slane %v832_v44, 1  ;;  %v1152_v35 = vpack.c.b16 %v1150_v34, %v1150_v34  ;;  %v1480_v43 = vsel %vm367_vm0, %v3601_v41, 0 }
  0xb4   : > { %v986_v52 = vrot.slane %v949_v46, 1  ;;  %v957_v54 = vshll.u32 %v949_v46, 16  ;;  %v616_v27 = vpop.f32.mrf.mxu1  ;;  %v569_v32 = vpop.f32.mrf.mxu0  ;;  %v1156_v50 = vshll.u32 %v3821_v37, 16 }
  0xb5   : > { %v844_v58 = vrot.slane %v842_v49, 1  ;;  %v1012_v60 = vld [vmem:[#allocation2 + $0x20] sm:$0x1]  ;;  %v890_v23 = vsel %vm887_vm4, %v888_v20, %v889_v14  ;;  %v625_v30 = vpack.c.bf16 %v616_v27, %v616_v27  ;;  %v578_v33 = vpack.c.bf16 %v569_v32, %v569_v32 }
  0xb6   : > { %v987_v61 = vsel %vm887_vm4, %v985_v47, %v986_v52  ;;  %v959_v62 = vrot.slane %v957_v54, 1  ;;  %v1045_v0 = vunpack.c.l.b16 %v1012_v60  ;;  %v1206_v40 = vrot.slane %v1152_v35, 1  ;;  %v1232_v45 = vld [vmem:[#allocation2 + $0x20] sm:$0x1] }
  0xb7   : > { %3555 = vmatmul.msk.bf16.vlgmr.msrb.gmra.mxu1 %vm360_vm1, %v987_v61  ;;  %v845_v1 = vsel %vm833_vm5, %v840_v57, %v844_v58  ;;  %3551 = vmatmul.msk.bf16.vlgmr.msrb.gmra.mxu3 %vm360_vm1, %v3819_v29  ;;  %v527_v29 = vpop.f32.mrf.mxu3  ;;  %629 = vst.msk [vmem:[#allocation2 + $0x3c] sm:$0xf] %vm392_vm2, %v625_v30  ;;  %v1263_v51 = vunpack.c.l.b16 %v1232_v45  ;;  %v1154_v52 = vshrl.u32 %v3821_v37, 16  ;;  %v1161_v54 = vshll.u32 %v1152_v35, 16 }
  0xb8   : > { %3542 = vmatmul.msk.bf16.vlgmr.msra.gmra.mxu2 %vm360_vm1, %v845_v1  ;;  %v960_v4 = vsel %vm833_vm5, %v955_v53, %v959_v62  ;;  %v1046_v5 = vpack.c.b16 %v1045_v0, %v1045_v0  ;;  %1197 = vmatpush.bf16.msrb.mxu3 %v1188_v3  ;;  %v533_v31 = vpack.c.bf16 %v527_v29, %v527_v29  ;;  %v1158_v53 = vrot.slane %v1156_v50, 1  ;;  %v3595_v1 = vld [vmem:[%s4868_s3 + $0x10] sm:$0x3]  ;;  %v3616_v3 = vld [vmem:[%s4868_s3 + $0x8] sm:$0x3] }
  0xb9   : > { %3553 = vmatmul.msk.bf16.vlgmr.msrb.gmra.mxu0 %vm360_vm1, %v960_v4  ;;  %1033 = vmatpush.bf16.msra.mxu2 %v1024_v63  ;;  %582 = vst.msk [vmem:[#allocation2 + $0x30] sm:$0xf] %vm392_vm2, %v578_v33  ;;  %v1207_v44 = vsel %vm887_vm4, %v1205_v39, %v1206_v40  ;;  %v1264_v55 = vpack.c.b16 %v1263_v51, %v1263_v51  ;;  %v1163_v63 = vrot.slane %v1161_v54, 1  ;;  %v4203_v4 = vld [vmem:[#allocation2 + $0x24] sm:$0xff]  ;;  %v1400_v6 = vsel %vm367_vm0, %v3595_v1, 0 }
  0xba   : > { %1221 = vmatpush.bf16.msrb.mxu0 %v1212_v2  ;;  %v1054_v11 = vshll.u32 %v1046_v5, 16  ;;  %v1083_v17 = vrot.slane %v1046_v5, 1  ;;  %537 = vst.msk [vmem:[#allocation2 + $0x2c] sm:$0x1] %vm395_vm3, %v533_v31  ;;  %v1159_v62 = vor.u32 %v1158_v53, %v1154_v52  ;;  %v1453_v5 = vld [vmem:[#allocation2 + $0x20] sm:$0x1] }
  0xbb   : > { %v1300_v0 = vrot.slane %v1264_v55, 1  ;;  %v663_v14 = vpop.f32.mrf.mxu2  ;;  %v1267_v20 = vshll.u32 %v4193_v56, 16  ;;  %v1265_v29 = vshrl.u32 %v4193_v56, 16  ;;  %v1272_v31 = vshll.u32 %v1264_v55, 16  ;;  %v4241_v50 = vld [vmem:[#allocation2 + $0x24] sm:$0xff] }
  0xbc   : > { %v1056_v13 = vrot.slane %v1054_v11, 1  ;;  %v1084_v26 = vsel %vm887_vm4, %v1082_v16, %v1083_v17  ;;  %v618_v46 = vpop.f32.mrf.mxu1  ;;  %v571_v47 = vpop.f32.mrf.mxu0  ;;  %v1164_v8 = vsel %vm833_vm5, %v1159_v62, %v1163_v63  ;;  %v1591_v11 = vsel %vm367_vm0, %v3616_v3, 0 }
  0xbd   : > { %v626_v48 = vpack.c.bf16 %v618_v46, %v618_v46  ;;  %v579_v49 = vpack.c.bf16 %v571_v47, %v571_v47  ;;  %v672_v17 = vpack.c.bf16 %v663_v14, %v663_v14  ;;  %v1269_v30 = vrot.slane %v1267_v20, 1 }
  0xbe   : > { %v1057_v21 = vsel %vm833_vm5, %v1052_v12, %v1056_v13  ;;  %v1461_v12 = vunpack.c.l.b16 %v1453_v5  ;;  %v1361_v13 = vshll.u32 %v4203_v4, 16  ;;  %v1465_v32 = vshrl.u32 %v4209_v10, 16 }
  0xbf   : > { %v529_v36 = vpop.f32.mrf.mxu3  ;;  %630 = vst.msk [vmem:[#allocation2 + $0x40] sm:$0xf] %vm392_vm2, %v626_v48  ;;  %v1270_v39 = vor.u32 %v1269_v30, %v1265_v29  ;;  %v1274_v40 = vrot.slane %v1272_v31, 1  ;;  %v3628_v48 = vld [vmem:[%s4868_s3 + $0x10] sm:$0x3]  ;;  %v1576_v3 = vshrl.u32 %v4241_v50, 16 }
  0xc0   : > { %583 = vst.msk [vmem:[#allocation2 + $0x34] sm:$0xf] %vm392_vm2, %v579_v49  ;;  %v1711_v55 = vsel %vm367_vm0, %v3628_v48, 0 }
  0xc1   : > { %v1326_v2 = vld [vmem:[#allocation2 + $0x2c] sm:$0x1]  ;;  %676 = vst.msk [vmem:[#allocation2 + $0x48] sm:$0xf] %vm392_vm2, %v672_v17  ;;  %v1275_v54 = vsel %vm833_vm5, %v1270_v39, %v1274_v40  ;;  %v1516_v40 = vrot.slane %v4209_v10, 1 }
  0xc2   : > { %v1357_v7 = vunpack.c.l.b16 %v1326_v2  ;;  %v1543_v41 = vld [vmem:[#allocation2 + $0x2c] sm:$0x1] }
  0xc3   : > { %v665_v36 = vpop.f32.mrf.mxu2  ;;  %v1574_v51 = vunpack.c.l.b16 %v1543_v41 }
  0xc4   : > { %v621_v57 = vpop.f32.mrf.mxu1  ;;  %v574_v58 = vpop.f32.mrf.mxu0  ;;  %v4217_v16 = vpack.c.b16 %v1357_v7, %v1357_v7 }
  0xc5   : > { %v627_v60 = vpack.c.bf16 %v621_v57, %v621_v57  ;;  %v580_v61 = vpack.c.bf16 %v574_v58, %v574_v58 }
  0xc7   : > { %3563 = vmatmul.msk.bf16.vlgmr.msra.gmra.mxu3 %vm360_vm1, %v1057_v21  ;;  %631 = vst.msk [vmem:[#allocation2 + $0x44] sm:$0x1] %vm395_vm3, %v627_v60  ;;  %v710_v18 = vpop.f32.mrf.mxu3  ;;  %v1467_v21 = vshll.u32 %v4209_v10, 16  ;;  %v1578_v60 = vshll.u32 %v4241_v50, 16 }
  0xc8   : > { %3545 = vmatmul.msk.bf16.vlgmr.msrb.gmra.mxu2 %vm360_vm1, %v890_v23  ;;  %1315 = vmatpush.bf16.msra.mxu3 %v1306_v25  ;;  %584 = vst.msk [vmem:[#allocation2 + $0x38] sm:$0x1] %vm395_vm3, %v580_v61  ;;  %v4221_v23 = vpack.c.b16 %v1461_v12, %v1461_v12  ;;  %v1363_v25 = vrot.slane %v1361_v13, 1 }
  0xc9   : > { %3565 = vmatmul.msk.bf16.vlgmr.msra.gmra.mxu0 %vm360_vm1, %v1084_v26  ;;  %1178 = vmatpush.bf16.msrb.mxu2 %v1169_v22  ;;  %v719_v22 = vpack.c.bf16 %v710_v18, %v710_v18  ;;  %v1366_v26 = vshll.u32 %v4217_v16, 16  ;;  %v1469_v33 = vrot.slane %v1467_v21, 1  ;;  %v1580_v5 = vrot.slane %v1578_v60, 1  ;;  %v3641_v18 = vld [vmem:[%s4868_s3 + $0x4] sm:$0x3] }
  0xca   : > { %1346 = vmatpush.bf16.msra.mxu0 %v1337_v24  ;;  %v1359_v24 = vshrl.u32 %v4203_v4, 16  ;;  %v1472_v34 = vshll.u32 %v4221_v23, 16  ;;  %v1517_v41 = vrot.slane %v4221_v23, 1 }
  0xcb   : > { %723 = vst.msk [vmem:[#allocation2 + $0x54] sm:$0xf] %vm392_vm2, %v719_v22  ;;  %v1368_v27 = vrot.slane %v1366_v26, 1  ;;  %v1470_v45 = vor.u32 %v1469_v33, %v1465_v32  ;;  %v668_v58 = vpop.f32.mrf.mxu2  ;;  %v1581_v12 = vor.u32 %v1580_v5, %v1576_v3  ;;  %v3649_v5 = vld [vmem:[%s4868_s3 + $0x8] sm:$0x3] }
  0xcc   : > { %v623_v15 = vpop.f32.mrf.mxu1  ;;  %v576_v19 = vpop.f32.mrf.mxu0  ;;  %v1364_v28 = vor.u32 %v1363_v25, %v1359_v24  ;;  %v1474_v46 = vrot.slane %v1472_v34, 1  ;;  %v674_v61 = vpack.c.bf16 %v668_v58, %v668_v58  ;;  %v1834_v25 = vsel %vm367_vm0, %v3641_v18, 0 }
  0xcd   : > { %v3620_v15 = vld [vmem:[%s4868_s3 + $0xc] sm:$0x3]  ;;  %v1518_v23 = vsel %vm887_vm4, %v1516_v40, %v1517_v41 }
  0xce   : > { %v4231_v35 = vsel %vm833_vm5, %v1364_v28, %v1368_v27  ;;  %v1475_v57 = vsel %vm833_vm5, %v1470_v45, %v1474_v46  ;;  %678 = vst.msk [vmem:[#allocation2 + $0x50] sm:$0x1] %vm395_vm3, %v674_v61  ;;  %v3826_v28 = vld [vmem:[#allocation2 + $0x30] sm:$0xff]  ;;  %v1948_v32 = vld [vmem:[#allocation2 + $0x44] sm:$0x1] }
  0xcf   : > { %v712_v38 = vpop.f32.mrf.mxu3  ;;  %v1637_v22 = vld [vmem:[#allocation2 + $0x38] sm:$0x1]  ;;  %v1672_v29 = vshll.u32 %v3826_v28, 16  ;;  %v1979_v33 = vunpack.c.l.b16 %v1948_v32  ;;  %v1670_v34 = vshrl.u32 %v3826_v28, 16 }
  0xd0   : > { %v1668_v26 = vunpack.c.l.b16 %v1637_v22 }
  0xd1   : > { %v4286_v45 = vpack.c.b16 %v1979_v33, %v1979_v33 }
  0xd2   : > { %v1669_v30 = vpack.c.b16 %v1668_v26, %v1668_v26  ;;  %v4334_v26 = vld [vmem:[#allocation2 + $0x30] sm:$0xff] }
  0xd3   : > { %v1889_v33 = vshll.u32 %v4334_v26, 16 }
  0xd4   : > { %v756_v49 = vpop.f32.mrf.mxu0  ;;  %v1677_v39 = vshll.u32 %v1669_v30, 16 }
  0xd5   : > { %v765_v52 = vpack.c.bf16 %v756_v49, %v756_v49 }
  0xd6   : > { %v1679_v49 = vrot.slane %v1677_v39, 1 }
  0xd7   : > { %3574 = vmatmul.msk.bf16.vlgmr.msrb.gmra.mxu3 %vm360_vm1, %v3821_v37  ;;  %v673_v37 = vpack.c.bf16 %v665_v36, %v665_v36  ;;  %769 = vst.msk [vmem:[#allocation2 + $0x60] sm:$0xf] %vm392_vm2, %v765_v52  ;;  %v715_v62 = vpop.f32.mrf.mxu3  ;;  %v1674_v36 = vrot.slane %v1672_v29, 1  ;;  %v1764_v52 = vld [vmem:[#allocation2 + $0x2c] sm:$0x1]  ;;  %v4338_v29 = vld [vmem:[#allocation2 + $0x30] sm:$0xff] }
  0xd8   : > { %3561 = vmatmul.msk.bf16.vlgmr.msra.gmra.mxu2 %vm360_vm1, %v4140_v59  ;;  %v1299_v59 = vrot.slane %v4193_v56, 1  ;;  %v721_v63 = vpack.c.bf16 %v715_v62, %v715_v62  ;;  %v1772_v61 = vunpack.c.l.b16 %v1764_v52  ;;  %v2087_v40 = vshrl.u32 %v4338_v29, 16 }
  0xd9   : > { %3576 = vmatmul.msk.bf16.vlgmr.msrb.gmra.mxu0 %vm360_vm1, %v1207_v44  ;;  %1289 = vmatpush.bf16.msra.mxu2 %v1280_v42  ;;  %v720_v42 = vpack.c.bf16 %v712_v38, %v712_v38  ;;  %v3608_v44 = vld [vmem:[%s4868_s3 + $0x4] sm:$0x3]  ;;  %677 = vst.msk [vmem:[#allocation2 + $0x4c] sm:$0xf] %vm392_vm2, %v673_v37  ;;  %v1704_v37 = vrot.slane %v3826_v28, 1  ;;  %v1705_v38 = vrot.slane %v1669_v30, 1  ;;  %v1675_v46 = vor.u32 %v1674_v36, %v1670_v34 }
  0xda   : > { %1489 = vmatpush.bf16.msrb.mxu0 %v1480_v43  ;;  %v1301_v9 = vsel %vm887_vm4, %v1299_v59, %v1300_v0  ;;  %v803_v43 = vpop.f32.mrf.mxu1  ;;  %v1523_v53 = vsel %vm367_vm0, %v3608_v44, 0  ;;  %v4251_v59 = vpack.c.b16 %v1574_v51, %v1574_v51  ;;  %725 = vst.msk [vmem:[#allocation2 + $0x5c] sm:$0x1] %vm395_vm3, %v721_v63  ;;  %v4284_v44 = vld [vmem:[#allocation2 + $0x3c] sm:$0xff]  ;;  %v2089_v36 = vshll.u32 %v4338_v29, 16 }
  0xdb   : > { %v812_v47 = vpack.c.bf16 %v803_v43, %v803_v43  ;;  %724 = vst.msk [vmem:[#allocation2 + $0x58] sm:$0xf] %vm392_vm2, %v720_v42  ;;  %v3634_v42 = vld [vmem:[%s4868_s3 + $0x2] sm:$0x3]  ;;  %v3653_v43 = vld [vmem:[%s4868_s3 + $0xc] sm:$0x3] }
  0xdc   : > { %v758_v2 = vpop.f32.mrf.mxu0  ;;  %v1791_v48 = vsel %vm367_vm0, %v3634_v42, 0  ;;  %v1959_v51 = vsel %vm367_vm0, %v3653_v43, 0  ;;  %v2091_v41 = vrot.slane %v2089_v36, 1 }
  0xdd   : > { %816 = vst.msk [vmem:[#allocation2 + $0x6c] sm:$0xf] %vm392_vm2, %v812_v47  ;;  %v766_v7 = vpack.c.bf16 %v758_v2, %v758_v2  ;;  %v1706_v47 = vsel %vm887_vm4, %v1704_v37, %v1705_v38  ;;  %v1887_v37 = vshrl.u32 %v4334_v26, 16  ;;  %v1891_v38 = vrot.slane %v1889_v33, 1 }
  0xde   : > { %v2092_v52 = vor.u32 %v2091_v41, %v2087_v40 }
  0xdf   : > { %770 = vst.msk [vmem:[#allocation2 + $0x64] sm:$0xf] %vm392_vm2, %v766_v7  ;;  %v717_v14 = vpop.f32.mrf.mxu3  ;;  %v1902_v7 = vsel %vm367_vm0, %v3649_v5, 0 }
  0xe2   : > { %v805_v0 = vpop.f32.mrf.mxu1 }
  0xe3   : > { %v813_v1 = vpack.c.bf16 %v805_v0, %v805_v0  ;;  %v1774_v0 = vpack.c.b16 %v1772_v61, %v1772_v61 }
  0xe4   : > { %v761_v21 = vpop.f32.mrf.mxu0 }
  0xe5   : > { %817 = vst.msk [vmem:[#allocation2 + $0x70] sm:$0xf] %vm392_vm2, %v813_v1  ;;  %v767_v24 = vpack.c.bf16 %v761_v21, %v761_v21  ;;  %v4303_v1 = vld [vmem:[#allocation2 + $0x24] sm:$0xff]  ;;  %v1828_v3 = vrot.slane %v1774_v0, 1 }
  0xe6   : > { %v1827_v2 = vrot.slane %v4303_v1, 1  ;;  %v1776_v14 = vshrl.u32 %v4303_v1, 16  ;;  %v3682_v21 = vld [vmem:[%s4868_s3 + $0x8] sm:$0x3] }
  0xe7   : > { %3586 = vmatmul.msk.bf16.vlgmr.msra.gmra.mxu3 %vm360_vm1, %v1301_v9  ;;  %v1394_v9 = vrot.slane %v4217_v16, 1  ;;  %v1648_v16 = vsel %vm367_vm0, %v3620_v15, 0  ;;  %771 = vst.msk [vmem:[#allocation2 + $0x68] sm:$0x1] %vm395_vm3, %v767_v24 }
  0xe8   : > { %3573 = vmatmul.msk.bf16.vlgmr.msrb.gmra.mxu2 %vm360_vm1, %v1164_v8  ;;  %v1393_v8 = vrot.slane %v4203_v4, 1 }
  0xe9   : > { %3592 = vmatmul.msk.bf16.vlgmr.msra.gmra.mxu0 %vm360_vm1, %v4203_v4  ;;  %1409 = vmatpush.bf16.msrb.mxu2 %v1400_v6  ;;  %v1583_v6 = vshll.u32 %v4251_v59, 16 }
  0xea   : > { %1600 = vmatpush.bf16.msra.mxu0 %v1591_v11  ;;  %v670_v11 = vpop.f32.mrf.mxu2  ;;  %v808_v17 = vpop.f32.mrf.mxu1  ;;  %v1395_v19 = vsel %vm887_vm4, %v1393_v8, %v1394_v9  ;;  %v1829_v9 = vsel %vm887_vm4, %v1827_v2, %v1828_v3  ;;  %v4367_v2 = vld [vmem:[#allocation2 + $0x3c] sm:$0xff] }
  0xeb   : > { %v1585_v13 = vrot.slane %v1583_v6, 1  ;;  %v814_v20 = vpack.c.bf16 %v808_v17, %v808_v17  ;;  %v3667_v6 = vld [vmem:[%s4868_s3 + $0x2] sm:$0x3]  ;;  %v1778_v11 = vshll.u32 %v4303_v1, 16  ;;  %v1783_v17 = vshll.u32 %v1774_v0, 16 }
  0xec   : > { %v763_v31 = vpop.f32.mrf.mxu0  ;;  %v2102_v8 = vsel %vm367_vm0, %v3667_v6, 0 }
  0xed   : > { %v1586_v4 = vsel %vm833_vm5, %v1581_v12, %v1585_v13  ;;  %818 = vst.msk [vmem:[#allocation2 + $0x74] sm:$0x1] %vm395_vm3, %v814_v20  ;;  %v4321_v13 = vld [vmem:[%s4869_s4] sm:$0xff]  ;;  %v1780_v15 = vrot.slane %v1778_v11, 1  ;;  %v1854_v20 = vld [vmem:[#allocation2 + $0x38] sm:$0x1] }
  0xee   : > { %1130 = vmatpush.msra.mxu1 %v4321_v13  ;;  %1440 = vmatpush.msrb.mxu3 %v4321_v13 }
  0xef   : > { %v1781_v18 = vor.u32 %v1780_v15, %v1776_v14  ;;  %v2198_v15 = vshrl.u32 %v4367_v2, 16 }
  0xf2   : > { %v810_v27 = vpop.f32.mrf.mxu1 }
  0xf3   : > { %v2213_v27 = vsel %vm367_vm0, %v3682_v21, 0  ;;  %v2016_v21 = vrot.slane %v4286_v45, 1 }
  0xf8   : > { %3584 = vmatmul.msk.bf16.vlgmr.msra.gmra.mxu2 %vm360_vm1, %v1275_v54  ;;  %v1981_v54 = vshrl.u32 %v4284_v44, 16 }
  0xf9   : > { %3606 = vmatmul.msk.bf16.vlgmr.msrb.gmra.mxu0 %vm360_vm1, %v1475_v57  ;;  %1532 = vmatpush.bf16.msra.mxu2 %v1523_v53  ;;  %v4295_v53 = vsel %vm833_vm5, %v1675_v46, %v1679_v49  ;;  %v1988_v57 = vshll.u32 %v4286_v45, 16  ;;  %v3577_v46 = vld [vmem:[%s4868_s3 + $0x6] sm:$0x3]  ;;  %v1892_v49 = vor.u32 %v1891_v38, %v1887_v37  ;;  %v2259_v38 = vld [vmem:[#allocation2 + $0x50] sm:$0x1] }
  0xfa   : > { %1720 = vmatpush.bf16.msrb.mxu0 %v1711_v55  ;;  %v1983_v55 = vshll.u32 %v4284_v44, 16 }
  0xfb   : > { %v1990_v60 = vrot.slane %v1988_v57, 1  ;;  %v3694_v57 = vld [vmem:[%s4868_s3 + $0x10] sm:$0x3] }
  0xfc   : > { %v1985_v58 = vrot.slane %v1983_v55, 1  ;;  %v3674_v55 = vld [vmem:[%s4868_s3 + $0x4] sm:$0x3] }
  0xfe   : > { %v1986_v62 = vor.u32 %v1985_v58, %v1981_v54  ;;  %v2165_v58 = vld [vmem:[#allocation2 + $0x44] sm:$0x1] }
  0xff   : > { %v2196_v3 = vunpack.c.l.b16 %v2165_v58  ;;  %v4396_v58 = vld [vmem:[#allocation2 + $0x48] sm:$0xff] }
 0x100   : > { %v4301_v63 = vsel %vm833_vm5, %v1986_v62, %v1990_v60  ;;  %v2145_v60 = vsel %vm367_vm0, %v3674_v55, 0  ;;  %v2333_v62 = vsel %vm367_vm0, %v3694_v57, 0 }
 0x108   : > { %3596 = vmatmul.msk.bf16.vlgmr.msrb.gmra.mxu2 %vm360_vm1, %v1395_v19  ;;  %v1785_v19 = vrot.slane %v1783_v17, 1 }
 0x109   : > { %3617 = vmatmul.msk.bf16.vlgmr.msra.gmra.mxu0 %vm360_vm1, %v1586_v4  ;;  %1657 = vmatpush.bf16.msrb.mxu2 %v1648_v16  ;;  %v3661_v4 = vld [vmem:[%s4868_s3 + $0x10] sm:$0x3]  ;;  %v2075_v16 = vld [vmem:[#allocation2 + $0x38] sm:$0x1] }
 0x10a   : > { %1843 = vmatpush.bf16.msra.mxu0 %v1834_v25  ;;  %v2022_v22 = vsel %vm367_vm0, %v3661_v4, 0  ;;  %v1786_v25 = vsel %vm833_vm5, %v1781_v18, %v1785_v19  ;;  %v2083_v30 = vunpack.c.l.b16 %v2075_v16  ;;  %v2015_v4 = vrot.slane %v4284_v44, 1 }
 0x10c   : > { %v4345_v34 = vpack.c.b16 %v2083_v30, %v2083_v30  ;;  %v2017_v45 = vsel %vm887_vm4, %v2015_v4, %v2016_v21 }
 0x10e   : > { %v2094_v42 = vshll.u32 %v4345_v34, 16 }
 0x110   : > { %v2096_v54 = vrot.slane %v2094_v42, 1 }
 0x112   : > { %v2097_v0 = vsel %vm833_vm5, %v2092_v52, %v2096_v54 }
 0x118   : > { %3609 = vmatmul.msk.bf16.vlgmr.msra.gmra.mxu2 %vm360_vm1, %v1518_v23 }
 0x119   : > { %3629 = vmatmul.msk.bf16.vlgmr.msrb.gmra.mxu0 %vm360_vm1, %v1706_v47  ;;  %1800 = vmatpush.bf16.msra.mxu2 %v1791_v48 }
 0x11a   : > { %1968 = vmatpush.bf16.msrb.mxu0 %v1959_v51  ;;  %v1243_v51 = vsel %vm367_vm0, %v3577_v46, 0  ;;  %v3593_v46 = vld [vmem:[%s4868_s3 + $0xe] sm:$0x3] }
 0x11b   : > { %1252 = vmatpush.bf16.msrb.mxu1 %v1243_v51  ;;  %v1374_v52 = vsel %vm367_vm0, %v3593_v46, 0 }
 0x128   : > { %3625 = vmatmul.msk.bf16.vlgmr.msrb.gmra.mxu2 %vm360_vm1, %v3826_v28  ;;  %v1885_v28 = vunpack.c.l.b16 %v1854_v20 }
 0x129   : > { %3642 = vmatmul.msk.bf16.vlgmr.msra.gmra.mxu0 %vm360_vm1, %v1829_v9  ;;  %1911 = vmatpush.bf16.msrb.mxu2 %v1902_v7  ;;  %v2200_v9 = vshll.u32 %v4367_v2, 16 }
 0x12a   : > { %2111 = vmatpush.bf16.msra.mxu0 %v2102_v8  ;;  %v880_v12 = vpop.f32.mrf.mxu3  ;;  %v4342_v32 = vpack.c.b16 %v1885_v28, %v1885_v28  ;;  %v4370_v8 = vpack.c.b16 %v2196_v3, %v2196_v3  ;;  %v3707_v28 = vld [vmem:[%s4868_s3 + $0x4] sm:$0x3]  ;;  %v2326_v3 = vrot.slane %v4396_v58, 1 }
 0x12b   : > { %v2202_v17 = vrot.slane %v2200_v9, 1 }
 0x12c   : > { %v1894_v39 = vshll.u32 %v4342_v32, 16  ;;  %v2205_v18 = vshll.u32 %v4370_v8, 16 }
 0x12e   : > { %v1896_v23 = vrot.slane %v1894_v39, 1 }
 0x130   : > { %v1897_v61 = vsel %vm833_vm5, %v1892_v49, %v1896_v23 }
 0x132   : > { %v882_v24 = vpop.f32.mrf.mxu3 }
 0x134   : > { %v1003_v36 = vpop.f32.mrf.mxu1 }
 0x136   : > { %v976_v47 = vpop.f32.mrf.mxu0 }
 0x138   : > { %3639 = vmatmul.msk.bf16.vlgmr.msra.gmra.mxu2 %vm360_vm1, %v1786_v25  ;;  %v3686_v25 = vld [vmem:[%s4868_s3 + $0xc] sm:$0x3] }
 0x139   : > { %3658 = vmatmul.msk.bf16.vlgmr.msrb.gmra.mxu0 %vm360_vm1, %v4284_v44  ;;  %2031 = vmatpush.bf16.msra.mxu2 %v2022_v22  ;;  %v2203_v22 = vor.u32 %v2202_v17, %v2198_v15  ;;  %v2270_v33 = vsel %vm367_vm0, %v3686_v25, 0 }
 0x13a   : > { %2222 = vmatpush.bf16.msrb.mxu0 %v2213_v27  ;;  %v938_v43 = vpop.f32.mrf.mxu3 }
 0x13b   : > { %v861_v31 = vpop.f32.mrf.mxu2 }
 0x13c   : > { %v881_v7 = vadd.f32 %v880_v12, %v861_v31  ;;  %v2207_v12 = vrot.slane %v2205_v18, 1  ;;  %v1005_v54 = vpop.f32.mrf.mxu1 }
 0x13e   : > { %v978_v11 = vpop.f32.mrf.mxu0  ;;  %v2208_v37 = vsel %vm833_vm5, %v2203_v22, %v2207_v12  ;;  %v1454_v22 = vld [vmem:[%s4868_s3] sm:$0x3] }
 0x142   : > { %v940_v5 = vpop.f32.mrf.mxu3 }
 0x143   : > { %v863_v48 = vpop.f32.mrf.mxu2 }
 0x144   : > { %v883_v16 = vadd.f32 %v882_v24, %v863_v48  ;;  %v2456_v24 = vsel %vm367_vm0, %v3707_v28, 0  ;;  %v1499_v28 = vsel %vm367_vm0, %v1454_v22, 0 }
 0x146   : > { %v1100_v44 = vpop.f32.mrf.mxu0 }
 0x148   : > { %3650 = vmatmul.msk.bf16.vlgmr.msrb.gmra.mxu2 %vm360_vm1, %v1897_v61  ;;  %v2138_v61 = vrot.slane %v4338_v29, 1 }
 0x149   : > { %3672 = vmatmul.msk.bf16.vlgmr.msra.gmra.mxu0 %vm360_vm1, %v2097_v0  ;;  %2154 = vmatpush.bf16.msrb.mxu2 %v2145_v60 }
 0x14a   : > { %2342 = vmatpush.bf16.msra.mxu0 %v2333_v62  ;;  %v1073_v27 = vpop.f32.mrf.mxu3  ;;  %v2139_v62 = vrot.slane %v4345_v34, 1 }
 0x14b   : > { %v906_v6 = vpop.f32.mrf.mxu2 }
 0x14c   : > { %v911_v14 = vadd.f32 %v906_v6, %v881_v7  ;;  %v3700_v6 = vld [vmem:[%s4868_s3 + $0x2] sm:$0x3]  ;;  %v3719_v7 = vld [vmem:[%s4868_s3 + $0xc] sm:$0x3] }
 0x14d   : > { %v2581_v34 = vsel %vm367_vm0, %v3719_v7, 0 }
 0x14e   : > { %v943_v19 = vadd.f32 %v938_v43, %v911_v14  ;;  %v2290_v43 = vunpack.c.l.b16 %v2259_v38  ;;  %v1102_v55 = vpop.f32.mrf.mxu0  ;;  %v2140_v14 = vsel %vm887_vm4, %v2138_v61, %v2139_v62  ;;  %v4456_v62 = vld [vmem:[#allocation2 + $0x54] sm:$0xff] }
 0x150   : > { %v981_v31 = vadd.f32 %v976_v47, %v943_v19  ;;  %v4392_v51 = vpack.c.b16 %v2290_v43, %v2290_v43  ;;  %v2386_v19 = vld [vmem:[#allocation2 + $0x44] sm:$0x1] }
 0x152   : > { %v1008_v40 = vadd.f32 %v1003_v36, %v981_v31  ;;  %v1075_v49 = vpop.f32.mrf.mxu3 }
 0x153   : > { %v908_v20 = vpop.f32.mrf.mxu2 }
 0x154   : > { %v912_v30 = vadd.f32 %v908_v20, %v883_v16  ;;  %v2394_v16 = vunpack.c.l.b16 %v2386_v19 }
 0x156   : > { %v944_v39 = vadd.f32 %v940_v5, %v912_v30  ;;  %v2327_v5 = vrot.slane %v4392_v51, 1  ;;  %v1223_v20 = vpop.f32.mrf.mxu0  ;;  %v2396_v25 = vpack.c.b16 %v2394_v16, %v2394_v16 }
 0x158   : > { %3662 = vmatmul.msk.bf16.vlgmr.msra.gmra.mxu2 %vm360_vm1, %v2017_v45  ;;  %v982_v48 = vadd.f32 %v978_v11, %v944_v39  ;;  %v2413_v11 = vsel %vm367_vm0, %v3700_v6, 0  ;;  %v2328_v15 = vsel %vm887_vm4, %v2326_v3, %v2327_v5  ;;  %v3715_v45 = vld [vmem:[%s4868_s3 + $0x8] sm:$0x3] }
 0x159   : > { %3683 = vmatmul.msk.bf16.vlgmr.msrb.gmra.mxu0 %vm360_vm1, %v2208_v37  ;;  %2279 = vmatpush.bf16.msra.mxu2 %v2270_v33  ;;  %v4462_v5 = vld [vmem:[#allocation2 + $0x48] sm:$0xff] }
 0x15a   : > { %2465 = vmatpush.bf16.msrb.mxu0 %v2456_v24  ;;  %v1009_v57 = vadd.f32 %v1005_v54, %v982_v48  ;;  %v1199_v18 = vpop.f32.mrf.mxu3  ;;  %v3733_v24 = vld [vmem:[%s4868_s3 + $0x2] sm:$0x3]  ;;  %v3727_v54 = vld [vmem:[%s4868_s3 + $0x10] sm:$0x3] }
 0x15b   : > { %v1035_v41 = vpop.f32.mrf.mxu2  ;;  %v2724_v39 = vsel %vm367_vm0, %v3733_v24, 0  ;;  %v4492_v24 = vld [vmem:[#allocation2 + $0x54] sm:$0xff] }
 0x15c   : > { %v1040_v42 = vadd.f32 %v1035_v41, %v1008_v40 }
 0x15e   : > { %v1078_v47 = vadd.f32 %v1073_v27, %v1040_v42  ;;  %v4423_v27 = vld [vmem:[#allocation2 + $0x3c] sm:$0xff]  ;;  %v1225_v37 = vpop.f32.mrf.mxu0  ;;  %v3618_v42 = vld [vmem:[%s4868_s3 + $0xa] sm:$0x3] }
 0x15f   : > { %v2449_v36 = vrot.slane %v4423_v27, 1  ;;  %v2400_v41 = vshll.u32 %v4423_v27, 16  ;;  %v2398_v43 = vshrl.u32 %v4423_v27, 16  ;;  %v1617_v48 = vsel %vm367_vm0, %v3618_v42, 0 }
 0x160   : > { %v1105_v23 = vadd.f32 %v1100_v44, %v1078_v47  ;;  %v2450_v44 = vrot.slane %v2396_v25, 1  ;;  %v2405_v47 = vshll.u32 %v2396_v25, 16  ;;  %v1610_v42 = vrot.slane %v4241_v50, 1 }
 0x161   : > { %v2402_v46 = vrot.slane %v2400_v41, 1 }
 0x162   : > { %3566 = vmatmul.msk.f32.vlgmr.msra.gmra.mxu1 %vm1108_vm6, %v1105_v23  ;;  %v1201_v30 = vpop.f32.mrf.mxu3  ;;  %v2451_v40 = vsel %vm887_vm4, %v2449_v36, %v2450_v44  ;;  %v2407_v23 = vrot.slane %v2405_v47, 1 }
 0x163   : > { %v1037_v60 = vpop.f32.mrf.mxu2  ;;  %1383 = vmatpush.bf16.msra.mxu1 %v1374_v52  ;;  %v2476_v52 = vld [vmem:[#allocation2 + $0x50] sm:$0x1] }
 0x164   : > { %v1041_v0 = vadd.f32 %v1037_v60, %v1009_v57  ;;  %v2697_v57 = vld [vmem:[#allocation2 + $0x50] sm:$0x1]  ;;  %v2644_v60 = vsel %vm367_vm0, %v3727_v54, 0  ;;  %v2637_v54 = vrot.slane %v4456_v62, 1 }
 0x165   : > { %v2705_v6 = vunpack.c.l.b16 %v2697_v57 }
 0x166   : > { %v1079_v9 = vadd.f32 %v1075_v49, %v1041_v0  ;;  %v2403_v49 = vor.u32 %v2402_v46, %v2398_v43  ;;  %v2507_v0 = vunpack.c.l.b16 %v2476_v52  ;;  %v1611_v43 = vrot.slane %v4251_v59, 1  ;;  %v3752_v59 = vld [vmem:[%s4868_s3 + $0xc] sm:$0x3] }
 0x168   : > { %3675 = vmatmul.msk.bf16.vlgmr.msrb.gmra.mxu2 %vm360_vm1, %v2140_v14  ;;  %v1106_v17 = vadd.f32 %v1102_v55, %v1079_v9  ;;  %v3748_v55 = vld [vmem:[%s4868_s3 + $0x8] sm:$0x3]  ;;  %v2408_v61 = vsel %vm833_vm5, %v2403_v49, %v2407_v23  ;;  %v4466_v7 = vpack.c.b16 %v2507_v0, %v2507_v0  ;;  %v2711_v14 = vshll.u32 %v4462_v5, 16 }
 0x169   : > { %3695 = vmatmul.msk.bf16.vlgmr.msra.gmra.mxu0 %vm360_vm1, %v2328_v15  ;;  %2422 = vmatpush.bf16.msrb.mxu2 %v2413_v11  ;;  %v2835_v3 = vsel %vm367_vm0, %v3748_v55, 0  ;;  %v4469_v11 = vpack.c.b16 %v2705_v6, %v2705_v6  ;;  %v1612_v52 = vsel %vm887_vm4, %v1610_v42, %v1611_v43  ;;  %v2892_v0 = vsel %vm367_vm0, %v3752_v59, 0  ;;  %v4556_v42 = vld [vmem:[#allocation2 + $0x54] sm:$0xff] }
 0x16a   : > { %3567 = vmatmul.msk.f32.gmra.mxu1 %vm1108_vm6, %v1106_v17  ;;  %2590 = vmatpush.bf16.msra.mxu0 %v2581_v34  ;;  %v2516_v17 = vshll.u32 %v4466_v7, 16  ;;  %v2713_v19 = vrot.slane %v2711_v14, 1  ;;  %v3071_v43 = vrot.slane %v4556_v42, 1  ;;  %v3020_v59 = vshrl.u32 %v4556_v42, 16 }
 0x16b   : > { %v1180_v4 = vpop.f32.mrf.mxu2 }
 0x16c   : > { %v1200_v21 = vadd.f32 %v1199_v18, %v1180_v4  ;;  %v2709_v18 = vshrl.u32 %v4462_v5, 16  ;;  %v4478_v4 = vpop.f32.mrf.mxu0  ;;  %v2518_v16 = vrot.slane %v2516_v17, 1 }
 0x16e   : > { %v4418_v12 = vadd.f32 %v1223_v20, %v1200_v21  ;;  %v2716_v20 = vshll.u32 %v4469_v11, 16  ;;  %v2714_v22 = vor.u32 %v2713_v19, %v2709_v18 }
 0x170   : > { %v2718_v25 = vrot.slane %v2716_v20, 1 }
 0x172   : > { %3582 = vmatmul.msk.bf16.vlgmr.msrb.gmra.mxu1 %vm360_vm1, %v4193_v56  ;;  %v2524_v56 = vsel %vm367_vm0, %v3715_v45, 0  ;;  %v2719_v44 = vsel %vm833_vm5, %v2714_v22, %v2718_v25  ;;  %v2570_v45 = vld [vmem:[#allocation2 + $0x5c] sm:$0x1]  ;;  %v2761_v22 = vrot.slane %v4469_v11, 1 }
 0x173   : > { %v1182_v31 = vpop.f32.mrf.mxu2  ;;  %1508 = vmatpush.bf16.msrb.mxu1 %v1499_v28  ;;  %v3740_v28 = vld [vmem:[%s4868_s3 + $0x4] sm:$0x3] }
 0x174   : > { %v1202_v33 = vadd.f32 %v1201_v30, %v1182_v31  ;;  %v3760_v30 = vld [vmem:[%s4868_s3 + $0x10] sm:$0x3]  ;;  %v2787_v31 = vld [vmem:[#allocation2 + $0x5c] sm:$0x1]  ;;  %v4498_v41 = vpop.f32.mrf.mxu0 }
 0x175   : > { %v2955_v36 = vsel %vm367_vm0, %v3760_v30, 0  ;;  %v3766_v30 = vld [vmem:[%s4868_s3 + $0x2] sm:$0x3] }
 0x176   : > { %v4433_v38 = vadd.f32 %v1225_v37, %v1202_v33  ;;  %v2767_v33 = vsel %vm367_vm0, %v3740_v28, 0  ;;  %v2818_v37 = vunpack.c.l.b16 %v2787_v31  ;;  %v3785_v31 = vld [vmem:[%s4868_s3 + $0xc] sm:$0x3] }
 0x178   : > { %3691 = vmatmul.msk.bf16.vlgmr.msra.gmra.mxu2 %vm360_vm1, %v4396_v58 }
 0x179   : > { %3708 = vmatmul.msk.bf16.vlgmr.msrb.gmra.mxu0 %vm360_vm1, %v2451_v40  ;;  %2533 = vmatpush.bf16.msra.mxu2 %v2524_v56  ;;  %v2601_v56 = vunpack.c.l.b16 %v2570_v45  ;;  %v2822_v40 = vshll.u32 %v4492_v24, 16 }
 0x17a   : > { %2733 = vmatpush.bf16.msrb.mxu0 %v2724_v39  ;;  %v4495_v39 = vpack.c.b16 %v2818_v37, %v2818_v37 }
 0x17b   : > { %v4502_v46 = vpop.f32.mrf.mxu2  ;;  %v4504_v47 = vpack.c.b16 %v2601_v56, %v2601_v56  ;;  %v2824_v49 = vrot.slane %v2822_v40, 1 }
 0x17c   : > { %v2827_v23 = vshll.u32 %v4495_v39, 16 }
 0x17d   : > { %v2638_v55 = vrot.slane %v4504_v47, 1 }
 0x17f   : > { %v2639_v6 = vsel %vm887_vm4, %v2637_v54, %v2638_v55 }
 0x182   : > { %3594 = vmatmul.msk.bf16.vlgmr.msra.gmra.mxu1 %vm360_vm1, %v4231_v35  ;;  %v4458_v35 = vld [vmem:[#allocation2 + $0x48] sm:$0xff] }
 0x183   : > { %1626 = vmatpush.bf16.msra.mxu1 %v1617_v48  ;;  %v2511_v9 = vshll.u32 %v4458_v35, 16  ;;  %v2509_v34 = vshrl.u32 %v4458_v35, 16  ;;  %v2820_v48 = vshrl.u32 %v4492_v24, 16  ;;  %v4523_v14 = vpop.f32.mrf.mxu2 }
 0x185   : > { %v2513_v15 = vrot.slane %v2511_v9, 1  ;;  %v2825_v57 = vor.u32 %v2824_v49, %v2820_v48  ;;  %v3781_v49 = vld [vmem:[%s4868_s3 + $0x8] sm:$0x3] }
 0x186   : > { %v3146_v54 = vsel %vm367_vm0, %v3781_v49, 0 }
 0x187   : > { %v2514_v21 = vor.u32 %v2513_v15, %v2509_v34  ;;  %v2881_v15 = vld [vmem:[#allocation2 + $0x68] sm:$0x1] }
 0x188   : > { %3705 = vmatmul.msk.bf16.vlgmr.msrb.gmra.mxu2 %vm360_vm1, %v2408_v61  ;;  %v3773_v61 = vld [vmem:[%s4868_s3 + $0x4] sm:$0x3]  ;;  %v2912_v17 = vunpack.c.l.b16 %v2881_v15  ;;  %v3098_v15 = vld [vmem:[#allocation2 + $0x68] sm:$0x1] }
 0x189   : > { %3724 = vmatmul.msk.bf16.vlgmr.msra.gmra.mxu0 %vm360_vm1, %v4456_v62  ;;  %2653 = vmatpush.bf16.msrb.mxu2 %v2644_v60  ;;  %v2829_v60 = vrot.slane %v2827_v23, 1  ;;  %v3078_v9 = vsel %vm367_vm0, %v3773_v61, 0 }
 0x18a   : > { %2844 = vmatpush.bf16.msra.mxu0 %v2835_v3  ;;  %v4519_v3 = vpop.f32.mrf.mxu0  ;;  %v4528_v18 = vpack.c.b16 %v2912_v17, %v2912_v17  ;;  %v3793_v17 = vld [vmem:[%s4868_s3 + $0x10] sm:$0x3] }
 0x18b   : > { %v2830_v34 = vsel %vm833_vm5, %v2825_v57, %v2829_v60  ;;  %v4532_v20 = vpop.f32.mrf.mxu2  ;;  %v3022_v57 = vshll.u32 %v4556_v42, 16 }
 0x18c   : > { %v2949_v28 = vrot.slane %v4528_v18, 1 }
 0x18d   : > { %v3024_v61 = vrot.slane %v3022_v57, 1 }
 0x192   : > { %3607 = vmatmul.msk.bf16.vlgmr.msrb.gmra.mxu1 %vm360_vm1, %v4209_v10  ;;  %v2519_v10 = vsel %vm833_vm5, %v2514_v21, %v2518_v16  ;;  %v4530_v19 = vpop.f32.mrf.mxu0  ;;  %v4534_v21 = vld [vmem:[#allocation2 + $0x60] sm:$0xff]  ;;  %v2760_v16 = vrot.slane %v4462_v5, 1 }
 0x193   : > { %1751 = vmatpush.msrb.mxu1 %v4321_v13  ;;  %v2948_v25 = vrot.slane %v4534_v21, 1  ;;  %v4554_v37 = vpop.f32.mrf.mxu2 }
 0x195   : > { %v2950_v11 = vsel %vm887_vm4, %v2948_v25, %v2949_v28  ;;  %v4585_v25 = vld [vmem:[#allocation2 + $0x6c] sm:$0xff]  ;;  %v4587_v28 = vld [vmem:[#allocation2 + $0x60] sm:$0xff] }
 0x198   : > { %3716 = vmatmul.msk.bf16.vlgmr.msra.gmra.mxu2 %vm360_vm1, %v2519_v10  ;;  %v2762_v10 = vsel %vm887_vm4, %v2760_v16, %v2761_v22  ;;  %v3266_v16 = vsel %vm367_vm0, %v3793_v17, 0 }
 0x199   : > { %3738 = vmatmul.msk.bf16.vlgmr.msrb.gmra.mxu0 %vm360_vm1, %v2719_v44  ;;  %2776 = vmatpush.bf16.msra.mxu2 %v2767_v33  ;;  %v3035_v33 = vsel %vm367_vm0, %v3766_v30, 0  ;;  %v3008_v44 = vld [vmem:[#allocation2 + $0x5c] sm:$0x1]  ;;  %v3129_v30 = vunpack.c.l.b16 %v3098_v15 }
 0x19a   : > { %2964 = vmatpush.bf16.msrb.mxu0 %v2955_v36  ;;  %v3203_v36 = vsel %vm367_vm0, %v3785_v31, 0  ;;  %v4552_v45 = vpop.f32.mrf.mxu0  ;;  %v3016_v56 = vunpack.c.l.b16 %v3008_v44  ;;  %v3131_v44 = vshrl.u32 %v4587_v28, 16 }
 0x19c   : > { %v3018_v40 = vpack.c.b16 %v3016_v56, %v3016_v56 }
 0x19e   : > { %v3072_v48 = vrot.slane %v3018_v40, 1 }
 0x1a0   : > { %v3073_v55 = vsel %vm887_vm4, %v3071_v43, %v3072_v48 }
 0x1a2   : > { %3619 = vmatmul.msk.bf16.vlgmr.msra.gmra.mxu1 %vm360_vm1, %v1612_v52  ;;  %v4562_v23 = vpop.f32.mrf.mxu0  ;;  %v4564_v52 = vpop.f32.mrf.mxu2 }
 0x1a8   : > { %3728 = vmatmul.msk.bf16.vlgmr.msrb.gmra.mxu2 %vm360_vm1, %v2639_v6 }
 0x1a9   : > { %3749 = vmatmul.msk.bf16.vlgmr.msra.gmra.mxu0 %vm360_vm1, %v2830_v34  ;;  %2901 = vmatpush.bf16.msrb.mxu2 %v2892_v0  ;;  %v3027_v0 = vshll.u32 %v3018_v40, 16 }
 0x1aa   : > { %3087 = vmatpush.bf16.msra.mxu0 %v3078_v9  ;;  %v4573_v60 = vpop.f32.mrf.mxu0  ;;  %v4576_v6 = vpop.f32.mrf.mxu2  ;;  %v3025_v9 = vor.u32 %v3024_v61, %v3020_v59  ;;  %v3192_v61 = vld [vmem:[#allocation2 + $0x74] sm:$0x1] }
 0x1ab   : > { %v3029_v34 = vrot.slane %v3027_v0, 1  ;;  %v3223_v0 = vunpack.c.l.b16 %v3192_v61 }
 0x1ad   : > { %v3030_v22 = vsel %vm833_vm5, %v3025_v9, %v3029_v34  ;;  %v4620_v15 = vpack.c.b16 %v3223_v0, %v3223_v0 }
 0x1b2   : > { %v4590_v31 = vpop.f32.mrf.mxu0 }
 0x1b8   : > { %3741 = vmatmul.msk.bf16.vlgmr.msra.gmra.mxu2 %vm360_vm1, %v2762_v10  ;;  %v4596_v10 = vpack.c.b16 %v3129_v30, %v3129_v30 }
 0x1b9   : > { %3761 = vmatmul.msk.bf16.vlgmr.msrb.gmra.mxu0 %vm360_vm1, %v2950_v11  ;;  %3044 = vmatpush.bf16.msra.mxu2 %v3035_v33  ;;  %v4594_v33 = vpop.f32.mrf.mxu2 }
 0x1ba   : > { %3212 = vmatpush.bf16.msrb.mxu0 %v3203_v36  ;;  %v3133_v36 = vshll.u32 %v4587_v28, 16  ;;  %v3138_v40 = vshll.u32 %v4596_v10, 16 }
 0x1bc   : > { %v3135_v56 = vrot.slane %v3133_v36, 1  ;;  %v3140_v48 = vrot.slane %v3138_v40, 1  ;;  %v1317_v36 = vpop.f32.mrf.mxu3 }
 0x1be   : > { %v3136_v43 = vor.u32 %v3135_v56, %v3131_v44 }
 0x1c0   : > { %v3141_v59 = vsel %vm833_vm5, %v3136_v43, %v3140_v48 }
 0x1c1   : > { %v4608_v49 = vpop.f32.mrf.mxu2 }
 0x1c8   : > { %3757 = vmatmul.msk.bf16.vlgmr.msrb.gmra.mxu2 %vm360_vm1, %v4534_v21 }
 0x1c9   : > { %3774 = vmatmul.msk.bf16.vlgmr.msra.gmra.mxu0 %vm360_vm1, %v3073_v55  ;;  %3155 = vmatpush.bf16.msrb.mxu2 %v3146_v54  ;;  %v3610_v54 = vld [vmem:[%s4868_s3 + $0x6] sm:$0x3]  ;;  %v4618_v9 = vpop.f32.mrf.mxu2 }
 0x1ca   : > { %v1554_v55 = vsel %vm367_vm0, %v3610_v54, 0 }
 0x1cb   : > { %1563 = vmatpush.bf16.msra.mxu3 %v1554_v55 }
 0x1d1   : > { %v4627_v56 = vpop.f32.mrf.mxu2 }
 0x1d8   : > { %3771 = vmatmul.msk.bf16.vlgmr.msra.gmra.mxu2 %vm360_vm1, %v3030_v22  ;;  %v3260_v22 = vrot.slane %v4620_v15, 1 }
 0x1d9   : > { %3790 = vmatmul.msk.bf16.vlgmr.msrb.gmra.mxu0 %vm360_vm1, %v4585_v25  ;;  %3275 = vmatpush.bf16.msra.mxu2 %v3266_v16  ;;  %v3259_v16 = vrot.slane %v4585_v25, 1 }
 0x1db   : > { %v3261_v44 = vsel %vm887_vm4, %v3259_v16, %v3260_v22 }
 0x1df   : > { %v1132_v11 = vpop.f32.mrf.mxu1 }
 0x1e0   : > { %1138 = vst.msk [vmem:[%s4602_s17] sm:$0xff] %vm1108_vm6, %v1132_v11 }
 0x1e7   : > { %v1135_v57 = vpop.f32.mrf.mxu1 }
 0x1e8   : > { %1139 = vst.msk [vmem:[%s4602_s17 + $0x8] sm:$0xff] %vm1108_vm6, %v1135_v57  ;;  %3782 = vmatmul.msk.bf16.vlgmr.msrb.gmra.mxu2 %vm360_vm1, %v3141_v59  ;;  %v1319_v57 = vpop.f32.mrf.mxu3 }
 0x1ef   : > { %v1254_v34 = vpop.f32.mrf.mxu1 }
 0x1f0   : > { %v1259_v17 = vadd.f32 %v1254_v34, %v4418_v12 }
 0x1f2   : > { %v1296_v30 = vadd.f32 %v4502_v46, %v1259_v17  ;;  %v3626_v46 = vld [vmem:[%s4868_s3 + $0xe] sm:$0x3]  ;;  %v1765_v17 = vld [vmem:[%s4868_s3] sm:$0x3] }
 0x1f3   : > { %v1685_v0 = vsel %vm367_vm0, %v3626_v46, 0 }
 0x1f4   : > { %v1322_v43 = vadd.f32 %v1317_v36, %v1296_v30 }
 0x1f6   : > { %v1353_v12 = vadd.f32 %v4478_v4, %v1322_v43 }
 0x1f7   : > { %v1256_v11 = vpop.f32.mrf.mxu1 }
 0x1f8   : > { %3794 = vmatmul.msk.bf16.vlgmr.msra.gmra.mxu2 %vm360_vm1, %v3261_v44  ;;  %v1260_v40 = vadd.f32 %v1256_v11, %v4433_v38 }
 0x1fa   : > { %v1297_v48 = vadd.f32 %v4523_v14, %v1260_v40 }
 0x1fc   : > { %v1323_v61 = vadd.f32 %v1319_v57, %v1297_v48 }
 0x1fe   : > { %v1354_v38 = vadd.f32 %v4498_v41, %v1323_v61  ;;  %v3651_v41 = vld [vmem:[%s4868_s3 + $0xa] sm:$0x3] }
 0x1ff   : > { %v1385_v54 = vpop.f32.mrf.mxu1  ;;  %v1928_v16 = vsel %vm367_vm0, %v3651_v41, 0  ;;  %v2233_v41 = vrot.slane %v4370_v8, 1  ;;  %v1913_v8 = vpop.f32.mrf.mxu2 }
 0x200   : > { %v1390_v55 = vadd.f32 %v1385_v54, %v1353_v12 }
 0x202   : > { %v1416_v59 = vadd.f32 %v4532_v20, %v1390_v55  ;;  %v1810_v20 = vsel %vm367_vm0, %v1765_v17, 0  ;;  %v2076_v17 = vld [vmem:[%s4868_s3] sm:$0x3] }
 0x204   : > { %3597 = vmatmul.msk.f32.vlgmr.msrb.gmra.mxu3 %vm1108_vm6, %v1416_v59 }
 0x205   : > { %1694 = vmatpush.bf16.msrb.mxu3 %v1685_v0 }
 0x207   : > { %v1387_v14 = vpop.f32.mrf.mxu1 }
 0x208   : > { %v1391_v34 = vadd.f32 %v1387_v14, %v1354_v38 }
 0x20a   : > { %v1417_v4 = vadd.f32 %v4554_v37, %v1391_v34  ;;  %v1921_v37 = vrot.slane %v4334_v26, 1 }
 0x20c   : > { %3598 = vmatmul.msk.f32.gmra.mxu3 %vm1108_vm6, %v1417_v4 }
 0x20f   : > { %v1510_v36 = vpop.f32.mrf.mxu1 }
 0x214   : > { %3615 = vmatmul.msk.bf16.vlgmr.msra.gmra.mxu3 %vm360_vm1, %v4241_v50  ;;  %v1922_v50 = vrot.slane %v4342_v32, 1  ;;  %v1511_v32 = vadd.f32 %v1510_v36, %v4519_v3 }
 0x215   : > { %1819 = vmatpush.bf16.msra.mxu3 %v1810_v20 }
 0x216   : > { %v1923_v22 = vsel %vm887_vm4, %v1921_v37, %v1922_v50  ;;  %v1539_v40 = vadd.f32 %v4564_v52, %v1511_v32  ;;  %v3659_v52 = vld [vmem:[%s4868_s3 + $0xe] sm:$0x3] }
 0x217   : > { %v1512_v11 = vpop.f32.mrf.mxu1  ;;  %v1996_v34 = vsel %vm367_vm0, %v3659_v52, 0 }
 0x218   : > { %v1513_v48 = vadd.f32 %v1512_v11, %v4530_v19 }
 0x21a   : > { %v1540_v55 = vadd.f32 %v4576_v6, %v1513_v48 }
 0x21f   : > { %v1628_v54 = vpop.f32.mrf.mxu1 }
 0x224   : > { %3627 = vmatmul.msk.bf16.vlgmr.msrb.gmra.mxu3 %vm360_vm1, %v4295_v53  ;;  %v3643_v53 = vld [vmem:[%s4868_s3 + $0x6] sm:$0x3] }
 0x225   : > { %1937 = vmatpush.bf16.msrb.mxu3 %v1928_v16 }
 0x227   : > { %v1630_v14 = vpop.f32.mrf.mxu1 }
 0x234   : > { %3640 = vmatmul.msk.bf16.vlgmr.msra.gmra.mxu3 %vm360_vm1, %v4303_v1  ;;  %v1865_v1 = vsel %vm367_vm0, %v3643_v53, 0 }
 0x235   : > { %2062 = vmatpush.msra.mxu3 %v4321_v13  ;;  %1874 = vmatpush.bf16.msra.mxu1 %v1865_v1 }
 0x244   : > { %3652 = vmatmul.msk.bf16.vlgmr.msrb.gmra.mxu3 %vm360_vm1, %v1923_v22 }
 0x287   : > { %v1442_v30 = vpop.f32.mrf.mxu3 }
 0x288   : > { %3599 = vst.msk [vmem:[%s4602_s17 + $0x10] sm:$0xff] %vm1108_vm6, %v1442_v30 }
 0x28f   : > { %v1445_v13 = vpop.f32.mrf.mxu3 }
 0x290   : > { %3600 = vst.msk [vmem:[%s4602_s17 + $0x18] sm:$0xff] %vm1108_vm6, %v1445_v13 }
 0x297   : > { %v1565_v44 = vpop.f32.mrf.mxu3 }
 0x298   : > { %v1570_v43 = vadd.f32 %v1565_v44, %v1539_v40  ;;  %v1915_v44 = vpop.f32.mrf.mxu2 }
 0x29a   : > { %v1607_v12 = vadd.f32 %v4552_v45, %v1570_v43 }
 0x29c   : > { %v1633_v59 = vadd.f32 %v1628_v54, %v1607_v12 }
 0x29e   : > { %v1664_v0 = vadd.f32 %v4594_v33, %v1633_v59 }
 0x29f   : > { %v1567_v46 = vpop.f32.mrf.mxu3 }
 0x2a0   : > { %v1571_v57 = vadd.f32 %v1567_v46, %v1540_v55 }
 0x2a2   : > { %v1608_v61 = vadd.f32 %v4562_v23, %v1571_v57 }
 0x2a4   : > { %v1634_v45 = vadd.f32 %v1630_v14, %v1608_v61  ;;  %v2033_v61 = vpop.f32.mrf.mxu2 }
 0x2a6   : > { %v1665_v6 = vadd.f32 %v4608_v49, %v1634_v45  ;;  %v3684_v49 = vld [vmem:[%s4868_s3 + $0xa] sm:$0x3] }
 0x2a7   : > { %v1696_v3 = vpop.f32.mrf.mxu3  ;;  %v2239_v20 = vsel %vm367_vm0, %v3684_v49, 0  ;;  %v2292_v49 = vshrl.u32 %v4396_v58, 16 }
 0x2a8   : > { %v1701_v38 = vadd.f32 %v1696_v3, %v1664_v0 }
 0x2aa   : > { %v1727_v19 = vadd.f32 %v4573_v60, %v1701_v38  ;;  %v2121_v60 = vsel %vm367_vm0, %v2076_v17, 0 }
 0x2ac   : > { %3630 = vmatmul.msk.f32.vlgmr.msrb.gmra.mxu1 %vm1108_vm6, %v1727_v19 }
 0x2ad   : > { %2005 = vmatpush.bf16.msrb.mxu1 %v1996_v34 }
 0x2af   : > { %v1698_v23 = vpop.f32.mrf.mxu3 }
 0x2b0   : > { %v1702_v4 = vadd.f32 %v1698_v23, %v1665_v6  ;;  %v2035_v23 = vpop.f32.mrf.mxu2 }
 0x2b2   : > { %v1728_v33 = vadd.f32 %v4590_v31, %v1702_v4  ;;  %v2232_v31 = vrot.slane %v4367_v2, 1 }
 0x2b4   : > { %3631 = vmatmul.msk.f32.gmra.mxu1 %vm1108_vm6, %v1728_v33  ;;  %v2387_v33 = vld [vmem:[%s4868_s3] sm:$0x3] }
 0x2b5   : > { %v2432_v17 = vsel %vm367_vm0, %v2387_v33, 0 }
 0x2b7   : > { %v1821_v37 = vpop.f32.mrf.mxu3 }
 0x2b8   : > { %v1822_v30 = vadd.f32 %v1821_v37, %v4618_v9  ;;  %v3692_v9 = vld [vmem:[%s4868_s3 + $0xe] sm:$0x3] }
 0x2b9   : > { %v2307_v14 = vsel %vm367_vm0, %v3692_v9, 0 }
 0x2bc   : > { %3648 = vmatmul.msk.bf16.vlgmr.msra.gmra.mxu1 %vm360_vm1, %v4334_v26  ;;  %v2234_v26 = vsel %vm887_vm4, %v2232_v31, %v2233_v41  ;;  %v2299_v31 = vshll.u32 %v4392_v51, 16  ;;  %v2544_v51 = vrot.slane %v4466_v7, 1 }
 0x2bd   : > { %2130 = vmatpush.bf16.msra.mxu1 %v2121_v60  ;;  %v2294_v60 = vshll.u32 %v4396_v58, 16 }
 0x2bf   : > { %v1823_v36 = vpop.f32.mrf.mxu3 }
 0x2c0   : > { %v1824_v11 = vadd.f32 %v1823_v36, %v4627_v56  ;;  %v2156_v36 = vpop.f32.mrf.mxu2 }
 0x2c7   : > { %v1939_v43 = vpop.f32.mrf.mxu3 }
 0x2cc   : > { %3660 = vmatmul.msk.bf16.vlgmr.msrb.gmra.mxu1 %vm360_vm1, %v4301_v63  ;;  %v3676_v63 = vld [vmem:[%s4868_s3 + $0x6] sm:$0x3] }
 0x2cd   : > { %2248 = vmatpush.bf16.msrb.mxu1 %v2239_v20  ;;  %v2176_v50 = vsel %vm367_vm0, %v3676_v63, 0  ;;  %v2296_v20 = vrot.slane %v2294_v60, 1 }
 0x2ce   : > { %2185 = vmatpush.bf16.msrb.mxu3 %v2176_v50  ;;  %v4743_v50 = vld [vmem:[%s4869_s4] sm:$0xff] }
 0x2cf   : > { %v1941_v52 = vpop.f32.mrf.mxu3  ;;  %v2297_v41 = vor.u32 %v2296_v20, %v2292_v49  ;;  %v2698_v20 = vld [vmem:[%s4868_s3] sm:$0x3] }
 0x2dc   : > { %3673 = vmatmul.msk.bf16.vlgmr.msra.gmra.mxu1 %vm360_vm1, %v4338_v29  ;;  %v1845_v29 = vpop.f32.mrf.mxu0 }
 0x2dd   : > { %v1850_v1 = vadd.f32 %v1845_v29, %v1822_v30  ;;  %2373 = vmatpush.msra.mxu1 %v4743_v50 }
 0x2e4   : > { %v1847_v13 = vpop.f32.mrf.mxu0 }
 0x2e5   : > { %v1851_v12 = vadd.f32 %v1847_v13, %v1824_v11 }
 0x2ec   : > { %3685 = vmatmul.msk.bf16.vlgmr.msrb.gmra.mxu1 %vm360_vm1, %v2234_v26  ;;  %v1970_v55 = vpop.f32.mrf.mxu0  ;;  %v2301_v26 = vrot.slane %v2299_v31, 1  ;;  %v2743_v31 = vsel %vm367_vm0, %v2698_v20, 0 }
 0x2ee   : > { %v2302_v63 = vsel %vm833_vm5, %v2297_v41, %v2301_v26  ;;  %v2605_v41 = vshll.u32 %v4456_v62, 16  ;;  %v2603_v26 = vshrl.u32 %v4456_v62, 16  ;;  %v2854_v62 = vrot.slane %v4492_v24, 1 }
 0x2f4   : > { %v1972_v19 = vpop.f32.mrf.mxu0 }
 0x2fc   : > { %v2113_v29 = vpop.f32.mrf.mxu0 }
 0x329   : > { %v1753_v16 = vpop.f32.mrf.mxu1 }
 0x32a   : > { %3632 = vst.msk [vmem:[%s4602_s17 + $0x20] sm:$0xff] %vm1108_vm6, %v1753_v16  ;;  %v3717_v16 = vld [vmem:[%s4868_s3 + $0xa] sm:$0x3] }
 0x32b   : > { %v2550_v37 = vsel %vm367_vm0, %v3717_v16, 0  ;;  %v2607_v16 = vrot.slane %v2605_v41, 1  ;;  %v2914_v41 = vshrl.u32 %v4534_v21, 16 }
 0x331   : > { %v1756_v22 = vpop.f32.mrf.mxu1 }
 0x332   : > { %3633 = vst.msk [vmem:[%s4602_s17 + $0x28] sm:$0xff] %vm1108_vm6, %v1756_v22  ;;  %v2115_v22 = vpop.f32.mrf.mxu0 }
 0x339   : > { %v1876_v53 = vpop.f32.mrf.mxu1 }
 0x33a   : > { %v1881_v32 = vadd.f32 %v1876_v53, %v1850_v1  ;;  %v2224_v1 = vpop.f32.mrf.mxu0 }
 0x33c   : > { %v1918_v40 = vadd.f32 %v1913_v8, %v1881_v32  ;;  %v3709_v8 = vld [vmem:[%s4868_s3 + $0x6] sm:$0x3] }
 0x33d   : > { %v2487_v30 = vsel %vm367_vm0, %v3709_v8, 0 }
 0x33e   : > { %v1944_v46 = vadd.f32 %v1939_v43, %v1918_v40  ;;  %2496 = vmatpush.bf16.msrb.mxu1 %v2487_v30  ;;  %v2158_v40 = vpop.f32.mrf.mxu2 }
 0x340   : > { %v1975_v59 = vadd.f32 %v1970_v55, %v1944_v46 }
 0x341   : > { %v1878_v48 = vpop.f32.mrf.mxu1 }
 0x342   : > { %v1882_v54 = vadd.f32 %v1878_v48, %v1851_v12  ;;  %v2226_v12 = vpop.f32.mrf.mxu0 }
 0x344   : > { %v1919_v57 = vadd.f32 %v1915_v44, %v1882_v54 }
 0x346   : > { %v1945_v56 = vadd.f32 %v1941_v52, %v1919_v57 }
 0x348   : > { %v1976_v45 = vadd.f32 %v1972_v19, %v1945_v56  ;;  %v3725_v56 = vld [vmem:[%s4868_s3 + $0xe] sm:$0x3] }
 0x349   : > { %v2007_v0 = vpop.f32.mrf.mxu1 }
 0x34a   : > { %v2012_v3 = vadd.f32 %v2007_v0, %v1975_v59  ;;  %v2281_v0 = vpop.f32.mrf.mxu2  ;;  %v2344_v52 = vpop.f32.mrf.mxu0 }
 0x34c   : > { %v2038_v38 = vadd.f32 %v2033_v61, %v2012_v3 }
 0x34e   : > { %3663 = vmatmul.msk.f32.vlgmr.msra.gmra.mxu3 %vm1108_vm6, %v2038_v38 }
 0x34f   : > { %2316 = vmatpush.bf16.msra.mxu3 %v2307_v14 }
 0x351   : > { %v2009_v34 = vpop.f32.mrf.mxu1 }
 0x352   : > { %v2013_v6 = vadd.f32 %v2009_v34, %v1976_v45  ;;  %v2346_v60 = vpop.f32.mrf.mxu0 }
 0x354   : > { %v2039_v4 = vadd.f32 %v2035_v23, %v2013_v6  ;;  %v2618_v6 = vsel %vm367_vm0, %v3725_v56, 0  ;;  %v2283_v23 = vpop.f32.mrf.mxu2 }
 0x356   : > { %3664 = vmatmul.msk.f32.gmra.mxu3 %vm1108_vm6, %v2039_v4 }
 0x359   : > { %v2132_v7 = vpop.f32.mrf.mxu1 }
 0x35a   : > { %v2133_v13 = vadd.f32 %v2132_v7, %v2113_v29 }
 0x35c   : > { %v2161_v44 = vadd.f32 %v2156_v36, %v2133_v13  ;;  %v2467_v36 = vpop.f32.mrf.mxu0 }
 0x35e   : > { %3681 = vmatmul.msk.bf16.vlgmr.msrb.gmra.mxu3 %vm360_vm1, %v4367_v2  ;;  %v2543_v2 = vrot.slane %v4458_v35, 1 }
 0x35f   : > { %2441 = vmatpush.bf16.msrb.mxu3 %v2432_v17 }
 0x360   : > { %v2545_v58 = vsel %vm887_vm4, %v2543_v2, %v2544_v51  ;;  %v3750_v51 = vld [vmem:[%s4868_s3 + $0xa] sm:$0x3] }
 0x361   : > { %v2134_v32 = vpop.f32.mrf.mxu1 }
 0x362   : > { %v2135_v48 = vadd.f32 %v2134_v32, %v2115_v22 }
 0x364   : > { %v2162_v57 = vadd.f32 %v2158_v40, %v2135_v48 }
 0x369   : > { %v2250_v46 = vpop.f32.mrf.mxu1 }
 0x36e   : > { %3693 = vmatmul.msk.bf16.vlgmr.msra.gmra.mxu3 %vm360_vm1, %v2302_v63  ;;  %v2608_v63 = vor.u32 %v2607_v16, %v2603_v26  ;;  %v2921_v16 = vshll.u32 %v4528_v18, 16  ;;  %v3166_v18 = vrot.slane %v4596_v10, 1 }
 0x36f   : > { %2559 = vmatpush.bf16.msra.mxu3 %v2550_v37  ;;  %v2610_v37 = vshll.u32 %v4504_v47, 16 }
 0x371   : > { %v2252_v19 = vpop.f32.mrf.mxu1  ;;  %v2612_v2 = vrot.slane %v2610_v37, 1 }
 0x373   : > { %v2613_v29 = vsel %vm833_vm5, %v2608_v63, %v2612_v2  ;;  %v2923_v63 = vrot.slane %v2921_v16, 1  ;;  %v3783_v2 = vld [vmem:[%s4868_s3 + $0xa] sm:$0x3] }
 0x37e   : > { %3706 = vmatmul.msk.bf16.vlgmr.msrb.gmra.mxu3 %vm360_vm1, %v4423_v27 }
 0x37f   : > { %2684 = vmatpush.msrb.mxu3 %v4743_v50 }
 0x38e   : > { %3718 = vmatmul.msk.bf16.vlgmr.msra.gmra.mxu3 %vm360_vm1, %v2545_v58  ;;  %v2861_v58 = vsel %vm367_vm0, %v3750_v51, 0  ;;  %v3172_v51 = vsel %vm367_vm0, %v3783_v2, 0 }
 0x3d1   : > { %v2064_v27 = vpop.f32.mrf.mxu3 }
 0x3d2   : > { %3665 = vst.msk [vmem:[%s4602_s17 + $0x30] sm:$0xff] %vm1108_vm6, %v2064_v27  ;;  %v2424_v27 = vpop.f32.mrf.mxu2 }
 0x3d9   : > { %v2067_v53 = vpop.f32.mrf.mxu3 }
 0x3da   : > { %3666 = vst.msk [vmem:[%s4602_s17 + $0x38] sm:$0xff] %vm1108_vm6, %v2067_v53  ;;  %v2426_v7 = vpop.f32.mrf.mxu2 }
 0x3e1   : > { %v2187_v11 = vpop.f32.mrf.mxu3 }
 0x3e2   : > { %v2192_v43 = vadd.f32 %v2187_v11, %v2161_v44  ;;  %v2469_v44 = vpop.f32.mrf.mxu0 }
 0x3e4   : > { %v2229_v54 = vadd.f32 %v2224_v1, %v2192_v43 }
 0x3e6   : > { %v2255_v61 = vadd.f32 %v2250_v46, %v2229_v54 }
 0x3e8   : > { %v2286_v3 = vadd.f32 %v2281_v0, %v2255_v61 }
 0x3e9   : > { %v2189_v55 = vpop.f32.mrf.mxu3 }
 0x3ea   : > { %v2193_v59 = vadd.f32 %v2189_v55, %v2162_v57  ;;  %v2592_v61 = vpop.f32.mrf.mxu0 }
 0x3ec   : > { %v2230_v9 = vadd.f32 %v2226_v12, %v2193_v59 }
 0x3ee   : > { %v2256_v34 = vadd.f32 %v2252_v19, %v2230_v9 }
 0x3f0   : > { %v2287_v4 = vadd.f32 %v2283_v23, %v2256_v34 }
 0x3f1   : > { %v2318_v38 = vpop.f32.mrf.mxu3 }
 0x3f2   : > { %v2323_v14 = vadd.f32 %v2318_v38, %v2286_v3  ;;  %v3758_v38 = vld [vmem:[%s4868_s3 + $0xe] sm:$0x3] }
 0x3f3   : > { %v2929_v34 = vsel %vm367_vm0, %v3758_v38, 0 }
 0x3f4   : > { %v2349_v45 = vadd.f32 %v2344_v52, %v2323_v14 }
 0x3f6   : > { %3696 = vmatmul.msk.f32.vlgmr.msra.gmra.mxu1 %vm1108_vm6, %v2349_v45 }
 0x3f7   : > { %2627 = vmatpush.bf16.msra.mxu1 %v2618_v6  ;;  %v2594_v6 = vpop.f32.mrf.mxu0 }
 0x3f9   : > { %v2320_v33 = vpop.f32.mrf.mxu3 }
 0x3fa   : > { %v2324_v17 = vadd.f32 %v2320_v33, %v2287_v4 }
 0x3fc   : > { %v2350_v49 = vadd.f32 %v2346_v60, %v2324_v17 }
 0x3fe   : > { %3697 = vmatmul.msk.f32.gmra.mxu1 %vm1108_vm6, %v2350_v49  ;;  %v3009_v49 = vld [vmem:[%s4868_s3] sm:$0x3] }
 0x3ff   : > { %v3054_v20 = vsel %vm367_vm0, %v3009_v49, 0 }
 0x401   : > { %v2443_v8 = vpop.f32.mrf.mxu3 }
 0x402   : > { %v2444_v1 = vadd.f32 %v2443_v8, %v2424_v27 }
 0x404   : > { %v2472_v11 = vadd.f32 %v2467_v36, %v2444_v1 }
 0x406   : > { %3714 = vmatmul.msk.bf16.vlgmr.msrb.gmra.mxu1 %vm360_vm1, %v4458_v35  ;;  %v2855_v35 = vrot.slane %v4495_v39, 1  ;;  %v2535_v39 = vpop.f32.mrf.mxu2 }
 0x407   : > { %2752 = vmatpush.bf16.msrb.mxu1 %v2743_v31  ;;  %v2916_v31 = vshll.u32 %v4534_v21, 16 }
 0x408   : > { %v2856_v47 = vsel %vm887_vm4, %v2854_v62, %v2855_v35 }
 0x409   : > { %v2445_v13 = vpop.f32.mrf.mxu3  ;;  %v2918_v26 = vrot.slane %v2916_v31, 1 }
 0x40a   : > { %v2446_v43 = vadd.f32 %v2445_v13, %v2426_v7 }
 0x40b   : > { %v2919_v37 = vor.u32 %v2918_v26, %v2914_v41 }
 0x40c   : > { %v2473_v55 = vadd.f32 %v2469_v44, %v2446_v43 }
 0x40e   : > { %v2537_v48 = vpop.f32.mrf.mxu2 }
 0x411   : > { %v2561_v54 = vpop.f32.mrf.mxu3 }
 0x416   : > { %3726 = vmatmul.msk.bf16.vlgmr.msra.gmra.mxu1 %vm360_vm1, %v2613_v29  ;;  %v2655_v3 = vpop.f32.mrf.mxu2  ;;  %v2735_v29 = vpop.f32.mrf.mxu0 }
 0x417   : > { %2870 = vmatpush.bf16.msra.mxu1 %v2861_v58  ;;  %v2924_v58 = vsel %vm833_vm5, %v2919_v37, %v2923_v63 }
 0x419   : > { %v2563_v14 = vpop.f32.mrf.mxu3 }
 0x41e   : > { %v2657_v17 = vpop.f32.mrf.mxu2  ;;  %v2737_v35 = vpop.f32.mrf.mxu0 }
 0x426   : > { %3739 = vmatmul.msk.bf16.vlgmr.msrb.gmra.mxu1 %vm360_vm1, %v4462_v5  ;;  %v3742_v5 = vld [vmem:[%s4868_s3 + $0x6] sm:$0x3]  ;;  %v2778_v27 = vpop.f32.mrf.mxu2  ;;  %v2846_v10 = vpop.f32.mrf.mxu0 }
 0x427   : > { %2995 = vmatpush.msrb.mxu1 %v4743_v50  ;;  %v2798_v30 = vsel %vm367_vm0, %v3742_v5, 0 }
 0x428   : > { %2807 = vmatpush.bf16.msra.mxu3 %v2798_v30 }
 0x42e   : > { %v2780_v36 = vpop.f32.mrf.mxu2  ;;  %v2848_v1 = vpop.f32.mrf.mxu0 }
 0x436   : > { %3751 = vmatmul.msk.bf16.vlgmr.msra.gmra.mxu1 %vm360_vm1, %v2856_v47 }
 0x473   : > { %v2375_v22 = vpop.f32.mrf.mxu1 }
 0x474   : > { %3698 = vst.msk [vmem:[%s4602_s17 + $0x40] sm:$0xff] %vm1108_vm6, %v2375_v22 }
 0x47b   : > { %v2378_v53 = vpop.f32.mrf.mxu1 }
 0x47c   : > { %3699 = vst.msk [vmem:[%s4602_s17 + $0x48] sm:$0xff] %vm1108_vm6, %v2378_v53 }
 0x483   : > { %v2498_v32 = vpop.f32.mrf.mxu1 }
 0x484   : > { %v2503_v40 = vadd.f32 %v2498_v32, %v2472_v11 }
 0x486   : > { %v2540_v12 = vadd.f32 %v2535_v39, %v2503_v40 }
 0x488   : > { %v2566_v59 = vadd.f32 %v2561_v54, %v2540_v12 }
 0x48a   : > { %v2597_v9 = vadd.f32 %v2592_v61, %v2566_v59 }
 0x48b   : > { %v2500_v46 = vpop.f32.mrf.mxu1 }
 0x48c   : > { %v2504_v57 = vadd.f32 %v2500_v46, %v2473_v55  ;;  %v2966_v46 = vpop.f32.mrf.mxu0 }
 0x48e   : > { %v2541_v0 = vadd.f32 %v2537_v48, %v2504_v57  ;;  %v2903_v48 = vpop.f32.mrf.mxu2  ;;  %v3791_v57 = vld [vmem:[%s4868_s3 + $0xe] sm:$0x3] }
 0x490   : > { %v2567_v45 = vadd.f32 %v2563_v14, %v2541_v0 }
 0x492   : > { %v2598_v23 = vadd.f32 %v2594_v6, %v2567_v45  ;;  %v3225_v6 = vshrl.u32 %v4585_v25, 16 }
 0x493   : > { %v2629_v52 = vpop.f32.mrf.mxu1 }
 0x494   : > { %v2634_v56 = vadd.f32 %v2629_v52, %v2597_v9 }
 0x496   : > { %v2660_v19 = vadd.f32 %v2655_v3, %v2634_v56  ;;  %v3240_v3 = vsel %vm367_vm0, %v3791_v57, 0  ;;  %v2905_v52 = vpop.f32.mrf.mxu2 }
 0x498   : > { %3729 = vmatmul.msk.f32.vlgmr.msrb.gmra.mxu3 %vm1108_vm6, %v2660_v19  ;;  %v2968_v19 = vpop.f32.mrf.mxu0 }
 0x499   : > { %2938 = vmatpush.bf16.msrb.mxu3 %v2929_v34  ;;  %v3227_v34 = vshll.u32 %v4585_v25, 16 }
 0x49b   : > { %v2631_v4 = vpop.f32.mrf.mxu1 }
 0x49c   : > { %v2635_v33 = vadd.f32 %v2631_v4, %v2598_v23  ;;  %v3229_v23 = vrot.slane %v3227_v34, 1  ;;  %v3232_v4 = vshll.u32 %v4620_v15, 16 }
 0x49e   : > { %v2661_v60 = vadd.f32 %v2657_v17, %v2635_v33  ;;  %v3230_v33 = vor.u32 %v3229_v23, %v3225_v6  ;;  %v3234_v17 = vrot.slane %v3232_v4, 1  ;;  %v3046_v49 = vpop.f32.mrf.mxu2 }
 0x4a0   : > { %3730 = vmatmul.msk.f32.gmra.mxu3 %vm1108_vm6, %v2661_v60  ;;  %v3235_v60 = vsel %vm833_vm5, %v3230_v33, %v3234_v17  ;;  %v3089_v41 = vpop.f32.mrf.mxu0 }
 0x4a3   : > { %v2754_v47 = vpop.f32.mrf.mxu1 }
 0x4a4   : > { %v2755_v7 = vadd.f32 %v2754_v47, %v2735_v29 }
 0x4a6   : > { %v2783_v30 = vadd.f32 %v2778_v27, %v2755_v7  ;;  %v3048_v31 = vpop.f32.mrf.mxu2 }
 0x4a8   : > { %3747 = vmatmul.msk.bf16.vlgmr.msra.gmra.mxu3 %vm360_vm1, %v4492_v24  ;;  %v3165_v24 = vrot.slane %v4587_v28, 1  ;;  %v3091_v2 = vpop.f32.mrf.mxu0 }
 0x4a9   : > { %3063 = vmatpush.bf16.msra.mxu3 %v3054_v20 }
 0x4aa   : > { %v3167_v21 = vsel %vm887_vm4, %v3165_v24, %v3166_v18 }
 0x4ab   : > { %v2756_v8 = vpop.f32.mrf.mxu1 }
 0x4ac   : > { %v2757_v39 = vadd.f32 %v2756_v8, %v2737_v35 }
 0x4ae   : > { %v2784_v44 = vadd.f32 %v2780_v36, %v2757_v39  ;;  %v3157_v25 = vpop.f32.mrf.mxu2 }
 0x4b3   : > { %v2872_v32 = vpop.f32.mrf.mxu1 }
 0x4b6   : > { %v3159_v24 = vpop.f32.mrf.mxu2 }
 0x4b8   : > { %3759 = vmatmul.msk.bf16.vlgmr.msrb.gmra.mxu3 %vm360_vm1, %v2924_v58 }
 0x4b9   : > { %3181 = vmatpush.bf16.msrb.mxu3 %v3172_v51 }
 0x4bb   : > { %v2874_v61 = vpop.f32.mrf.mxu1 }
 0x4c8   : > { %3772 = vmatmul.msk.bf16.vlgmr.msra.gmra.mxu3 %vm360_vm1, %v4556_v42  ;;  %v3775_v42 = vld [vmem:[%s4868_s3 + $0x6] sm:$0x3] }
 0x4c9   : > { %3306 = vmatpush.msra.mxu3 %v4743_v50  ;;  %v3109_v50 = vsel %vm367_vm0, %v3775_v42, 0  ;;  %v3214_v42 = vpop.f32.mrf.mxu0 }
 0x4ca   : > { %3118 = vmatpush.bf16.msra.mxu1 %v3109_v50 }
 0x4d1   : > { %v3216_v36 = vpop.f32.mrf.mxu0 }
 0x4d8   : > { %3784 = vmatmul.msk.bf16.vlgmr.msrb.gmra.mxu3 %vm360_vm1, %v3167_v21 }
 0x51b   : > { %v2686_v62 = vpop.f32.mrf.mxu3 }
 0x51c   : > { %3731 = vst.msk [vmem:[%s4602_s17 + $0x50] sm:$0xff] %vm1108_vm6, %v2686_v62 }
 0x523   : > { %v2689_v22 = vpop.f32.mrf.mxu3 }
 0x524   : > { %3732 = vst.msk [vmem:[%s4602_s17 + $0x58] sm:$0xff] %vm1108_vm6, %v2689_v22  ;;  %v3277_v22 = vpop.f32.mrf.mxu2 }
 0x52b   : > { %v2809_v5 = vpop.f32.mrf.mxu3 }
 0x52c   : > { %v2814_v53 = vadd.f32 %v2809_v5, %v2783_v30 }
 0x52e   : > { %v2851_v13 = vadd.f32 %v2846_v10, %v2814_v53 }
 0x530   : > { %v2877_v43 = vadd.f32 %v2872_v32, %v2851_v13  ;;  %v3279_v13 = vpop.f32.mrf.mxu2 }
 0x532   : > { %v2908_v54 = vadd.f32 %v2903_v48, %v2877_v43 }
 0x533   : > { %v2811_v11 = vpop.f32.mrf.mxu3 }
 0x534   : > { %v2815_v40 = vadd.f32 %v2811_v11, %v2784_v44 }
 0x536   : > { %v2852_v12 = vadd.f32 %v2848_v1, %v2815_v40 }
 0x538   : > { %v2878_v9 = vadd.f32 %v2874_v61, %v2852_v12 }
 0x53a   : > { %v2909_v38 = vadd.f32 %v2905_v52, %v2878_v9 }
 0x53b   : > { %v2940_v55 = vpop.f32.mrf.mxu3 }
 0x53c   : > { %v2945_v59 = vadd.f32 %v2940_v55, %v2908_v54 }
 0x53e   : > { %v2971_v0 = vadd.f32 %v2966_v46, %v2945_v59 }
 0x540   : > { %3762 = vmatmul.msk.f32.vlgmr.msrb.gmra.mxu1 %vm1108_vm6, %v2971_v0 }
 0x541   : > { %3249 = vmatpush.bf16.msrb.mxu1 %v3240_v3 }
 0x543   : > { %v2942_v56 = vpop.f32.mrf.mxu3 }
 0x544   : > { %v2946_v14 = vadd.f32 %v2942_v56, %v2909_v38 }
 0x546   : > { %v2972_v45 = vadd.f32 %v2968_v19, %v2946_v14 }
 0x548   : > { %3763 = vmatmul.msk.f32.gmra.mxu1 %vm1108_vm6, %v2972_v45 }
 0x550   : > { %3780 = vmatmul.msk.bf16.vlgmr.msra.gmra.mxu1 %vm360_vm1, %v4587_v28  ;;  %v3065_v28 = vpop.f32.mrf.mxu3 }
 0x551   : > { %v3066_v16 = vadd.f32 %v3065_v28, %v3046_v49 }
 0x553   : > { %v3094_v63 = vadd.f32 %v3089_v41, %v3066_v16 }
 0x558   : > { %v3067_v37 = vpop.f32.mrf.mxu3 }
 0x559   : > { %v3068_v58 = vadd.f32 %v3067_v37, %v3048_v31 }
 0x55b   : > { %v3095_v62 = vadd.f32 %v3091_v2, %v3068_v58 }
 0x560   : > { %3792 = vmatmul.msk.bf16.vlgmr.msrb.gmra.mxu1 %vm360_vm1, %v3235_v60  ;;  %v3183_v21 = vpop.f32.mrf.mxu3 }
 0x568   : > { %v3185_v8 = vpop.f32.mrf.mxu3 }
 0x5bd   : > { %v2997_v20 = vpop.f32.mrf.mxu1 }
 0x5be   : > { %3764 = vst.msk [vmem:[%s4602_s17 + $0x60] sm:$0xff] %vm1108_vm6, %v2997_v20 }
 0x5c5   : > { %v3000_v26 = vpop.f32.mrf.mxu1 }
 0x5c6   : > { %3765 = vst.msk [vmem:[%s4602_s17 + $0x68] sm:$0xff] %vm1108_vm6, %v3000_v26 }
 0x5cd   : > { %v3120_v15 = vpop.f32.mrf.mxu1 }
 0x5ce   : > { %v3125_v51 = vadd.f32 %v3120_v15, %v3094_v63 }
 0x5d0   : > { %v3162_v18 = vadd.f32 %v3157_v25, %v3125_v51 }
 0x5d2   : > { %v3188_v47 = vadd.f32 %v3183_v21, %v3162_v18 }
 0x5d4   : > { %v3219_v27 = vadd.f32 %v3214_v42, %v3188_v47 }
 0x5d5   : > { %v3122_v29 = vpop.f32.mrf.mxu1 }
 0x5d6   : > { %v3126_v35 = vadd.f32 %v3122_v29, %v3095_v62 }
 0x5d8   : > { %v3163_v50 = vadd.f32 %v3159_v24, %v3126_v35 }
 0x5da   : > { %v3189_v30 = vadd.f32 %v3185_v8, %v3163_v50 }
 0x5dc   : > { %v3220_v53 = vadd.f32 %v3216_v36, %v3189_v30 }
 0x5dd   : > { %v3251_v10 = vpop.f32.mrf.mxu1 }
 0x5de   : > { %v3256_v7 = vadd.f32 %v3251_v10, %v3219_v27 }
 0x5e0   : > { %v3282_v5 = vadd.f32 %v3277_v22, %v3256_v7 }
 0x5e2   : > { %3795 = vmatmul.msk.f32.vlgmr.msra.gmra.mxu3 %vm1108_vm6, %v3282_v5 }
 0x5e5   : > { %v3253_v39 = vpop.f32.mrf.mxu1 }
 0x5e6   : > { %v3257_v1 = vadd.f32 %v3253_v39, %v3220_v53 }
 0x5e8   : > { %v3283_v32 = vadd.f32 %v3279_v13, %v3257_v1 }
 0x5ea   : > { %3796 = vmatmul.msk.f32.gmra.mxu3 %vm1108_vm6, %v3283_v32 }
 0x665   : > { %v3308_v11 = vpop.f32.mrf.mxu3 }
 0x666   : > { %3797 = vst.msk [vmem:[%s4602_s17 + $0x70] sm:$0xff] %vm1108_vm6, %v3308_v11 }
 0x66d   : > { %v3311_v44 = vpop.f32.mrf.mxu3 }
 0x66e   : > { %3798 = vst.msk [vmem:[%s4602_s17 + $0x78] sm:$0xff] %vm1108_vm6, %v3311_v44 }
 0x66f PF: > { %s15_s22 = sadd.s32 1, %s3925_s22   ;;  %s4871_s18 = smov %s3917_s20 }
 0x670   : > { %p12_p9 = scmp.ge.s32.totalorder %s15_s22, 6   ;;  %s4872_s19 = smov %s3921_s21 }
 0x671   : > { %s4873_s20 = smov %s4876_s23  ;;  %s4874_s21 = smov %s4880_s24 }
 0x672   :  { %14 = sbr.rel (!%p12_p9) target bundleno = 3 (0x3), region = 105 }

</bundles_post_ra>
